<compile_context>
chip_gen: v7x
topology: tpu7x:2x2x1
jax: 0.10.0
libtpu: 0.0.40
codegen_flags: <defaults>
</compile_context>

<pallas_src>
import jax
import jax.numpy as jnp
from jax import lax
from jax.experimental import pallas as pl
from jax.experimental.pallas import tpu as pltpu

KH, KW = 3, 3            # conv kernel size (module default)
LANES = 128
_POOL_PARITIES = ((0, 0), (0, 1), (1, 0), (1, 1))   # (dh, dw) of the 2x2 pool window


def _fused_conv_bn_relu_pool_kernel(xs_ref, w_ref, shift_ref, o_ref, a_ref):
    """Fused 3x3 conv (s=1, p=1) + folded BN + ReLU + 2x2/2 max-pool.

    xs_ref   : (NB, 2, 2, Ho+1, Wo+1, Cin) bf16 parity-decomposed padded images:
               xs[n, rp, cp, i, j, :] == x_padded[n, 2*i + rp, 2*j + cp, :]
    w_ref    : (9*Cin, Cp) bf16   BN-scale-folded weights, k = (ki*3+kj)*Cin + ci
    shift_ref: (1, Cp) f32        folded conv-bias + BN shift
    o_ref    : (NB, Cout, Ho*Wo) f32   NCHW-native pooled output
    a_ref    : (4, NB*Ho*Wo, 9*Cin) bf16 VMEM scratch: im2col LHS with the 4
               pool parities stacked on the M (rows) axis.
    """
    nb = xs_ref.shape[0]
    ho, wo, cin = xs_ref.shape[3] - 1, xs_ref.shape[4] - 1, xs_ref.shape[5]
    m = nb * ho * wo
    k = KH * KW * cin
    cp = w_ref.shape[1]
    cout = o_ref.shape[1]

    # Build the im2col LHS once: every patch is a contiguous slice of a parity
    # slab, reshaped only by collapsing leading dims (no lane relayout), and
    # written into its K-column / parity row-block of the VMEM scratch.
    for p, (dh, dw) in enumerate(_POOL_PARITIES):
        for ki in range(KH):
            for kj in range(KW):
                rcls, ccls = dh + ki, dw + kj
                patch = xs_ref[:, rcls % 2, ccls % 2,
                               rcls // 2:rcls // 2 + ho,
                               ccls // 2:ccls // 2 + wo, :]
                k0 = (ki * KW + kj) * cin
                a_ref[p, :, k0:k0 + cin] = patch.reshape(m, cin)

    # ONE MXU matmul per grid step: (4*M, 9*Cin) x (9*Cin, Cp), f32 accumulation
    # (no per-tap accumulate chain -> no MRF pops + VPU adds on any TPU gen).
    acc = jnp.dot(a_ref[...].reshape(4 * m, k), w_ref[...],
                  preferred_element_type=jnp.float32)

    # 2x2/2 max-pool == max over the 4 parity groups; +shift / ReLU are
    # monotone so they commute exactly with the max (done once on M rows).
    pooled = jnp.max(acc.reshape(4, m, cp), axis=0)
    y = jnp.maximum(pooled + shift_ref[...], 0.0)

    # Store only the real Cout channels, NCHW-native (spatial on lanes); the
    # small per-image transpose runs on the otherwise idle XLU.
    y = y[:, :cout].reshape(nb, ho * wo, cout)
    for n in range(nb):
        o_ref[n] = y[n].T


def _pick_batch_block(n, pixels):
    """Largest divisor nb of n such that the fused matmul has <= ~1024 rows
    (4 pool parities * nb * Ho*Wo), while keeping >= 2 grid steps when n >= 2
    so both TensorCores of dual-TC chips (v7x) are fed."""
    best = 1
    for d in range(1, n + 1):
        if n % d == 0 and 4 * d * pixels <= 1024 and (n // d >= 2 or n == 1):
            best = d
    return best


def base_cnn_forward(x_nchw, params):
    """BaseCNN forward: Conv2d(3x3,s=1,p=1) + BatchNorm2d(eval) + ReLU + MaxPool2d((2,2),2)."""
    w, b = params["w"], params["b"]
    gamma, beta = params["gamma"], params["beta"]
    rmean, rvar, eps = params["running_mean"], params["running_var"], params["eps"]

    N, Cin, H, W = x_nchw.shape
    Cout, wcin, kh, kw = w.shape
    assert (kh, kw) == (KH, KW) and wcin == Cin
    assert H >= 2 and W >= 2, "degenerate spatial size for 2x2/2 max pooling"
    Ho, Wo = H // 2, W // 2                       # MaxPool floor mode (ceil_mode=False)
    Cp = -(-Cout // LANES) * LANES                # lane-dense padded channel dim
    K = KH * KW * Cin
    nb = _pick_batch_block(N, Ho * Wo)            # images folded into the matmul M dim

    # ---- input: cast(bf16) + pad + free reshape + ONE transpose -------------
    # xs[n, rp, cp, i, j, ci] = x_padded[n, ci, 2*i + rp, 2*j + cp]  (bf16, same
    # byte count as the f32 input -- no im2col expansion in HBM).
    Hpad, Wpad = 2 * (Ho + 1), 2 * (Wo + 1)
    xb = x_nchw.astype(jnp.bfloat16)
    xp = jnp.pad(xb, ((0, 0), (0, 0), (1, Hpad - H - 1), (1, Wpad - W - 1)))
    xs = xp.reshape(N, Cin, Ho + 1, 2, Wo + 1, 2).transpose(0, 3, 5, 2, 4, 1)

    # ---- weights: fold eval-BN scale into f32 weights, then one bf16 RHS ----
    scale_c = gamma / jnp.sqrt(rvar + eps)
    w_k = jnp.transpose(w * scale_c[:, None, None, None], (2, 3, 1, 0)).reshape(K, Cout)
    w_k = jnp.pad(w_k, ((0, 0), (0, Cp - Cout))).astype(jnp.bfloat16)
    shift = (beta + (b - rmean) * scale_c)
    shift = jnp.pad(shift, (0, Cp - Cout)).reshape(1, Cp).astype(jnp.float32)

    out = pl.pallas_call(
        _fused_conv_bn_relu_pool_kernel,
        out_shape=jax.ShapeDtypeStruct((N, Cout, Ho * Wo), jnp.float32),
        grid_spec=pltpu.PrefetchScalarGridSpec(
            num_scalar_prefetch=0,
            grid=(N // nb,),
            in_specs=[
                pl.BlockSpec((nb, 2, 2, Ho + 1, Wo + 1, Cin),
                             lambda i: (i, 0, 0, 0, 0, 0)),
                pl.BlockSpec((K, Cp), lambda i: (0, 0)),
                pl.BlockSpec((1, Cp), lambda i: (0, 0)),
            ],
            out_specs=pl.BlockSpec((nb, Cout, Ho * Wo), lambda i: (i, 0, 0)),
            scratch_shapes=[pltpu.VMEM((4, nb * Ho * Wo, K), jnp.bfloat16)],
        ),
        compiler_params=pltpu.CompilerParams(
            dimension_semantics=("parallel",),        # batch blocks shard across TCs
            vmem_limit_bytes=32 * 1024 * 1024,        # working set << limit on all gens
        ),
    )(xs, w_k, shift)

    return out.reshape(N, Cout, Ho, Wo)               # free reshape; already NCHW


def _reference(x_nchw, params):
    """Pure-JAX reference mirroring PyTorch Conv2d + BN(eval) + ReLU + MaxPool,
    with the same BN-folding and bf16 MXU operand precision (f32 accumulation)."""
    w, b = params["w"], params["b"]
    gamma, beta = params["gamma"], params["beta"]
    rmean, rvar, eps = params["running_mean"], params["running_var"], params["eps"]
    scale = gamma / jnp.sqrt(rvar + eps)
    shift = beta + (b - rmean) * scale
    w_eff = (w * scale[:, None, None, None]).astype(jnp.bfloat16)
    y = lax.conv_general_dilated(
        x_nchw.astype(jnp.bfloat16), w_eff,
        window_strides=(1, 1), padding=((1, 1), (1, 1)),
        dimension_numbers=("NCHW", "OIHW", "NCHW"),
        preferred_element_type=jnp.float32)
    y = jnp.maximum(y + shift.reshape(1, -1, 1, 1), 0.0)
    y = lax.reduce_window(y, -jnp.inf, lax.max,
                          window_dimensions=(1, 1, 2, 2),
                          window_strides=(1, 1, 2, 2),
                          padding="VALID")
    return y


if __name__ == "__main__":
    key = jax.random.PRNGKey(0)
    k_x, k_w, k_b, k_g, k_be, k_m, k_v = jax.random.split(key, 7)

    # BaseCNN(in_channels=4, out_channels=8, norm='BN', activate='Relu',
    #         pooling='max_2-2-2') -> Conv3x3(s1,p1) + BN + ReLU + MaxPool2d((2,2),2)
    N, Cin, H, W = 2, 4, 16, 16
    Cout = 8

    x = jax.random.normal(k_x, (N, Cin, H, W), dtype=jnp.float32)
    params = {
        "w": jax.random.normal(k_w, (Cout, Cin, KH, KW), dtype=jnp.float32) * 0.1,
        "b": jax.random.normal(k_b, (Cout,), dtype=jnp.float32) * 0.1,
        "gamma": 1.0 + 0.1 * jax.random.normal(k_g, (Cout,), dtype=jnp.float32),
        "beta": 0.1 * jax.random.normal(k_be, (Cout,), dtype=jnp.float32),
        "running_mean": 0.1 * jax.random.normal(k_m, (Cout,), dtype=jnp.float32),
        "running_var": jax.random.uniform(k_v, (Cout,), dtype=jnp.float32,
                                          minval=0.5, maxval=1.5),
        "eps": jnp.float32(1e-5),
    }

    out = jax.block_until_ready(jax.jit(base_cnn_forward)(x, params))

    ref = _reference(x, params)
    assert out.shape == (N, Cout, H // 2, W // 2), out.shape
    assert jnp.allclose(out, ref, atol=1e-4, rtol=1e-4), \
        float(jnp.max(jnp.abs(out - ref)))

    print("KERNEL_OK")
</pallas_src>

<mosaic_0001>
module attributes {stable_mosaic.version = 11 : i64} {
  func.func @_fused_conv_bn_relu_pool_kernel(%arg0: i32, %arg1: memref<1x2x2x9x9x4xbf16, #tpu.memory_space<vmem>>, %arg2: memref<36x128xbf16, #tpu.memory_space<vmem>>, %arg3: memref<1x128xf32, #tpu.memory_space<vmem>>, %arg4: memref<1x8x64xf32, #tpu.memory_space<vmem>>, %arg5: memref<4x64x36xbf16, #tpu.memory_space<vmem>>) attributes {dimension_semantics = [#tpu.dimension_semantics<parallel>], iteration_bounds = array<i64: 2>, scalar_prefetch = 0 : i64, scratch_operands = 1 : i64, tpu.core_type = #tpu.core_type<tc>, window_params = [{transform_indices = @transform_0, window_bounds = array<i64: 1, 2, 2, 9, 9, 4>}, {pipeline_mode = #tpu.pipeline_mode<synchronous>, transform_indices = @transform_1, window_bounds = array<i64: 36, 128>}, {pipeline_mode = #tpu.pipeline_mode<synchronous>, transform_indices = @transform_2, window_bounds = array<i64: 1, 128>}, {transform_indices = @transform_3, window_bounds = array<i64: 1, 8, 64>}]} {
    %c0 = arith.constant 0 : index
    %c0_0 = arith.constant 0 : index
    %c0_1 = arith.constant 0 : index
    %c0_2 = arith.constant 0 : index
    %c0_3 = arith.constant 0 : index
    %c0_4 = arith.constant 0 : index
    %0 = vector.load %arg1[%c0, %c0_0, %c0_1, %c0_2, %c0_3, %c0_4] : memref<1x2x2x9x9x4xbf16, #tpu.memory_space<vmem>>, vector<1x1x1x8x8x4xbf16>
    %1 = vector.shape_cast %0 : vector<1x1x1x8x8x4xbf16> to vector<1x8x8x4xbf16>
    %2 = vector.shape_cast %1 : vector<1x8x8x4xbf16> to vector<64x4xbf16>
    %c0_5 = arith.constant 0 : index
    %c0_6 = arith.constant 0 : index
    %c0_7 = arith.constant 0 : index
    %3 = vector.load %arg5[%c0_5, %c0_6, %c0_7] : memref<4x64x36xbf16, #tpu.memory_space<vmem>>, vector<1x64x4xbf16>
    %4 = vector.shape_cast %3 : vector<1x64x4xbf16> to vector<64x4xbf16>
    %5 = vector.shape_cast %2 : vector<64x4xbf16> to vector<1x64x4xbf16>
    tpu.vector_store %arg5[%c0_5, %c0_6, %c0_7], %5 {strides = array<i32>} : memref<4x64x36xbf16, #tpu.memory_space<vmem>>, vector<1x64x4xbf16>,
    %c0_8 = arith.constant 0 : index
    %c0_9 = arith.constant 0 : index
    %c1 = arith.constant 1 : index
    %c0_10 = arith.constant 0 : index
    %c0_11 = arith.constant 0 : index
    %c0_12 = arith.constant 0 : index
    %6 = vector.load %arg1[%c0_8, %c0_9, %c1, %c0_10, %c0_11, %c0_12] : memref<1x2x2x9x9x4xbf16, #tpu.memory_space<vmem>>, vector<1x1x1x8x8x4xbf16>
    %7 = vector.shape_cast %6 : vector<1x1x1x8x8x4xbf16> to vector<1x8x8x4xbf16>
    %8 = vector.shape_cast %7 : vector<1x8x8x4xbf16> to vector<64x4xbf16>
    %c0_13 = arith.constant 0 : index
    %c0_14 = arith.constant 0 : index
    %c4 = arith.constant 4 : index
    %9 = vector.load %arg5[%c0_13, %c0_14, %c4] : memref<4x64x36xbf16, #tpu.memory_space<vmem>>, vector<1x64x4xbf16>
    %10 = vector.shape_cast %9 : vector<1x64x4xbf16> to vector<64x4xbf16>
    %11 = vector.shape_cast %8 : vector<64x4xbf16> to vector<1x64x4xbf16>
    tpu.vector_store %arg5[%c0_13, %c0_14, %c4], %11 {strides = array<i32>} : memref<4x64x36xbf16, #tpu.memory_space<vmem>>, vector<1x64x4xbf16>,
    %c0_15 = arith.constant 0 : index
    %c0_16 = arith.constant 0 : index
    %c0_17 = arith.constant 0 : index
    %c0_18 = arith.constant 0 : index
    %c1_19 = arith.constant 1 : index
    %c0_20 = arith.constant 0 : index
    %12 = vector.load %arg1[%c0_15, %c0_16, %c0_17, %c0_18, %c1_19, %c0_20] : memref<1x2x2x9x9x4xbf16, #tpu.memory_space<vmem>>, vector<1x1x1x8x8x4xbf16>
    %13 = vector.shape_cast %12 : vector<1x1x1x8x8x4xbf16> to vector<1x8x8x4xbf16>
    %14 = vector.shape_cast %13 : vector<1x8x8x4xbf16> to vector<64x4xbf16>
    %c0_21 = arith.constant 0 : index
    %c0_22 = arith.constant 0 : index
    %c8 = arith.constant 8 : index
    %15 = vector.load %arg5[%c0_21, %c0_22, %c8] : memref<4x64x36xbf16, #tpu.memory_space<vmem>>, vector<1x64x4xbf16>
    %16 = vector.shape_cast %15 : vector<1x64x4xbf16> to vector<64x4xbf16>
    %17 = vector.shape_cast %14 : vector<64x4xbf16> to vector<1x64x4xbf16>
    tpu.vector_store %arg5[%c0_21, %c0_22, %c8], %17 {strides = array<i32>} : memref<4x64x36xbf16, #tpu.memory_space<vmem>>, vector<1x64x4xbf16>,
    %c0_23 = arith.constant 0 : index
    %c1_24 = arith.constant 1 : index
    %c0_25 = arith.constant 0 : index
    %c0_26 = arith.constant 0 : index
    %c0_27 = arith.constant 0 : index
    %c0_28 = arith.constant 0 : index
    %18 = vector.load %arg1[%c0_23, %c1_24, %c0_25, %c0_26, %c0_27, %c0_28] : memref<1x2x2x9x9x4xbf16, #tpu.memory_space<vmem>>, vector<1x1x1x8x8x4xbf16>
    %19 = vector.shape_cast %18 : vector<1x1x1x8x8x4xbf16> to vector<1x8x8x4xbf16>
    %20 = vector.shape_cast %19 : vector<1x8x8x4xbf16> to vector<64x4xbf16>
    %c0_29 = arith.constant 0 : index
    %c0_30 = arith.constant 0 : index
    %c12 = arith.constant 12 : index
    %21 = vector.load %arg5[%c0_29, %c0_30, %c12] : memref<4x64x36xbf16, #tpu.memory_space<vmem>>, vector<1x64x4xbf16>
    %22 = vector.shape_cast %21 : vector<1x64x4xbf16> to vector<64x4xbf16>
    %23 = vector.shape_cast %20 : vector<64x4xbf16> to vector<1x64x4xbf16>
    tpu.vector_store %arg5[%c0_29, %c0_30, %c12], %23 {strides = array<i32>} : memref<4x64x36xbf16, #tpu.memory_space<vmem>>, vector<1x64x4xbf16>,
    %c0_31 = arith.constant 0 : index
    %c1_32 = arith.constant 1 : index
    %c1_33 = arith.constant 1 : index
    %c0_34 = arith.constant 0 : index
    %c0_35 = arith.constant 0 : index
    %c0_36 = arith.constant 0 : index
    %24 = vector.load %arg1[%c0_31, %c1_32, %c1_33, %c0_34, %c0_35, %c0_36] : memref<1x2x2x9x9x4xbf16, #tpu.memory_space<vmem>>, vector<1x1x1x8x8x4xbf16>
    %25 = vector.shape_cast %24 : vector<1x1x1x8x8x4xbf16> to vector<1x8x8x4xbf16>
    %26 = vector.shape_cast %25 : vector<1x8x8x4xbf16> to vector<64x4xbf16>
    %c0_37 = arith.constant 0 : index
    %c0_38 = arith.constant 0 : index
    %c16 = arith.constant 16 : index
    %27 = vector.load %arg5[%c0_37, %c0_38, %c16] : memref<4x64x36xbf16, #tpu.memory_space<vmem>>, vector<1x64x4xbf16>
    %28 = vector.shape_cast %27 : vector<1x64x4xbf16> to vector<64x4xbf16>
    %29 = vector.shape_cast %26 : vector<64x4xbf16> to vector<1x64x4xbf16>
    tpu.vector_store %arg5[%c0_37, %c0_38, %c16], %29 {strides = array<i32>} : memref<4x64x36xbf16, #tpu.memory_space<vmem>>, vector<1x64x4xbf16>,
    %c0_39 = arith.constant 0 : index
    %c1_40 = arith.constant 1 : index
    %c0_41 = arith.constant 0 : index
    %c0_42 = arith.constant 0 : index
    %c1_43 = arith.constant 1 : index
    %c0_44 = arith.constant 0 : index
    %30 = vector.load %arg1[%c0_39, %c1_40, %c0_41, %c0_42, %c1_43, %c0_44] : memref<1x2x2x9x9x4xbf16, #tpu.memory_space<vmem>>, vector<1x1x1x8x8x4xbf16>
    %31 = vector.shape_cast %30 : vector<1x1x1x8x8x4xbf16> to vector<1x8x8x4xbf16>
    %32 = vector.shape_cast %31 : vector<1x8x8x4xbf16> to vector<64x4xbf16>
    %c0_45 = arith.constant 0 : index
    %c0_46 = arith.constant 0 : index
    %c20 = arith.constant 20 : index
    %33 = vector.load %arg5[%c0_45, %c0_46, %c20] : memref<4x64x36xbf16, #tpu.memory_space<vmem>>, vector<1x64x4xbf16>
    %34 = vector.shape_cast %33 : vector<1x64x4xbf16> to vector<64x4xbf16>
    %35 = vector.shape_cast %32 : vector<64x4xbf16> to vector<1x64x4xbf16>
    tpu.vector_store %arg5[%c0_45, %c0_46, %c20], %35 {strides = array<i32>} : memref<4x64x36xbf16, #tpu.memory_space<vmem>>, vector<1x64x4xbf16>,
    %c0_47 = arith.constant 0 : index
    %c0_48 = arith.constant 0 : index
    %c0_49 = arith.constant 0 : index
    %c1_50 = arith.constant 1 : index
    %c0_51 = arith.constant 0 : index
    %c0_52 = arith.constant 0 : index
    %36 = vector.load %arg1[%c0_47, %c0_48, %c0_49, %c1_50, %c0_51, %c0_52] : memref<1x2x2x9x9x4xbf16, #tpu.memory_space<vmem>>, vector<1x1x1x8x8x4xbf16>
    %37 = vector.shape_cast %36 : vector<1x1x1x8x8x4xbf16> to vector<1x8x8x4xbf16>
    %38 = vector.shape_cast %37 : vector<1x8x8x4xbf16> to vector<64x4xbf16>
    %c0_53 = arith.constant 0 : index
    %c0_54 = arith.constant 0 : index
    %c24 = arith.constant 24 : index
    %39 = vector.load %arg5[%c0_53, %c0_54, %c24] : memref<4x64x36xbf16, #tpu.memory_space<vmem>>, vector<1x64x4xbf16>
    %40 = vector.shape_cast %39 : vector<1x64x4xbf16> to vector<64x4xbf16>
    %41 = vector.shape_cast %38 : vector<64x4xbf16> to vector<1x64x4xbf16>
    tpu.vector_store %arg5[%c0_53, %c0_54, %c24], %41 {strides = array<i32>} : memref<4x64x36xbf16, #tpu.memory_space<vmem>>, vector<1x64x4xbf16>,
    %c0_55 = arith.constant 0 : index
    %c0_56 = arith.constant 0 : index
    %c1_57 = arith.constant 1 : index
    %c1_58 = arith.constant 1 : index
    %c0_59 = arith.constant 0 : index
    %c0_60 = arith.constant 0 : index
    %42 = vector.load %arg1[%c0_55, %c0_56, %c1_57, %c1_58, %c0_59, %c0_60] : memref<1x2x2x9x9x4xbf16, #tpu.memory_space<vmem>>, vector<1x1x1x8x8x4xbf16>
    %43 = vector.shape_cast %42 : vector<1x1x1x8x8x4xbf16> to vector<1x8x8x4xbf16>
    %44 = vector.shape_cast %43 : vector<1x8x8x4xbf16> to vector<64x4xbf16>
    %c0_61 = arith.constant 0 : index
    %c0_62 = arith.constant 0 : index
    %c28 = arith.constant 28 : index
    %45 = vector.load %arg5[%c0_61, %c0_62, %c28] : memref<4x64x36xbf16, #tpu.memory_space<vmem>>, vector<1x64x4xbf16>
    %46 = vector.shape_cast %45 : vector<1x64x4xbf16> to vector<64x4xbf16>
    %47 = vector.shape_cast %44 : vector<64x4xbf16> to vector<1x64x4xbf16>
    tpu.vector_store %arg5[%c0_61, %c0_62, %c28], %47 {strides = array<i32>} : memref<4x64x36xbf16, #tpu.memory_space<vmem>>, vector<1x64x4xbf16>,
    %c0_63 = arith.constant 0 : index
    %c0_64 = arith.constant 0 : index
    %c0_65 = arith.constant 0 : index
    %c1_66 = arith.constant 1 : index
    %c1_67 = arith.constant 1 : index
    %c0_68 = arith.constant 0 : index
    %48 = vector.load %arg1[%c0_63, %c0_64, %c0_65, %c1_66, %c1_67, %c0_68] : memref<1x2x2x9x9x4xbf16, #tpu.memory_space<vmem>>, vector<1x1x1x8x8x4xbf16>
    %49 = vector.shape_cast %48 : vector<1x1x1x8x8x4xbf16> to vector<1x8x8x4xbf16>
    %50 = vector.shape_cast %49 : vector<1x8x8x4xbf16> to vector<64x4xbf16>
    %c0_69 = arith.constant 0 : index
    %c0_70 = arith.constant 0 : index
    %c32 = arith.constant 32 : index
    %51 = vector.load %arg5[%c0_69, %c0_70, %c32] : memref<4x64x36xbf16, #tpu.memory_space<vmem>>, vector<1x64x4xbf16>
    %52 = vector.shape_cast %51 : vector<1x64x4xbf16> to vector<64x4xbf16>
    %53 = vector.shape_cast %50 : vector<64x4xbf16> to vector<1x64x4xbf16>
    tpu.vector_store %arg5[%c0_69, %c0_70, %c32], %53 {strides = array<i32>} : memref<4x64x36xbf16, #tpu.memory_space<vmem>>, vector<1x64x4xbf16>,
    %c0_71 = arith.constant 0 : index
    %c0_72 = arith.constant 0 : index
    %c1_73 = arith.constant 1 : index
    %c0_74 = arith.constant 0 : index
    %c0_75 = arith.constant 0 : index
    %c0_76 = arith.constant 0 : index
    %54 = vector.load %arg1[%c0_71, %c0_72, %c1_73, %c0_74, %c0_75, %c0_76] : memref<1x2x2x9x9x4xbf16, #tpu.memory_space<vmem>>, vector<1x1x1x8x8x4xbf16>
    %55 = vector.shape_cast %54 : vector<1x1x1x8x8x4xbf16> to vector<1x8x8x4xbf16>
    %56 = vector.shape_cast %55 : vector<1x8x8x4xbf16> to vector<64x4xbf16>
    %c1_77 = arith.constant 1 : index
    %c0_78 = arith.constant 0 : index
    %c0_79 = arith.constant 0 : index
    %57 = vector.load %arg5[%c1_77, %c0_78, %c0_79] : memref<4x64x36xbf16, #tpu.memory_space<vmem>>, vector<1x64x4xbf16>
    %58 = vector.shape_cast %57 : vector<1x64x4xbf16> to vector<64x4xbf16>
    %59 = vector.shape_cast %56 : vector<64x4xbf16> to vector<1x64x4xbf16>
    tpu.vector_store %arg5[%c1_77, %c0_78, %c0_79], %59 {strides = array<i32>} : memref<4x64x36xbf16, #tpu.memory_space<vmem>>, vector<1x64x4xbf16>,
    %c0_80 = arith.constant 0 : index
    %c0_81 = arith.constant 0 : index
    %c0_82 = arith.constant 0 : index
    %c0_83 = arith.constant 0 : index
    %c1_84 = arith.constant 1 : index
    %c0_85 = arith.constant 0 : index
    %60 = vector.load %arg1[%c0_80, %c0_81, %c0_82, %c0_83, %c1_84, %c0_85] : memref<1x2x2x9x9x4xbf16, #tpu.memory_space<vmem>>, vector<1x1x1x8x8x4xbf16>
    %61 = vector.shape_cast %60 : vector<1x1x1x8x8x4xbf16> to vector<1x8x8x4xbf16>
    %62 = vector.shape_cast %61 : vector<1x8x8x4xbf16> to vector<64x4xbf16>
    %c1_86 = arith.constant 1 : index
    %c0_87 = arith.constant 0 : index
    %c4_88 = arith.constant 4 : index
    %63 = vector.load %arg5[%c1_86, %c0_87, %c4_88] : memref<4x64x36xbf16, #tpu.memory_space<vmem>>, vector<1x64x4xbf16>
    %64 = vector.shape_cast %63 : vector<1x64x4xbf16> to vector<64x4xbf16>
    %65 = vector.shape_cast %62 : vector<64x4xbf16> to vector<1x64x4xbf16>
    tpu.vector_store %arg5[%c1_86, %c0_87, %c4_88], %65 {strides = array<i32>} : memref<4x64x36xbf16, #tpu.memory_space<vmem>>, vector<1x64x4xbf16>,
    %c0_89 = arith.constant 0 : index
    %c0_90 = arith.constant 0 : index
    %c1_91 = arith.constant 1 : index
    %c0_92 = arith.constant 0 : index
    %c1_93 = arith.constant 1 : index
    %c0_94 = arith.constant 0 : index
    %66 = vector.load %arg1[%c0_89, %c0_90, %c1_91, %c0_92, %c1_93, %c0_94] : memref<1x2x2x9x9x4xbf16, #tpu.memory_space<vmem>>, vector<1x1x1x8x8x4xbf16>
    %67 = vector.shape_cast %66 : vector<1x1x1x8x8x4xbf16> to vector<1x8x8x4xbf16>
    %68 = vector.shape_cast %67 : vector<1x8x8x4xbf16> to vector<64x4xbf16>
    %c1_95 = arith.constant 1 : index
    %c0_96 = arith.constant 0 : index
    %c8_97 = arith.constant 8 : index
    %69 = vector.load %arg5[%c1_95, %c0_96, %c8_97] : memref<4x64x36xbf16, #tpu.memory_space<vmem>>, vector<1x64x4xbf16>
    %70 = vector.shape_cast %69 : vector<1x64x4xbf16> to vector<64x4xbf16>
    %71 = vector.shape_cast %68 : vector<64x4xbf16> to vector<1x64x4xbf16>
    tpu.vector_store %arg5[%c1_95, %c0_96, %c8_97], %71 {strides = array<i32>} : memref<4x64x36xbf16, #tpu.memory_space<vmem>>, vector<1x64x4xbf16>,
    %c0_98 = arith.constant 0 : index
    %c1_99 = arith.constant 1 : index
    %c1_100 = arith.constant 1 : index
    %c0_101 = arith.constant 0 : index
    %c0_102 = arith.constant 0 : index
    %c0_103 = arith.constant 0 : index
    %72 = vector.load %arg1[%c0_98, %c1_99, %c1_100, %c0_101, %c0_102, %c0_103] : memref<1x2x2x9x9x4xbf16, #tpu.memory_space<vmem>>, vector<1x1x1x8x8x4xbf16>
    %73 = vector.shape_cast %72 : vector<1x1x1x8x8x4xbf16> to vector<1x8x8x4xbf16>
    %74 = vector.shape_cast %73 : vector<1x8x8x4xbf16> to vector<64x4xbf16>
    %c1_104 = arith.constant 1 : index
    %c0_105 = arith.constant 0 : index
    %c12_106 = arith.constant 12 : index
    %75 = vector.load %arg5[%c1_104, %c0_105, %c12_106] : memref<4x64x36xbf16, #tpu.memory_space<vmem>>, vector<1x64x4xbf16>
    %76 = vector.shape_cast %75 : vector<1x64x4xbf16> to vector<64x4xbf16>
    %77 = vector.shape_cast %74 : vector<64x4xbf16> to vector<1x64x4xbf16>
    tpu.vector_store %arg5[%c1_104, %c0_105, %c12_106], %77 {strides = array<i32>} : memref<4x64x36xbf16, #tpu.memory_space<vmem>>, vector<1x64x4xbf16>,
    %c0_107 = arith.constant 0 : index
    %c1_108 = arith.constant 1 : index
    %c0_109 = arith.constant 0 : index
    %c0_110 = arith.constant 0 : index
    %c1_111 = arith.constant 1 : index
    %c0_112 = arith.constant 0 : index
    %78 = vector.load %arg1[%c0_107, %c1_108, %c0_109, %c0_110, %c1_111, %c0_112] : memref<1x2x2x9x9x4xbf16, #tpu.memory_space<vmem>>, vector<1x1x1x8x8x4xbf16>
    %79 = vector.shape_cast %78 : vector<1x1x1x8x8x4xbf16> to vector<1x8x8x4xbf16>
    %80 = vector.shape_cast %79 : vector<1x8x8x4xbf16> to vector<64x4xbf16>
    %c1_113 = arith.constant 1 : index
    %c0_114 = arith.constant 0 : index
    %c16_115 = arith.constant 16 : index
    %81 = vector.load %arg5[%c1_113, %c0_114, %c16_115] : memref<4x64x36xbf16, #tpu.memory_space<vmem>>, vector<1x64x4xbf16>
    %82 = vector.shape_cast %81 : vector<1x64x4xbf16> to vector<64x4xbf16>
    %83 = vector.shape_cast %80 : vector<64x4xbf16> to vector<1x64x4xbf16>
    tpu.vector_store %arg5[%c1_113, %c0_114, %c16_115], %83 {strides = array<i32>} : memref<4x64x36xbf16, #tpu.memory_space<vmem>>, vector<1x64x4xbf16>,
    %c0_116 = arith.constant 0 : index
    %c1_117 = arith.constant 1 : index
    %c1_118 = arith.constant 1 : index
    %c0_119 = arith.constant 0 : index
    %c1_120 = arith.constant 1 : index
    %c0_121 = arith.constant 0 : index
    %84 = vector.load %arg1[%c0_116, %c1_117, %c1_118, %c0_119, %c1_120, %c0_121] : memref<1x2x2x9x9x4xbf16, #tpu.memory_space<vmem>>, vector<1x1x1x8x8x4xbf16>
    %85 = vector.shape_cast %84 : vector<1x1x1x8x8x4xbf16> to vector<1x8x8x4xbf16>
    %86 = vector.shape_cast %85 : vector<1x8x8x4xbf16> to vector<64x4xbf16>
    %c1_122 = arith.constant 1 : index
    %c0_123 = arith.constant 0 : index
    %c20_124 = arith.constant 20 : index
    %87 = vector.load %arg5[%c1_122, %c0_123, %c20_124] : memref<4x64x36xbf16, #tpu.memory_space<vmem>>, vector<1x64x4xbf16>
    %88 = vector.shape_cast %87 : vector<1x64x4xbf16> to vector<64x4xbf16>
    %89 = vector.shape_cast %86 : vector<64x4xbf16> to vector<1x64x4xbf16>
    tpu.vector_store %arg5[%c1_122, %c0_123, %c20_124], %89 {strides = array<i32>} : memref<4x64x36xbf16, #tpu.memory_space<vmem>>, vector<1x64x4xbf16>,
    %c0_125 = arith.constant 0 : index
    %c0_126 = arith.constant 0 : index
    %c1_127 = arith.constant 1 : index
    %c1_128 = arith.constant 1 : index
    %c0_129 = arith.constant 0 : index
    %c0_130 = arith.constant 0 : index
    %90 = vector.load %arg1[%c0_125, %c0_126, %c1_127, %c1_128, %c0_129, %c0_130] : memref<1x2x2x9x9x4xbf16, #tpu.memory_space<vmem>>, vector<1x1x1x8x8x4xbf16>
    %91 = vector.shape_cast %90 : vector<1x1x1x8x8x4xbf16> to vector<1x8x8x4xbf16>
    %92 = vector.shape_cast %91 : vector<1x8x8x4xbf16> to vector<64x4xbf16>
    %c1_131 = arith.constant 1 : index
    %c0_132 = arith.constant 0 : index
    %c24_133 = arith.constant 24 : index
    %93 = vector.load %arg5[%c1_131, %c0_132, %c24_133] : memref<4x64x36xbf16, #tpu.memory_space<vmem>>, vector<1x64x4xbf16>
    %94 = vector.shape_cast %93 : vector<1x64x4xbf16> to vector<64x4xbf16>
    %95 = vector.shape_cast %92 : vector<64x4xbf16> to vector<1x64x4xbf16>
    tpu.vector_store %arg5[%c1_131, %c0_132, %c24_133], %95 {strides = array<i32>} : memref<4x64x36xbf16, #tpu.memory_space<vmem>>, vector<1x64x4xbf16>,
    %c0_134 = arith.constant 0 : index
    %c0_135 = arith.constant 0 : index
    %c0_136 = arith.constant 0 : index
    %c1_137 = arith.constant 1 : index
    %c1_138 = arith.constant 1 : index
    %c0_139 = arith.constant 0 : index
    %96 = vector.load %arg1[%c0_134, %c0_135, %c0_136, %c1_137, %c1_138, %c0_139] : memref<1x2x2x9x9x4xbf16, #tpu.memory_space<vmem>>, vector<1x1x1x8x8x4xbf16>
    %97 = vector.shape_cast %96 : vector<1x1x1x8x8x4xbf16> to vector<1x8x8x4xbf16>
    %98 = vector.shape_cast %97 : vector<1x8x8x4xbf16> to vector<64x4xbf16>
    %c1_140 = arith.constant 1 : index
    %c0_141 = arith.constant 0 : index
    %c28_142 = arith.constant 28 : index
    %99 = vector.load %arg5[%c1_140, %c0_141, %c28_142] : memref<4x64x36xbf16, #tpu.memory_space<vmem>>, vector<1x64x4xbf16>
    %100 = vector.shape_cast %99 : vector<1x64x4xbf16> to vector<64x4xbf16>
    %101 = vector.shape_cast %98 : vector<64x4xbf16> to vector<1x64x4xbf16>
    tpu.vector_store %arg5[%c1_140, %c0_141, %c28_142], %101 {strides = array<i32>} : memref<4x64x36xbf16, #tpu.memory_space<vmem>>, vector<1x64x4xbf16>,
    %c0_143 = arith.constant 0 : index
    %c0_144 = arith.constant 0 : index
    %c1_145 = arith.constant 1 : index
    %c1_146 = arith.constant 1 : index
    %c1_147 = arith.constant 1 : index
    %c0_148 = arith.constant 0 : index
    %102 = vector.load %arg1[%c0_143, %c0_144, %c1_145, %c1_146, %c1_147, %c0_148] : memref<1x2x2x9x9x4xbf16, #tpu.memory_space<vmem>>, vector<1x1x1x8x8x4xbf16>
    %103 = vector.shape_cast %102 : vector<1x1x1x8x8x4xbf16> to vector<1x8x8x4xbf16>
    %104 = vector.shape_cast %103 : vector<1x8x8x4xbf16> to vector<64x4xbf16>
    %c1_149 = arith.constant 1 : index
    %c0_150 = arith.constant 0 : index
    %c32_151 = arith.constant 32 : index
    %105 = vector.load %arg5[%c1_149, %c0_150, %c32_151] : memref<4x64x36xbf16, #tpu.memory_space<vmem>>, vector<1x64x4xbf16>
    %106 = vector.shape_cast %105 : vector<1x64x4xbf16> to vector<64x4xbf16>
    %107 = vector.shape_cast %104 : vector<64x4xbf16> to vector<1x64x4xbf16>
    tpu.vector_store %arg5[%c1_149, %c0_150, %c32_151], %107 {strides = array<i32>} : memref<4x64x36xbf16, #tpu.memory_space<vmem>>, vector<1x64x4xbf16>,
    %c0_152 = arith.constant 0 : index
    %c1_153 = arith.constant 1 : index
    %c0_154 = arith.constant 0 : index
    %c0_155 = arith.constant 0 : index
    %c0_156 = arith.constant 0 : index
    %c0_157 = arith.constant 0 : index
    %108 = vector.load %arg1[%c0_152, %c1_153, %c0_154, %c0_155, %c0_156, %c0_157] : memref<1x2x2x9x9x4xbf16, #tpu.memory_space<vmem>>, vector<1x1x1x8x8x4xbf16>
    %109 = vector.shape_cast %108 : vector<1x1x1x8x8x4xbf16> to vector<1x8x8x4xbf16>
    %110 = vector.shape_cast %109 : vector<1x8x8x4xbf16> to vector<64x4xbf16>
    %c2 = arith.constant 2 : index
    %c0_158 = arith.constant 0 : index
    %c0_159 = arith.constant 0 : index
    %111 = vector.load %arg5[%c2, %c0_158, %c0_159] : memref<4x64x36xbf16, #tpu.memory_space<vmem>>, vector<1x64x4xbf16>
    %112 = vector.shape_cast %111 : vector<1x64x4xbf16> to vector<64x4xbf16>
    %113 = vector.shape_cast %110 : vector<64x4xbf16> to vector<1x64x4xbf16>
    tpu.vector_store %arg5[%c2, %c0_158, %c0_159], %113 {strides = array<i32>} : memref<4x64x36xbf16, #tpu.memory_space<vmem>>, vector<1x64x4xbf16>,
    %c0_160 = arith.constant 0 : index
    %c1_161 = arith.constant 1 : index
    %c1_162 = arith.constant 1 : index
    %c0_163 = arith.constant 0 : index
    %c0_164 = arith.constant 0 : index
    %c0_165 = arith.constant 0 : index
    %114 = vector.load %arg1[%c0_160, %c1_161, %c1_162, %c0_163, %c0_164, %c0_165] : memref<1x2x2x9x9x4xbf16, #tpu.memory_space<vmem>>, vector<1x1x1x8x8x4xbf16>
    %115 = vector.shape_cast %114 : vector<1x1x1x8x8x4xbf16> to vector<1x8x8x4xbf16>
    %116 = vector.shape_cast %115 : vector<1x8x8x4xbf16> to vector<64x4xbf16>
    %c2_166 = arith.constant 2 : index
    %c0_167 = arith.constant 0 : index
    %c4_168 = arith.constant 4 : index
    %117 = vector.load %arg5[%c2_166, %c0_167, %c4_168] : memref<4x64x36xbf16, #tpu.memory_space<vmem>>, vector<1x64x4xbf16>
    %118 = vector.shape_cast %117 : vector<1x64x4xbf16> to vector<64x4xbf16>
    %119 = vector.shape_cast %116 : vector<64x4xbf16> to vector<1x64x4xbf16>
    tpu.vector_store %arg5[%c2_166, %c0_167, %c4_168], %119 {strides = array<i32>} : memref<4x64x36xbf16, #tpu.memory_space<vmem>>, vector<1x64x4xbf16>,
    %c0_169 = arith.constant 0 : index
    %c1_170 = arith.constant 1 : index
    %c0_171 = arith.constant 0 : index
    %c0_172 = arith.constant 0 : index
    %c1_173 = arith.constant 1 : index
    %c0_174 = arith.constant 0 : index
    %120 = vector.load %arg1[%c0_169, %c1_170, %c0_171, %c0_172, %c1_173, %c0_174] : memref<1x2x2x9x9x4xbf16, #tpu.memory_space<vmem>>, vector<1x1x1x8x8x4xbf16>
    %121 = vector.shape_cast %120 : vector<1x1x1x8x8x4xbf16> to vector<1x8x8x4xbf16>
    %122 = vector.shape_cast %121 : vector<1x8x8x4xbf16> to vector<64x4xbf16>
    %c2_175 = arith.constant 2 : index
    %c0_176 = arith.constant 0 : index
    %c8_177 = arith.constant 8 : index
    %123 = vector.load %arg5[%c2_175, %c0_176, %c8_177] : memref<4x64x36xbf16, #tpu.memory_space<vmem>>, vector<1x64x4xbf16>
    %124 = vector.shape_cast %123 : vector<1x64x4xbf16> to vector<64x4xbf16>
    %125 = vector.shape_cast %122 : vector<64x4xbf16> to vector<1x64x4xbf16>
    tpu.vector_store %arg5[%c2_175, %c0_176, %c8_177], %125 {strides = array<i32>} : memref<4x64x36xbf16, #tpu.memory_space<vmem>>, vector<1x64x4xbf16>,
    %c0_178 = arith.constant 0 : index
    %c0_179 = arith.constant 0 : index
    %c0_180 = arith.constant 0 : index
    %c1_181 = arith.constant 1 : index
    %c0_182 = arith.constant 0 : index
    %c0_183 = arith.constant 0 : index
    %126 = vector.load %arg1[%c0_178, %c0_179, %c0_180, %c1_181, %c0_182, %c0_183] : memref<1x2x2x9x9x4xbf16, #tpu.memory_space<vmem>>, vector<1x1x1x8x8x4xbf16>
    %127 = vector.shape_cast %126 : vector<1x1x1x8x8x4xbf16> to vector<1x8x8x4xbf16>
    %128 = vector.shape_cast %127 : vector<1x8x8x4xbf16> to vector<64x4xbf16>
    %c2_184 = arith.constant 2 : index
    %c0_185 = arith.constant 0 : index
    %c12_186 = arith.constant 12 : index
    %129 = vector.load %arg5[%c2_184, %c0_185, %c12_186] : memref<4x64x36xbf16, #tpu.memory_space<vmem>>, vector<1x64x4xbf16>
    %130 = vector.shape_cast %129 : vector<1x64x4xbf16> to vector<64x4xbf16>
    %131 = vector.shape_cast %128 : vector<64x4xbf16> to vector<1x64x4xbf16>
    tpu.vector_store %arg5[%c2_184, %c0_185, %c12_186], %131 {strides = array<i32>} : memref<4x64x36xbf16, #tpu.memory_space<vmem>>, vector<1x64x4xbf16>,
    %c0_187 = arith.constant 0 : index
    %c0_188 = arith.constant 0 : index
    %c1_189 = arith.constant 1 : index
    %c1_190 = arith.constant 1 : index
    %c0_191 = arith.constant 0 : index
    %c0_192 = arith.constant 0 : index
    %132 = vector.load %arg1[%c0_187, %c0_188, %c1_189, %c1_190, %c0_191, %c0_192] : memref<1x2x2x9x9x4xbf16, #tpu.memory_space<vmem>>, vector<1x1x1x8x8x4xbf16>
    %133 = vector.shape_cast %132 : vector<1x1x1x8x8x4xbf16> to vector<1x8x8x4xbf16>
    %134 = vector.shape_cast %133 : vector<1x8x8x4xbf16> to vector<64x4xbf16>
    %c2_193 = arith.constant 2 : index
    %c0_194 = arith.constant 0 : index
    %c16_195 = arith.constant 16 : index
    %135 = vector.load %arg5[%c2_193, %c0_194, %c16_195] : memref<4x64x36xbf16, #tpu.memory_space<vmem>>, vector<1x64x4xbf16>
    %136 = vector.shape_cast %135 : vector<1x64x4xbf16> to vector<64x4xbf16>
    %137 = vector.shape_cast %134 : vector<64x4xbf16> to vector<1x64x4xbf16>
    tpu.vector_store %arg5[%c2_193, %c0_194, %c16_195], %137 {strides = array<i32>} : memref<4x64x36xbf16, #tpu.memory_space<vmem>>, vector<1x64x4xbf16>,
    %c0_196 = arith.constant 0 : index
    %c0_197 = arith.constant 0 : index
    %c0_198 = arith.constant 0 : index
    %c1_199 = arith.constant 1 : index
    %c1_200 = arith.constant 1 : index
    %c0_201 = arith.constant 0 : index
    %138 = vector.load %arg1[%c0_196, %c0_197, %c0_198, %c1_199, %c1_200, %c0_201] : memref<1x2x2x9x9x4xbf16, #tpu.memory_space<vmem>>, vector<1x1x1x8x8x4xbf16>
    %139 = vector.shape_cast %138 : vector<1x1x1x8x8x4xbf16> to vector<1x8x8x4xbf16>
    %140 = vector.shape_cast %139 : vector<1x8x8x4xbf16> to vector<64x4xbf16>
    %c2_202 = arith.constant 2 : index
    %c0_203 = arith.constant 0 : index
    %c20_204 = arith.constant 20 : index
    %141 = vector.load %arg5[%c2_202, %c0_203, %c20_204] : memref<4x64x36xbf16, #tpu.memory_space<vmem>>, vector<1x64x4xbf16>
    %142 = vector.shape_cast %141 : vector<1x64x4xbf16> to vector<64x4xbf16>
    %143 = vector.shape_cast %140 : vector<64x4xbf16> to vector<1x64x4xbf16>
    tpu.vector_store %arg5[%c2_202, %c0_203, %c20_204], %143 {strides = array<i32>} : memref<4x64x36xbf16, #tpu.memory_space<vmem>>, vector<1x64x4xbf16>,
    %c0_205 = arith.constant 0 : index
    %c1_206 = arith.constant 1 : index
    %c0_207 = arith.constant 0 : index
    %c1_208 = arith.constant 1 : index
    %c0_209 = arith.constant 0 : index
    %c0_210 = arith.constant 0 : index
    %144 = vector.load %arg1[%c0_205, %c1_206, %c0_207, %c1_208, %c0_209, %c0_210] : memref<1x2x2x9x9x4xbf16, #tpu.memory_space<vmem>>, vector<1x1x1x8x8x4xbf16>
    %145 = vector.shape_cast %144 : vector<1x1x1x8x8x4xbf16> to vector<1x8x8x4xbf16>
    %146 = vector.shape_cast %145 : vector<1x8x8x4xbf16> to vector<64x4xbf16>
    %c2_211 = arith.constant 2 : index
    %c0_212 = arith.constant 0 : index
    %c24_213 = arith.constant 24 : index
    %147 = vector.load %arg5[%c2_211, %c0_212, %c24_213] : memref<4x64x36xbf16, #tpu.memory_space<vmem>>, vector<1x64x4xbf16>
    %148 = vector.shape_cast %147 : vector<1x64x4xbf16> to vector<64x4xbf16>
    %149 = vector.shape_cast %146 : vector<64x4xbf16> to vector<1x64x4xbf16>
    tpu.vector_store %arg5[%c2_211, %c0_212, %c24_213], %149 {strides = array<i32>} : memref<4x64x36xbf16, #tpu.memory_space<vmem>>, vector<1x64x4xbf16>,
    %c0_214 = arith.constant 0 : index
    %c1_215 = arith.constant 1 : index
    %c1_216 = arith.constant 1 : index
    %c1_217 = arith.constant 1 : index
    %c0_218 = arith.constant 0 : index
    %c0_219 = arith.constant 0 : index
    %150 = vector.load %arg1[%c0_214, %c1_215, %c1_216, %c1_217, %c0_218, %c0_219] : memref<1x2x2x9x9x4xbf16, #tpu.memory_space<vmem>>, vector<1x1x1x8x8x4xbf16>
    %151 = vector.shape_cast %150 : vector<1x1x1x8x8x4xbf16> to vector<1x8x8x4xbf16>
    %152 = vector.shape_cast %151 : vector<1x8x8x4xbf16> to vector<64x4xbf16>
    %c2_220 = arith.constant 2 : index
    %c0_221 = arith.constant 0 : index
    %c28_222 = arith.constant 28 : index
    %153 = vector.load %arg5[%c2_220, %c0_221, %c28_222] : memref<4x64x36xbf16, #tpu.memory_space<vmem>>, vector<1x64x4xbf16>
    %154 = vector.shape_cast %153 : vector<1x64x4xbf16> to vector<64x4xbf16>
    %155 = vector.shape_cast %152 : vector<64x4xbf16> to vector<1x64x4xbf16>
    tpu.vector_store %arg5[%c2_220, %c0_221, %c28_222], %155 {strides = array<i32>} : memref<4x64x36xbf16, #tpu.memory_space<vmem>>, vector<1x64x4xbf16>,
    %c0_223 = arith.constant 0 : index
    %c1_224 = arith.constant 1 : index
    %c0_225 = arith.constant 0 : index
    %c1_226 = arith.constant 1 : index
    %c1_227 = arith.constant 1 : index
    %c0_228 = arith.constant 0 : index
    %156 = vector.load %arg1[%c0_223, %c1_224, %c0_225, %c1_226, %c1_227, %c0_228] : memref<1x2x2x9x9x4xbf16, #tpu.memory_space<vmem>>, vector<1x1x1x8x8x4xbf16>
    %157 = vector.shape_cast %156 : vector<1x1x1x8x8x4xbf16> to vector<1x8x8x4xbf16>
    %158 = vector.shape_cast %157 : vector<1x8x8x4xbf16> to vector<64x4xbf16>
    %c2_229 = arith.constant 2 : index
    %c0_230 = arith.constant 0 : index
    %c32_231 = arith.constant 32 : index
    %159 = vector.load %arg5[%c2_229, %c0_230, %c32_231] : memref<4x64x36xbf16, #tpu.memory_space<vmem>>, vector<1x64x4xbf16>
    %160 = vector.shape_cast %159 : vector<1x64x4xbf16> to vector<64x4xbf16>
    %161 = vector.shape_cast %158 : vector<64x4xbf16> to vector<1x64x4xbf16>
    tpu.vector_store %arg5[%c2_229, %c0_230, %c32_231], %161 {strides = array<i32>} : memref<4x64x36xbf16, #tpu.memory_space<vmem>>, vector<1x64x4xbf16>,
    %c0_232 = arith.constant 0 : index
    %c1_233 = arith.constant 1 : index
    %c1_234 = arith.constant 1 : index
    %c0_235 = arith.constant 0 : index
    %c0_236 = arith.constant 0 : index
    %c0_237 = arith.constant 0 : index
    %162 = vector.load %arg1[%c0_232, %c1_233, %c1_234, %c0_235, %c0_236, %c0_237] : memref<1x2x2x9x9x4xbf16, #tpu.memory_space<vmem>>, vector<1x1x1x8x8x4xbf16>
    %163 = vector.shape_cast %162 : vector<1x1x1x8x8x4xbf16> to vector<1x8x8x4xbf16>
    %164 = vector.shape_cast %163 : vector<1x8x8x4xbf16> to vector<64x4xbf16>
    %c3 = arith.constant 3 : index
    %c0_238 = arith.constant 0 : index
    %c0_239 = arith.constant 0 : index
    %165 = vector.load %arg5[%c3, %c0_238, %c0_239] : memref<4x64x36xbf16, #tpu.memory_space<vmem>>, vector<1x64x4xbf16>
    %166 = vector.shape_cast %165 : vector<1x64x4xbf16> to vector<64x4xbf16>
    %167 = vector.shape_cast %164 : vector<64x4xbf16> to vector<1x64x4xbf16>
    tpu.vector_store %arg5[%c3, %c0_238, %c0_239], %167 {strides = array<i32>} : memref<4x64x36xbf16, #tpu.memory_space<vmem>>, vector<1x64x4xbf16>,
    %c0_240 = arith.constant 0 : index
    %c1_241 = arith.constant 1 : index
    %c0_242 = arith.constant 0 : index
    %c0_243 = arith.constant 0 : index
    %c1_244 = arith.constant 1 : index
    %c0_245 = arith.constant 0 : index
    %168 = vector.load %arg1[%c0_240, %c1_241, %c0_242, %c0_243, %c1_244, %c0_245] : memref<1x2x2x9x9x4xbf16, #tpu.memory_space<vmem>>, vector<1x1x1x8x8x4xbf16>
    %169 = vector.shape_cast %168 : vector<1x1x1x8x8x4xbf16> to vector<1x8x8x4xbf16>
    %170 = vector.shape_cast %169 : vector<1x8x8x4xbf16> to vector<64x4xbf16>
    %c3_246 = arith.constant 3 : index
    %c0_247 = arith.constant 0 : index
    %c4_248 = arith.constant 4 : index
    %171 = vector.load %arg5[%c3_246, %c0_247, %c4_248] : memref<4x64x36xbf16, #tpu.memory_space<vmem>>, vector<1x64x4xbf16>
    %172 = vector.shape_cast %171 : vector<1x64x4xbf16> to vector<64x4xbf16>
    %173 = vector.shape_cast %170 : vector<64x4xbf16> to vector<1x64x4xbf16>
    tpu.vector_store %arg5[%c3_246, %c0_247, %c4_248], %173 {strides = array<i32>} : memref<4x64x36xbf16, #tpu.memory_space<vmem>>, vector<1x64x4xbf16>,
    %c0_249 = arith.constant 0 : index
    %c1_250 = arith.constant 1 : index
    %c1_251 = arith.constant 1 : index
    %c0_252 = arith.constant 0 : index
    %c1_253 = arith.constant 1 : index
    %c0_254 = arith.constant 0 : index
    %174 = vector.load %arg1[%c0_249, %c1_250, %c1_251, %c0_252, %c1_253, %c0_254] : memref<1x2x2x9x9x4xbf16, #tpu.memory_space<vmem>>, vector<1x1x1x8x8x4xbf16>
    %175 = vector.shape_cast %174 : vector<1x1x1x8x8x4xbf16> to vector<1x8x8x4xbf16>
    %176 = vector.shape_cast %175 : vector<1x8x8x4xbf16> to vector<64x4xbf16>
    %c3_255 = arith.constant 3 : index
    %c0_256 = arith.constant 0 : index
    %c8_257 = arith.constant 8 : index
    %177 = vector.load %arg5[%c3_255, %c0_256, %c8_257] : memref<4x64x36xbf16, #tpu.memory_space<vmem>>, vector<1x64x4xbf16>
    %178 = vector.shape_cast %177 : vector<1x64x4xbf16> to vector<64x4xbf16>
    %179 = vector.shape_cast %176 : vector<64x4xbf16> to vector<1x64x4xbf16>
    tpu.vector_store %arg5[%c3_255, %c0_256, %c8_257], %179 {strides = array<i32>} : memref<4x64x36xbf16, #tpu.memory_space<vmem>>, vector<1x64x4xbf16>,
    %c0_258 = arith.constant 0 : index
    %c0_259 = arith.constant 0 : index
    %c1_260 = arith.constant 1 : index
    %c1_261 = arith.constant 1 : index
    %c0_262 = arith.constant 0 : index
    %c0_263 = arith.constant 0 : index
    %180 = vector.load %arg1[%c0_258, %c0_259, %c1_260, %c1_261, %c0_262, %c0_263] : memref<1x2x2x9x9x4xbf16, #tpu.memory_space<vmem>>, vector<1x1x1x8x8x4xbf16>
    %181 = vector.shape_cast %180 : vector<1x1x1x8x8x4xbf16> to vector<1x8x8x4xbf16>
    %182 = vector.shape_cast %181 : vector<1x8x8x4xbf16> to vector<64x4xbf16>
    %c3_264 = arith.constant 3 : index
    %c0_265 = arith.constant 0 : index
    %c12_266 = arith.constant 12 : index
    %183 = vector.load %arg5[%c3_264, %c0_265, %c12_266] : memref<4x64x36xbf16, #tpu.memory_space<vmem>>, vector<1x64x4xbf16>
    %184 = vector.shape_cast %183 : vector<1x64x4xbf16> to vector<64x4xbf16>
    %185 = vector.shape_cast %182 : vector<64x4xbf16> to vector<1x64x4xbf16>
    tpu.vector_store %arg5[%c3_264, %c0_265, %c12_266], %185 {strides = array<i32>} : memref<4x64x36xbf16, #tpu.memory_space<vmem>>, vector<1x64x4xbf16>,
    %c0_267 = arith.constant 0 : index
    %c0_268 = arith.constant 0 : index
    %c0_269 = arith.constant 0 : index
    %c1_270 = arith.constant 1 : index
    %c1_271 = arith.constant 1 : index
    %c0_272 = arith.constant 0 : index
    %186 = vector.load %arg1[%c0_267, %c0_268, %c0_269, %c1_270, %c1_271, %c0_272] : memref<1x2x2x9x9x4xbf16, #tpu.memory_space<vmem>>, vector<1x1x1x8x8x4xbf16>
    %187 = vector.shape_cast %186 : vector<1x1x1x8x8x4xbf16> to vector<1x8x8x4xbf16>
    %188 = vector.shape_cast %187 : vector<1x8x8x4xbf16> to vector<64x4xbf16>
    %c3_273 = arith.constant 3 : index
    %c0_274 = arith.constant 0 : index
    %c16_275 = arith.constant 16 : index
    %189 = vector.load %arg5[%c3_273, %c0_274, %c16_275] : memref<4x64x36xbf16, #tpu.memory_space<vmem>>, vector<1x64x4xbf16>
    %190 = vector.shape_cast %189 : vector<1x64x4xbf16> to vector<64x4xbf16>
    %191 = vector.shape_cast %188 : vector<64x4xbf16> to vector<1x64x4xbf16>
    tpu.vector_store %arg5[%c3_273, %c0_274, %c16_275], %191 {strides = array<i32>} : memref<4x64x36xbf16, #tpu.memory_space<vmem>>, vector<1x64x4xbf16>,
    %c0_276 = arith.constant 0 : index
    %c0_277 = arith.constant 0 : index
    %c1_278 = arith.constant 1 : index
    %c1_279 = arith.constant 1 : index
    %c1_280 = arith.constant 1 : index
    %c0_281 = arith.constant 0 : index
    %192 = vector.load %arg1[%c0_276, %c0_277, %c1_278, %c1_279, %c1_280, %c0_281] : memref<1x2x2x9x9x4xbf16, #tpu.memory_space<vmem>>, vector<1x1x1x8x8x4xbf16>
    %193 = vector.shape_cast %192 : vector<1x1x1x8x8x4xbf16> to vector<1x8x8x4xbf16>
    %194 = vector.shape_cast %193 : vector<1x8x8x4xbf16> to vector<64x4xbf16>
    %c3_282 = arith.constant 3 : index
    %c0_283 = arith.constant 0 : index
    %c20_284 = arith.constant 20 : index
    %195 = vector.load %arg5[%c3_282, %c0_283, %c20_284] : memref<4x64x36xbf16, #tpu.memory_space<vmem>>, vector<1x64x4xbf16>
    %196 = vector.shape_cast %195 : vector<1x64x4xbf16> to vector<64x4xbf16>
    %197 = vector.shape_cast %194 : vector<64x4xbf16> to vector<1x64x4xbf16>
    tpu.vector_store %arg5[%c3_282, %c0_283, %c20_284], %197 {strides = array<i32>} : memref<4x64x36xbf16, #tpu.memory_space<vmem>>, vector<1x64x4xbf16>,
    %c0_285 = arith.constant 0 : index
    %c1_286 = arith.constant 1 : index
    %c1_287 = arith.constant 1 : index
    %c1_288 = arith.constant 1 : index
    %c0_289 = arith.constant 0 : index
    %c0_290 = arith.constant 0 : index
    %198 = vector.load %arg1[%c0_285, %c1_286, %c1_287, %c1_288, %c0_289, %c0_290] : memref<1x2x2x9x9x4xbf16, #tpu.memory_space<vmem>>, vector<1x1x1x8x8x4xbf16>
    %199 = vector.shape_cast %198 : vector<1x1x1x8x8x4xbf16> to vector<1x8x8x4xbf16>
    %200 = vector.shape_cast %199 : vector<1x8x8x4xbf16> to vector<64x4xbf16>
    %c3_291 = arith.constant 3 : index
    %c0_292 = arith.constant 0 : index
    %c24_293 = arith.constant 24 : index
    %201 = vector.load %arg5[%c3_291, %c0_292, %c24_293] : memref<4x64x36xbf16, #tpu.memory_space<vmem>>, vector<1x64x4xbf16>
    %202 = vector.shape_cast %201 : vector<1x64x4xbf16> to vector<64x4xbf16>
    %203 = vector.shape_cast %200 : vector<64x4xbf16> to vector<1x64x4xbf16>
    tpu.vector_store %arg5[%c3_291, %c0_292, %c24_293], %203 {strides = array<i32>} : memref<4x64x36xbf16, #tpu.memory_space<vmem>>, vector<1x64x4xbf16>,
    %c0_294 = arith.constant 0 : index
    %c1_295 = arith.constant 1 : index
    %c0_296 = arith.constant 0 : index
    %c1_297 = arith.constant 1 : index
    %c1_298 = arith.constant 1 : index
    %c0_299 = arith.constant 0 : index
    %204 = vector.load %arg1[%c0_294, %c1_295, %c0_296, %c1_297, %c1_298, %c0_299] : memref<1x2x2x9x9x4xbf16, #tpu.memory_space<vmem>>, vector<1x1x1x8x8x4xbf16>
    %205 = vector.shape_cast %204 : vector<1x1x1x8x8x4xbf16> to vector<1x8x8x4xbf16>
    %206 = vector.shape_cast %205 : vector<1x8x8x4xbf16> to vector<64x4xbf16>
    %c3_300 = arith.constant 3 : index
    %c0_301 = arith.constant 0 : index
    %c28_302 = arith.constant 28 : index
    %207 = vector.load %arg5[%c3_300, %c0_301, %c28_302] : memref<4x64x36xbf16, #tpu.memory_space<vmem>>, vector<1x64x4xbf16>
    %208 = vector.shape_cast %207 : vector<1x64x4xbf16> to vector<64x4xbf16>
    %209 = vector.shape_cast %206 : vector<64x4xbf16> to vector<1x64x4xbf16>
    tpu.vector_store %arg5[%c3_300, %c0_301, %c28_302], %209 {strides = array<i32>} : memref<4x64x36xbf16, #tpu.memory_space<vmem>>, vector<1x64x4xbf16>,
    %c0_303 = arith.constant 0 : index
    %c1_304 = arith.constant 1 : index
    %c1_305 = arith.constant 1 : index
    %c1_306 = arith.constant 1 : index
    %c1_307 = arith.constant 1 : index
    %c0_308 = arith.constant 0 : index
    %210 = vector.load %arg1[%c0_303, %c1_304, %c1_305, %c1_306, %c1_307, %c0_308] : memref<1x2x2x9x9x4xbf16, #tpu.memory_space<vmem>>, vector<1x1x1x8x8x4xbf16>
    %211 = vector.shape_cast %210 : vector<1x1x1x8x8x4xbf16> to vector<1x8x8x4xbf16>
    %212 = vector.shape_cast %211 : vector<1x8x8x4xbf16> to vector<64x4xbf16>
    %c3_309 = arith.constant 3 : index
    %c0_310 = arith.constant 0 : index
    %c32_311 = arith.constant 32 : index
    %213 = vector.load %arg5[%c3_309, %c0_310, %c32_311] : memref<4x64x36xbf16, #tpu.memory_space<vmem>>, vector<1x64x4xbf16>
    %214 = vector.shape_cast %213 : vector<1x64x4xbf16> to vector<64x4xbf16>
    %215 = vector.shape_cast %212 : vector<64x4xbf16> to vector<1x64x4xbf16>
    tpu.vector_store %arg5[%c3_309, %c0_310, %c32_311], %215 {strides = array<i32>} : memref<4x64x36xbf16, #tpu.memory_space<vmem>>, vector<1x64x4xbf16>,
    %c0_312 = arith.constant 0 : index
    %c0_313 = arith.constant 0 : index
    %c0_314 = arith.constant 0 : index
    %216 = vector.load %arg5[%c0_312, %c0_313, %c0_314] : memref<4x64x36xbf16, #tpu.memory_space<vmem>>, vector<4x64x36xbf16>
    %217 = vector.shape_cast %216 : vector<4x64x36xbf16> to vector<256x36xbf16>
    %c0_315 = arith.constant 0 : index
    %c0_316 = arith.constant 0 : index
    %218 = vector.load %arg2[%c0_315, %c0_316] : memref<36x128xbf16, #tpu.memory_space<vmem>>, vector<36x128xbf16>
    %cst = arith.constant dense<0.000000e+00> : vector<256x128xf32>
    %219 = tpu.matmul %217, %218, %cst {dimension_numbers = #tpu.dot_dimension_numbers<[1], [0], [0], [1], [0, 0, 1, 1], [], []>} : vector<256x36xbf16>, vector<36x128xbf16>, vector<256x128xf32> -> vector<256x128xf32>
    %220 = vector.shape_cast %219 : vector<256x128xf32> to vector<4x64x128xf32>
    %cst_317 = arith.constant dense<0xFF800000> : vector<64x128xf32>
    %221 = vector.multi_reduction <maximumf>, %220, %cst_317 [0] : vector<4x64x128xf32> to vector<64x128xf32>
    %c0_318 = arith.constant 0 : index
    %c0_319 = arith.constant 0 : index
    %222 = vector.load %arg3[%c0_318, %c0_319] : memref<1x128xf32, #tpu.memory_space<vmem>>, vector<1x128xf32>
    %223 = vector.broadcast %222 : vector<1x128xf32> to vector<64x128xf32>
    %224 = arith.addf %221, %223 : vector<64x128xf32>
    %cst_320 = arith.constant 0.000000e+00 : f32
    %225 = vector.broadcast %cst_320 : f32 to vector<64x128xf32>
    %226 = arith.maximumf %224, %225 : vector<64x128xf32>
    %227 = vector.extract_strided_slice %226 {offsets = [0, 0], sizes = [64, 8], strides = [1, 1]} : vector<64x128xf32> to vector<64x8xf32>
    %228 = vector.shape_cast %227 : vector<64x8xf32> to vector<1x64x8xf32>
    %229 = vector.shape_cast %228 : vector<1x64x8xf32> to vector<64x8xf32>
    %230 = tpu.transpose %229, [1, 0] : vector<64x8xf32> -> vector<8x64xf32>
    %c0_321 = arith.constant 0 : index
    %c0_322 = arith.constant 0 : index
    %c0_323 = arith.constant 0 : index
    %231 = vector.load %arg4[%c0_321, %c0_322, %c0_323] : memref<1x8x64xf32, #tpu.memory_space<vmem>>, vector<1x8x64xf32>
    %232 = vector.shape_cast %231 : vector<1x8x64xf32> to vector<8x64xf32>
    %233 = vector.shape_cast %230 : vector<8x64xf32> to vector<1x8x64xf32>
    tpu.vector_store %arg4[%c0_321, %c0_322, %c0_323], %233 {strides = array<i32>} : memref<1x8x64xf32, #tpu.memory_space<vmem>>, vector<1x8x64xf32>,
    return
  }
  func.func @transform_0(%arg0: i32) -> (i32, i32, i32, i32, i32, i32) {
    %c0_i32 = arith.constant 0 : i32
    %c0_i32_0 = arith.constant 0 : i32
    %c0_i32_1 = arith.constant 0 : i32
    %c0_i32_2 = arith.constant 0 : i32
    %c0_i32_3 = arith.constant 0 : i32
    %c0_i32_4 = arith.constant 0 : i32
    return %arg0, %c0_i32, %c0_i32_0, %c0_i32_1, %c0_i32_2, %c0_i32_3 : i32, i32, i32, i32, i32, i32
  }
  func.func @transform_1(%arg0: i32) -> (i32, i32) {
    %c0_i32 = arith.constant 0 : i32
    %c0_i32_0 = arith.constant 0 : i32
    %c0_i32_1 = arith.constant 0 : i32
    return %c0_i32, %c0_i32_0 : i32, i32
  }
  func.func @transform_2(%arg0: i32) -> (i32, i32) {
    %c0_i32 = arith.constant 0 : i32
    %c0_i32_0 = arith.constant 0 : i32
    %c0_i32_1 = arith.constant 0 : i32
    return %c0_i32, %c0_i32_0 : i32, i32
  }
  func.func @transform_3(%arg0: i32) -> (i32, i32, i32) {
    %c0_i32 = arith.constant 0 : i32
    %c0_i32_0 = arith.constant 0 : i32
    %c0_i32_1 = arith.constant 0 : i32
    return %arg0, %c0_i32, %c0_i32_0 : i32, i32, i32
  }
}

</mosaic_0001>

<bundles_post_ra>
// kernel: base_cnn_forward.1
= control target key start
LH: loop header
LB: loop body
LE: loop exit
PB: predicated region body
PF: predicated region fallthrough
CT: control target
= control target key end

     0   :  { %s4903_s12 = smov 0   ;;  %s6053_s0 = inlined_call_operand.vmem [shape: bf16[2,2,2,9,9,4], index: 0, kind: input, shape index: {}]   ;;  %s6054_s1 = inlined_call_operand.vmem [shape: bf16[36,128], index: 1, kind: input, shape index: {}]   ;;  %s6055_s2 = inlined_call_operand.vmem [shape: f32[1,128], index: 2, kind: input, shape index: {}]   ;;  %s6056_s3 = inlined_call_operand.vmem [shape: f32[2,8,64], index: 3, kind: output, shape index: {}]  }
   0x1 LB: > { %s4144_s13 = sadd.s32 4294967295, %s4873_s12   ;;  %p4148_p0 = scmp.ge.s32.totalorder %s4873_s12, 1  ;;  %s4873_s12 = sphi %s4903_s12, %s13_s12  }
   0x2   : > { %p137_p1 = scmp.lt.s32.totalorder %s4873_s12, 3 }
   0x4   : > { %p138_p2 = pnand %p4148_p0, %p137_p1 }
   0x5   : > { %p160_p3 = scmp.lt.s32.totalorder (!%p138_p2), %s4144_s13, 1  ;;  %vm269_vm0 = vsmask.f32 (!%p138_p2), 3328  ;;  %vm270_vm1 = vsmask.f32 (!%p138_p2), 7440  ;;  %s4875_s18 = smov (!%p138_p2), 12  }
   0x6   : > { %141 = sbr.rel (%p138_p2) target bundleno = 832 (0x340), region = 32  ;;  %s4876_s19 = smov (!%p138_p2), 4   ;;  %vm4942_vm2 = vmor (!%p138_p2), %vm269_vm0, %vm270_vm1  ;;  %vm202_vm3 = vcmask (!%p138_p2), 31744   ;;  %vm248_vm4 = vcmask (!%p138_p2), 64544   ;;  %vm408_vm5 = vcmask (!%p138_p2), 97344   ;;  %vm454_vm6 = vcmask (!%p138_p2), 130144  }
   0x7   : > { %s4877_s20 = smov (!%p138_p2), 16   ;;  %s4878_s21 = smov (!%p138_p2), 8   ;;  %vm500_vm7 = vcmask (!%p138_p2), 162944   ;;  %vm657_vm8 = vcmask (!%p138_p2), 195744   ;;  %vm703_vm9 = vcmask (!%p138_p2), 228544   ;;  %vm749_vm10 = vcmask (!%p138_p2), 261344  }
   0x8   : > { %s4879_s22 = smov (!%p138_p2), 24   ;;  %s4880_s23 = smov (!%p138_p2), 20   ;;  %vm906_vm11 = vcmask (!%p138_p2), 294144   ;;  %vm3796_vm12 = vcmask (!%p138_p2), 293888   ;;  %vm3845_vm13 = vcmask (!%p138_p2), 1041408   ;;  %vm4089_vm14 = vcmask (!%p138_p2), 523264  }
   0x9   : > { %s4881_s24 = smov (!%p138_p2), 28   ;;  %s4882_s25 = smov (!%p138_p2), 32  }
   0xd   : > { %s6060_s13 = smov (!%p160_p3, %s4144_s13), 1 }
   0xe   : > { %s4774_s14 = smul.u32 288, %s6060_s13  ;;  %s4150_s7 = sshll.u32 %s6060_s13, 3 }
   0xf   : > { %s168_s10 = scalar_lea.vmem %s6056_s3, %s4150_s7 }
  0x10   : > { %s4917_s17 = scalar_lea.vmem %s6053_s0, %s4774_s14 }
  0x11   : > { %v4792_v0 = vld [vmem:[%s4917_s17 + $0xa0] ss:$8 sps:$4 sm:$0xff]   ;;  %v4797_v5 = vld [vmem:[%s4917_s17 + $0x90] ss:$8 sps:$4 sm:$0xff]   ;;  %v254_v7 = vld [vmem:[%s4917_s17 + $0x4] sm:$0x1] }
  0x12   : > { %v4793_v1 = vld [vmem:[%s4917_s17 + $0x48] ss:$8 sps:$4 sm:$0xff]   ;;  %444 = vrot.lane.b32.xlu1 %v4792_v0, %s4875_s18  ;;  %v4795_v3 = vld [vmem:[%s4917_s17 + $0x58] ss:$8 sps:$4 sm:$0xff]   ;;  %v256_v9 = vld [vmem:[%s4917_s17 + $0xc] sm:$0x1] }
  0x13   : > { %v4794_v2 = vld [vmem:[%s4917_s17 + $0xe8] ss:$8 sps:$4 sm:$0xff]   ;;  %236 = vrot.lane.b32.xlu0 %v4793_v1, %s4876_s19  ;;  %v4796_v4 = vld [vmem:[%s4917_s17 + $0xd8] ss:$8 sps:$4 sm:$0xff]   ;;  %v282_v12 = vshll.u32 %v254_v7, 16  ;;  %v296_v15 = vshll.u32 %v256_v9, 16 }
  0x14   : > { %v253_v6 = vld [vmem:[%s4917_s17] sm:$0xf]  ;;  %v255_v8 = vld [vmem:[%s4917_s17 + $0x8] sm:$0xf]  ;;  %v257_v23 = vld [vmem:[%s4917_s17 + $0x10] sm:$0xf] }
  0x15   : > { %v273_v10 = vshrl.u32 %v253_v6, 16  ;;  %v276_v11 = vshll.u32 %v253_v6, 16  ;;  %v287_v13 = vshrl.u32 %v255_v8, 16  ;;  %v290_v14 = vshll.u32 %v255_v8, 16  ;;  %v4798_v20 = vld [vmem:[%s4917_s17 + $0xd8] ss:$8 sps:$4 sm:$0xff]  }
  0x16   : > { %490 = vrot.lane.b32.xlu1 %v4794_v2, %s4877_s20  ;;  %v284_v18 = vrot.slane %v282_v12, 5  ;;  %v298_v22 = vrot.slane %v296_v15, 5  ;;  %v258_v24 = vld [vmem:[%s4917_s17 + $0x14] sm:$0x1]  ;;  %v259_v26 = vld [vmem:[%s4917_s17 + $0x18] sm:$0xf] }
  0x17   : > { %238 = vrot.lane.b32.xlu0 %v4795_v3, %s4876_s19  ;;  %v275_v16 = vrot.slane %v273_v10, 4  ;;  %v278_v17 = vrot.slane %v276_v11, 5  ;;  %v289_v19 = vrot.slane %v287_v13, 4  ;;  %v292_v21 = vrot.slane %v290_v14, 5  ;;  %v260_v27 = vld [vmem:[%s4917_s17 + $0x1c] sm:$0x1] }
  0x18   : > { %v301_v28 = vshrl.u32 %v257_v23, 16  ;;  %v304_v29 = vshll.u32 %v257_v23, 16  ;;  %v310_v32 = vshll.u32 %v258_v24, 16  ;;  %v315_v33 = vshrl.u32 %v259_v26, 16  ;;  %v4195_v35 = vld [vmem:[%s4917_s17 + $0x90] sm:$0xf] }
  0x19   : > { %v279_v25 = vor.u32 %v278_v17, %v275_v16  ;;  %v293_v31 = vor.u32 %v292_v21, %v289_v19  ;;  %v318_v34 = vshll.u32 %v259_v26, 16  ;;  %v324_v39 = vshll.u32 %v260_v27, 16  ;;  %v4196_v40 = vld [vmem:[%s4917_s17 + $0x94] sm:$0x1]  ;;  %v4197_v45 = vld [vmem:[%s4917_s17 + $0x98] sm:$0xf] }
  0x1a   : > { %2037 = vrot.lane.b32.xlu1 %v4796_v4, %s4876_s19  ;;  %v303_v37 = vrot.slane %v301_v28, 4  ;;  %v306_v38 = vrot.slane %v304_v29, 5  ;;  %v312_v42 = vrot.slane %v310_v32, 5  ;;  %v317_v43 = vrot.slane %v315_v33, 4  ;;  %v4198_v52 = vld [vmem:[%s4917_s17 + $0x9c] sm:$0x1] }
  0x1b   : > { %442 = vrot.lane.b32.xlu0 %v4797_v5, %s4875_s18  ;;  %v280_v36 = vrot.slane %v279_v25, 4  ;;  %v294_v41 = vrot.slane %v293_v31, 4  ;;  %v320_v44 = vrot.slane %v318_v34, 5  ;;  %v326_v48 = vrot.slane %v324_v39, 5  ;;  %v4199_v59 = vld [vmem:[%s4917_s17 + $0xa0] sm:$0xf] }
  0x1c   : > { %v307_v47 = vor.u32 %v306_v38, %v303_v37  ;;  %v522_v49 = vshrl.u32 %v4195_v35, 16  ;;  %v525_v53 = vshll.u32 %v4195_v35, 16  ;;  %v531_v54 = vshll.u32 %v4196_v40, 16  ;;  %v4200_v63 = vld [vmem:[%s4917_s17 + $0xa4] sm:$0x1] }
  0x1d   : > { %v285_v46 = vsel %vm4942_vm2, %v280_v36, %v284_v18  ;;  %v299_v50 = vsel %vm4942_vm2, %v294_v41, %v298_v22  ;;  %v321_v51 = vor.u32 %v320_v44, %v317_v43  ;;  %v536_v58 = vshrl.u32 %v4197_v45, 16  ;;  %v4201_v4 = vld [vmem:[%s4917_s17 + $0xa8] sm:$0xf]  ;;  %v4202_v8 = vld [vmem:[%s4917_s17 + $0xac] sm:$0x1] }
  0x1e   : > { %v4167_v55 = vcombine.low %v285_v46, %v299_v50  ;;  %v308_v56 = vrot.slane %v307_v47, 4  ;;  %v524_v57 = vrot.slane %v522_v49, 4  ;;  %v527_v61 = vrot.slane %v525_v53, 5  ;;  %v4423_v10 = vld [vmem:[%s4917_s17 + $0x90] sm:$0xf] }
  0x1f   : > { %488 = vrot.lane.b32.xlu0 %v4798_v20, %s4877_s20  ;;  %v322_v60 = vrot.slane %v321_v51, 4  ;;  %v539_v62 = vshll.u32 %v4197_v45, 16  ;;  %v533_v1 = vrot.slane %v531_v54, 5  ;;  %v538_v2 = vrot.slane %v536_v58, 4  ;;  %v4799_v13 = vld [vmem:[%s4917_s17 + $0x8] ss:$8 sps:$4 sm:$0xff]  }
  0x20   : > { %396 = vrot.lane.b32.xlu1 %v4167_v55, %s4878_s21  ;;  %v313_v0 = vsel %vm4942_vm2, %v308_v56, %v312_v42  ;;  %v545_v3 = vshll.u32 %v4198_v52, 16  ;;  %v528_v6 = vor.u32 %v527_v61, %v524_v57  ;;  %v550_v9 = vshrl.u32 %v4199_v59, 16  ;;  %v4424_v16 = vld [vmem:[%s4917_s17 + $0x94] sm:$0x1]  ;;  %v4425_v21 = vld [vmem:[%s4917_s17 + $0x98] sm:$0xf] }
  0x21   : > { %v327_v5 = vsel %vm4942_vm2, %v322_v60, %v326_v48  ;;  %v541_v7 = vrot.slane %v539_v62, 5  ;;  %v553_v14 = vshll.u32 %v4199_v59, 16  ;;  %v559_v15 = vshll.u32 %v4200_v63, 16  ;;  %v4426_v34 = vld [vmem:[%s4917_s17 + $0x9c] sm:$0x1] }
  0x22   : > { %v4168_v11 = vcombine.low %v313_v0, %v327_v5  ;;  %v547_v12 = vrot.slane %v545_v3, 5  ;;  %v529_v17 = vrot.slane %v528_v6, 4  ;;  %v552_v19 = vrot.slane %v550_v9, 4  ;;  %v4427_v55 = vld [vmem:[%s4917_s17 + $0xa0] sm:$0xf] }
  0x23   : > { %v542_v18 = vor.u32 %v541_v7, %v538_v2  ;;  %v564_v20 = vshrl.u32 %v4201_v4, 16  ;;  %v555_v22 = vrot.slane %v553_v14, 5  ;;  %v561_v23 = vrot.slane %v559_v15, 5  ;;  %v4800_v58 = vld [vmem:[%s4917_s17 + $0xe8] ss:$8 sps:$4 sm:$0xff]  }
  0x24   : > { %398 = vrot.lane.b32.xlu1 %v4168_v11, %s4878_s21  ;;  %v567_v24 = vshll.u32 %v4201_v4, 16  ;;  %v573_v25 = vshll.u32 %v4202_v8, 16  ;;  %v534_v26 = vsel %vm4942_vm2, %v529_v17, %v533_v1  ;;  %v2070_v29 = vshrl.u32 %v4423_v10, 16  ;;  %v4428_v59 = vld [vmem:[%s4917_s17 + $0xa4] sm:$0x1] }
  0x25   : > { %v543_v27 = vrot.slane %v542_v18, 4  ;;  %v566_v28 = vrot.slane %v564_v20, 4  ;;  %v556_v31 = vor.u32 %v555_v22, %v552_v19  ;;  %v2073_v35 = vshll.u32 %v4423_v10, 16  ;;  %v4429_v60 = vld [vmem:[%s4917_s17 + $0xa8] sm:$0xf] }
  0x26   : > { %v569_v32 = vrot.slane %v567_v24, 5  ;;  %v575_v33 = vrot.slane %v573_v25, 5  ;;  %v2072_v37 = vrot.slane %v2070_v29, 4  ;;  %v2079_v38 = vshll.u32 %v4424_v16, 16  ;;  %v4430_v61 = vld [vmem:[%s4917_s17 + $0xac] sm:$0x1] }
  0x27   : > { %v548_v36 = vsel %vm4942_vm2, %v543_v27, %v547_v12  ;;  %v2084_v39 = vshrl.u32 %v4425_v21, 16  ;;  %v557_v41 = vrot.slane %v556_v31, 4  ;;  %v2075_v43 = vrot.slane %v2073_v35, 5  ;;  %v4239_v2 = vld [vmem:[%s4917_s17 + $0x8] sm:$0xf] }
  0x28   : > { %v4211_v40 = vcombine.low %v534_v26, %v548_v36  ;;  %691 = vrot.lane.b32.xlu1 %v4799_v13, %s4879_s22  ;;  %v570_v42 = vor.u32 %v569_v32, %v566_v28  ;;  %v2087_v45 = vshll.u32 %v4425_v21, 16  ;;  %v2093_v46 = vshll.u32 %v4426_v34, 16  ;;  %v4240_v7 = vld [vmem:[%s4917_s17 + $0xc] sm:$0x1]  ;;  %v4241_v11 = vld [vmem:[%s4917_s17 + $0x10] sm:$0xf] }
  0x29   : > { %v2086_v44 = vrot.slane %v2084_v39, 4  ;;  %v562_v47 = vsel %vm4942_vm2, %v557_v41, %v561_v23  ;;  %v2076_v49 = vor.u32 %v2075_v43, %v2072_v37  ;;  %v2081_v50 = vrot.slane %v2079_v38, 5  ;;  %v4242_v17 = vld [vmem:[%s4917_s17 + $0x14] sm:$0x1]  ;;  %v4801_v19 = vld [vmem:[%s4917_s17 + $0x50] ss:$8 sps:$4 sm:$0xff]  }
  0x2a   : > { %645 = vrot.lane.b32.xlu0 %v4211_v40, %s4880_s23  ;;  %v571_v48 = vrot.slane %v570_v42, 4  ;;  %v2089_v51 = vrot.slane %v2087_v45, 5  ;;  %v2095_v54 = vrot.slane %v2093_v46, 5  ;;  %v2098_v63 = vshrl.u32 %v4427_v55, 16  ;;  %v4802_v23 = vld [vmem:[%s4917_s17 + $0x18] ss:$8 sps:$4 sm:$0xff]  }
  0x2b   : > { %v2077_v53 = vrot.slane %v2076_v49, 4  ;;  %v2101_v0 = vshll.u32 %v4427_v55, 16  ;;  %v2107_v1 = vshll.u32 %v4428_v59, 16  ;;  %v2112_v4 = vshrl.u32 %v4429_v60, 16  ;;  %v4803_v35 = vld [vmem:[%s4917_s17 + $0x8] ss:$8 sps:$4 sm:$0xff]  }
  0x2c   : > { %v576_v52 = vsel %vm4942_vm2, %v571_v48, %v575_v33  ;;  %v2090_v57 = vor.u32 %v2089_v51, %v2086_v44  ;;  %v2115_v5 = vshll.u32 %v4429_v60, 16  ;;  %v2121_v6 = vshll.u32 %v4430_v61, 16  ;;  %v4243_v42 = vld [vmem:[%s4917_s17 + $0x18] sm:$0xf]  ;;  %v4244_v45 = vld [vmem:[%s4917_s17 + $0x1c] sm:$0x1] }
  0x2d   : > { %v4212_v56 = vcombine.low %v562_v47, %v576_v52  ;;  %v2082_v62 = vsel %vm4942_vm2, %v2077_v53, %v2081_v50  ;;  %v2100_v8 = vrot.slane %v2098_v63, 4  ;;  %v2103_v9 = vrot.slane %v2101_v0, 5  ;;  %v4245_v46 = vld [vmem:[%s4917_s17 + $0x20] sm:$0xf]  ;;  %v4246_v49 = vld [vmem:[%s4917_s17 + $0x24] sm:$0x1] }
  0x2e   : > { %v2091_v3 = vrot.slane %v2090_v57, 4  ;;  %v2109_v10 = vrot.slane %v2107_v1, 5  ;;  %v771_v12 = vshrl.u32 %v4239_v2, 16  ;;  %v2114_v14 = vrot.slane %v2112_v4, 4  ;;  %v4467_v1 = vld [vmem:[%s4917_s17 + $0x8] sm:$0xf] }
  0x2f   : > { %647 = vrot.lane.b32.xlu0 %v4212_v56, %s4880_s23  ;;  %v2117_v15 = vrot.slane %v2115_v5, 5  ;;  %v2123_v16 = vrot.slane %v2121_v6, 5  ;;  %v2104_v20 = vor.u32 %v2103_v9, %v2100_v8  ;;  %v774_v22 = vshll.u32 %v4239_v2, 16  ;;  %v4806_v2 = vld [vmem:[%s4917_s17 + $0x18] ss:$8 sps:$4 sm:$0xff]  }
  0x30   : > { %v2096_v13 = vsel %vm4942_vm2, %v2091_v3, %v2095_v54  ;;  %v773_v21 = vrot.slane %v771_v12, 4  ;;  %v780_v25 = vshll.u32 %v4240_v7, 16  ;;  %v785_v26 = vshrl.u32 %v4241_v11, 16  ;;  %v4468_v4 = vld [vmem:[%s4917_s17 + $0xc] sm:$0x1] }
  0x31   : > { %v4439_v18 = vcombine.low %v2082_v62, %v2096_v13  ;;  %v2118_v24 = vor.u32 %v2117_v15, %v2114_v14  ;;  %v788_v27 = vshll.u32 %v4241_v11, 16  ;;  %v2105_v28 = vrot.slane %v2104_v20, 4  ;;  %v4469_v5 = vld [vmem:[%s4917_s17 + $0x10] sm:$0xf]  ;;  %v4470_v6 = vld [vmem:[%s4917_s17 + $0x14] sm:$0x1] }
  0x32   : > { %v776_v29 = vrot.slane %v774_v22, 5  ;;  %v794_v31 = vshll.u32 %v4242_v17, 16  ;;  %v787_v33 = vrot.slane %v785_v26, 4  ;;  %v782_v38 = vrot.slane %v780_v25, 5  ;;  %v4805_v15 = vld [vmem:[%s4917_s17 + $0x50] ss:$8 sps:$4 sm:$0xff]  }
  0x33   : > { %2039 = vrot.lane.b32.xlu0 %v4800_v58, %s4876_s19  ;;  %2193 = vrot.lane.b32.xlu1 %v4439_v18, %s4878_s21  ;;  %v2119_v32 = vrot.slane %v2118_v24, 4  ;;  %v790_v34 = vrot.slane %v788_v27, 5  ;;  %v2110_v36 = vsel %vm4942_vm2, %v2105_v28, %v2109_v10  ;;  %v799_v47 = vshrl.u32 %v4243_v42, 16  ;;  %v4804_v58 = vld [vmem:[%s4917_s17 + $0x60] ss:$8 sps:$4 sm:$0xff]  }
  0x34   : > { %v777_v37 = vor.u32 %v776_v29, %v773_v21  ;;  %v796_v41 = vrot.slane %v794_v31, 5  ;;  %v802_v50 = vshll.u32 %v4243_v42, 16  ;;  %v808_v51 = vshll.u32 %v4244_v45, 16  ;;  %v4807_v21 = vld [vmem:[%s4917_s17 + $0x68] ss:$8 sps:$4 sm:$0xff]  }
  0x35   : > { %v2124_v39 = vsel %vm4942_vm2, %v2119_v32, %v2123_v16  ;;  %v791_v40 = vor.u32 %v790_v34, %v787_v33  ;;  %v813_v52 = vshrl.u32 %v4245_v46, 16  ;;  %v801_v54 = vrot.slane %v799_v47, 4  ;;  %v261_v25 = vld [vmem:[%s4917_s17 + $0x20] sm:$0xf]  ;;  %v262_v28 = vld [vmem:[%s4917_s17 + $0x24] sm:$0x1] }
  0x36   : > { %v4440_v43 = vcombine.low %v2110_v36, %v2124_v39  ;;  %v778_v44 = vrot.slane %v777_v37, 4  ;;  %v816_v55 = vshll.u32 %v4245_v46, 16  ;;  %v822_v56 = vshll.u32 %v4246_v49, 16  ;;  %v263_v29 = vld [vmem:[%s4917_s17 + $0x28] sm:$0xf] }
  0x37   : > { %693 = vrot.lane.b32.xlu0 %v4802_v23, %s4879_s22  ;;  %737 = vrot.lane.b32.xlu1 %v4801_v19, %s4881_s24  ;;  %v792_v48 = vrot.slane %v791_v40, 4  ;;  %v804_v59 = vrot.slane %v802_v50, 5  ;;  %v815_v60 = vrot.slane %v813_v52, 4  ;;  %v810_v62 = vrot.slane %v808_v51, 5  ;;  %v264_v31 = vld [vmem:[%s4917_s17 + $0x2c] sm:$0x1] }
  0x38   : > { %v783_v53 = vsel %vm4942_vm2, %v778_v44, %v782_v38  ;;  %v818_v63 = vrot.slane %v816_v55, 5  ;;  %v824_v0 = vrot.slane %v822_v56, 5  ;;  %v2314_v8 = vshrl.u32 %v4467_v1, 16  ;;  %v4471_v52 = vld [vmem:[%s4917_s17 + $0x18] sm:$0xf] }
  0x39   : > { %v797_v57 = vsel %vm4942_vm2, %v792_v48, %v796_v41  ;;  %v805_v3 = vor.u32 %v804_v59, %v801_v54  ;;  %v2317_v9 = vshll.u32 %v4467_v1, 16  ;;  %v2323_v10 = vshll.u32 %v4468_v4, 16  ;;  %v4808_v48 = vld [vmem:[%s4917_s17 + $0x60] ss:$8 sps:$4 sm:$0xff]   ;;  %v4472_v55 = vld [vmem:[%s4917_s17 + $0x1c] sm:$0x1] }
  0x3a   : > { %v4255_v61 = vcombine.low %v783_v53, %v797_v57  ;;  %v819_v7 = vor.u32 %v818_v63, %v815_v60  ;;  %v2328_v12 = vshrl.u32 %v4469_v5, 16  ;;  %v2331_v13 = vshll.u32 %v4469_v5, 16  ;;  %v4473_v56 = vld [vmem:[%s4917_s17 + $0x20] sm:$0xf]  ;;  %v4474_v57 = vld [vmem:[%s4917_s17 + $0x24] sm:$0x1] }
  0x3b   : > { %2195 = vrot.lane.b32.xlu0 %v4440_v43, %s4878_s21  ;;  %2237 = vrot.lane.b32.xlu1 %v4803_v35, %s4875_s18  ;;  %v806_v11 = vrot.slane %v805_v3, 4  ;;  %v2337_v14 = vshll.u32 %v4470_v6, 16  ;;  %v2316_v17 = vrot.slane %v2314_v8, 4  ;;  %v2319_v18 = vrot.slane %v2317_v9, 5  ;;  %v4809_v3 = vld [vmem:[%s4917_s17 + $0x78] ss:$8 sps:$4 sm:$0xff]  }
  0x3c   : > { %v820_v16 = vrot.slane %v819_v7, 4  ;;  %v2325_v19 = vrot.slane %v2323_v10, 5  ;;  %v2330_v22 = vrot.slane %v2328_v12, 4  ;;  %v2333_v23 = vrot.slane %v2331_v13, 5 }
  0x3d   : > { %v811_v20 = vsel %vm4942_vm2, %v806_v11, %v810_v62  ;;  %v2339_v24 = vrot.slane %v2337_v14, 5  ;;  %v2320_v27 = vor.u32 %v2319_v18, %v2316_v17  ;;  %v329_v34 = vshrl.u32 %v261_v25, 16  ;;  %v265_v11 = vld [vmem:[%s4917_s17 + $0x30] sm:$0xf]  ;;  %v266_v14 = vld [vmem:[%s4917_s17 + $0x34] sm:$0x1] }
  0x3e   : > { %v825_v26 = vsel %vm4942_vm2, %v820_v16, %v824_v0  ;;  %v2334_v33 = vor.u32 %v2333_v23, %v2330_v22  ;;  %v332_v35 = vshll.u32 %v261_v25, 16  ;;  %v338_v37 = vshll.u32 %v262_v28, 16  ;;  %v268_v16 = vld [vmem:[%s4917_s17 + $0x3c] sm:$0x1]  ;;  %v4810_v25 = vld [vmem:[%s4917_s17 + $0x98] ss:$8 sps:$4 sm:$0xff]  }
  0x3f   : > { %739 = vrot.lane.b32.xlu0 %v4804_v58, %s4881_s24  ;;  %894 = vrot.lane.b32.xlu1 %v4255_v61, %s4882_s25  ;;  %v4256_v32 = vcombine.low %v811_v20, %v825_v26  ;;  %v2321_v36 = vrot.slane %v2320_v27, 4  ;;  %v343_v38 = vshrl.u32 %v263_v29, 16  ;;  %v346_v39 = vshll.u32 %v263_v29, 16 }
  0x40   : > { %v2335_v40 = vrot.slane %v2334_v33, 4  ;;  %v331_v41 = vrot.slane %v329_v34, 4  ;;  %v334_v42 = vrot.slane %v332_v35, 5  ;;  %v352_v43 = vshll.u32 %v264_v31, 16 }
  0x41   : > { %v2326_v44 = vsel %vm4942_vm2, %v2321_v36, %v2325_v19  ;;  %v345_v45 = vrot.slane %v343_v38, 4  ;;  %v348_v46 = vrot.slane %v346_v39, 5  ;;  %v340_v50 = vrot.slane %v338_v37, 5  ;;  %v4811_v39 = vld [vmem:[%s4917_s17 + $0xb0] ss:$8 sps:$4 sm:$0xff]  }
  0x42   : > { %v2340_v47 = vsel %vm4942_vm2, %v2335_v40, %v2339_v24  ;;  %v335_v49 = vor.u32 %v334_v42, %v331_v41  ;;  %v354_v51 = vrot.slane %v352_v43, 5  ;;  %v2342_v59 = vshrl.u32 %v4471_v52, 16  ;;  %v4511_v42 = vld [vmem:[%s4917_s17 + $0x98] sm:$0xf]  ;;  %v4512_v43 = vld [vmem:[%s4917_s17 + $0x9c] sm:$0x1] }
  0x43   : > { %2239 = vrot.lane.b32.xlu0 %v4806_v2, %s4875_s18  ;;  %2281 = vrot.lane.b32.xlu1 %v4805_v15, %s4877_s20  ;;  %v4483_v53 = vcombine.low %v2326_v44, %v2340_v47  ;;  %v349_v54 = vor.u32 %v348_v46, %v345_v45  ;;  %v2345_v60 = vshll.u32 %v4471_v52, 16  ;;  %v2351_v61 = vshll.u32 %v4472_v55, 16  ;;  %v267_v15 = vld [vmem:[%s4917_s17 + $0x38] sm:$0xf]  ;;  %v4812_v45 = vld [vmem:[%s4917_s17 + $0xe0] ss:$8 sps:$4 sm:$0xff]  }
  0x44   : > { %v336_v58 = vrot.slane %v335_v49, 4  ;;  %v2356_v63 = vshrl.u32 %v4473_v56, 16  ;;  %v2359_v0 = vshll.u32 %v4473_v56, 16  ;;  %v2365_v1 = vshll.u32 %v4474_v57, 16  ;;  %v4513_v46 = vld [vmem:[%s4917_s17 + $0xa0] sm:$0xf] }
  0x45   : > { %v350_v62 = vrot.slane %v349_v54, 4  ;;  %v2344_v4 = vrot.slane %v2342_v59, 4  ;;  %v2347_v5 = vrot.slane %v2345_v60, 5  ;;  %v2353_v6 = vrot.slane %v2351_v61, 5  ;;  %v4514_v47 = vld [vmem:[%s4917_s17 + $0xa4] sm:$0x1] }
  0x46   : > { %v341_v2 = vsel %vm4942_vm2, %v336_v58, %v340_v50  ;;  %v2358_v8 = vrot.slane %v2356_v63, 4  ;;  %v2361_v9 = vrot.slane %v2359_v0, 5  ;;  %v2367_v10 = vrot.slane %v2365_v1, 5  ;;  %v4839_v58 = vld [vmem:[%s6054_s1] sm:$0xff]   ;;  %v4813_v59 = vld [vmem:[%s4917_s17 + $0xa8] ss:$8 sps:$4 sm:$0xff]  }
  0x47   : > { %240 = vrot.lane.b32.xlu0 %v4807_v21, %s4876_s19  ;;  %896 = vrot.lane.b32.xlu1 %v4256_v32, %s4882_s25  ;;  %v355_v7 = vsel %vm4942_vm2, %v350_v62, %v354_v51  ;;  %v2348_v13 = vor.u32 %v2347_v5, %v2344_v4  ;;  %v357_v18 = vshrl.u32 %v265_v11, 16  ;;  %v360_v19 = vshll.u32 %v265_v11, 16  ;;  %v4814_v62 = vld [vmem:[%s4917_s17 + $0xf8] ss:$8 sps:$4 sm:$0xff]  }
  0x48   : > { %v4169_v12 = vcombine.low %v341_v2, %v355_v7  ;;  %v2362_v17 = vor.u32 %v2361_v9, %v2358_v8  ;;  %v366_v20 = vshll.u32 %v266_v14, 16  ;;  %v371_v22 = vshrl.u32 %v267_v15, 16  ;;  %v4203_v2 = vld [vmem:[%s4917_s17 + $0xb0] sm:$0xf]  ;;  %4728 = vmatprep.subr.bf16.mxu0 %v4839_v58  ;;  %v4205_v5 = vld [vmem:[%s4917_s17 + $0xb8] sm:$0xf]  ;;  %4766 = vmatprep.subr.bf16.mxu1 %v4839_v58 }
  0x49   : > { %v2349_v21 = vrot.slane %v2348_v13, 4  ;;  %v374_v23 = vshll.u32 %v267_v15, 16  ;;  %v380_v24 = vshll.u32 %v268_v16, 16  ;;  %v359_v27 = vrot.slane %v357_v18, 4  ;;  %4729 = vmatpush3.bf16.msra.mxu0 %v4839_v58  ;;  %4769 = vmatpush3.bf16.msra.mxu1 %v4839_v58  ;;  %v4210_v58 = vld [vmem:[%s4917_s17 + $0xcc] sm:$0x1] }
  0x4a   : > { %v2363_v26 = vrot.slane %v2362_v17, 4  ;;  %v362_v28 = vrot.slane %v360_v19, 5  ;;  %v373_v31 = vrot.slane %v371_v22, 4  ;;  %v368_v35 = vrot.slane %v366_v20, 5  ;;  %v4815_v17 = vld [vmem:[%s4917_s17 + $0xc0] ss:$8 sps:$4 sm:$0xff]  }
  0x4b   : > { %2283 = vrot.lane.b32.xlu0 %v4808_v48, %s4877_s20  ;;  %2437 = vrot.lane.b32.xlu1 %v4483_v53, %s4880_s23  ;;  %v2354_v29 = vsel %vm4942_vm2, %v2349_v21, %v2353_v6  ;;  %v376_v32 = vrot.slane %v374_v23, 5  ;;  %v382_v38 = vrot.slane %v380_v24, 5  ;;  %v2560_v48 = vshrl.u32 %v4511_v42, 16  ;;  %v4206_v6 = vld [vmem:[%s4917_s17 + $0xbc] sm:$0x1]  ;;  %v4842_v21 = vld [vmem:[%s6054_s1 + $0x8] sm:$0xff]  }
  0x4c   : > { %v2368_v33 = vsel %vm4942_vm2, %v2363_v26, %v2367_v10  ;;  %v363_v34 = vor.u32 %v362_v28, %v359_v27  ;;  %v2563_v49 = vshll.u32 %v4511_v42, 16  ;;  %v2569_v51 = vshll.u32 %v4512_v43, 16  ;;  %v4515_v26 = vld [vmem:[%s4917_s17 + $0xa8] sm:$0xf]  ;;  %v4516_v27 = vld [vmem:[%s4917_s17 + $0xac] sm:$0x1]  ;;  %4730 = vmatprep.subr.bf16.mxu0 %v4842_v21  ;;  %4767 = vmatprep.subr.bf16.mxu1 %v4842_v21 }
  0x4d   : > { %v4484_v36 = vcombine.low %v2354_v29, %v2368_v33  ;;  %v377_v37 = vor.u32 %v376_v32, %v373_v31  ;;  %v2574_v52 = vshrl.u32 %v4513_v46, 16  ;;  %v2577_v53 = vshll.u32 %v4513_v46, 16  ;;  %v4816_v29 = vld [vmem:[%s4917_s17 + $0xf0] ss:$8 sps:$4 sm:$0xff]   ;;  %v4518_v33 = vld [vmem:[%s4917_s17 + $0xb4] sm:$0x1]  ;;  %4731 = vmatpush3.bf16.msra.mxu0 %v4842_v21  ;;  %4770 = vmatpush3.bf16.msra.mxu1 %v4842_v21 }
  0x4e   : > { %v364_v40 = vrot.slane %v363_v34, 4  ;;  %v2562_v55 = vrot.slane %v2560_v48, 4  ;;  %v2565_v56 = vrot.slane %v2563_v49, 5  ;;  %v2583_v57 = vshll.u32 %v4514_v47, 16  ;;  %v4517_v32 = vld [vmem:[%s4917_s17 + $0xb0] sm:$0xf] }
  0x4f   : > { %242 = vrot.lane.b32.xlu0 %v4809_v3, %s4876_s19  ;;  %400 = vrot.lane.b32.xlu1 %v4169_v12, %s4878_s21  ;;  %v378_v41 = vrot.slane %v377_v37, 4  ;;  %v2576_v60 = vrot.slane %v2574_v52, 4  ;;  %v2579_v61 = vrot.slane %v2577_v53, 5  ;;  %v2571_v0 = vrot.slane %v2569_v51, 5  ;;  %v4204_v3 = vld [vmem:[%s4917_s17 + $0xb4] sm:$0x1] }
  0x50   : > { %v369_v44 = vsel %vm4942_vm2, %v364_v40, %v368_v35  ;;  %v2566_v63 = vor.u32 %v2565_v56, %v2562_v55  ;;  %v2585_v1 = vrot.slane %v2583_v57, 5  ;;  %v578_v7 = vshrl.u32 %v4203_v2, 16  ;;  %v4817_v48 = vld [vmem:[%s4917_s17 + $0x108] ss:$8 sps:$4 sm:$0xff]   ;;  %v4208_v55 = vld [vmem:[%s4917_s17 + $0xc4] sm:$0x1] }
  0x51   : > { %v383_v50 = vsel %vm4942_vm2, %v378_v41, %v382_v38  ;;  %v2580_v4 = vor.u32 %v2579_v61, %v2576_v60  ;;  %v581_v8 = vshll.u32 %v4203_v2, 16  ;;  %v587_v10 = vshll.u32 %v4204_v3, 16  ;;  %v4209_v57 = vld [vmem:[%s4917_s17 + $0xc8] sm:$0xf]  ;;  %v4818_v2 = vld [vmem:[%s4917_s17 + $0xf8] ss:$8 sps:$4 sm:$0xff]  }
  0x52   : > { %v4170_v54 = vcombine.low %v369_v44, %v383_v50  ;;  %v2567_v9 = vrot.slane %v2566_v63, 4  ;;  %v592_v11 = vshrl.u32 %v4205_v5, 16  ;;  %v595_v12 = vshll.u32 %v4205_v5, 16 }
  0x53   : > { %2482 = vrot.lane.b32.xlu1 %v4810_v25, %s4879_s22  ;;  %2439 = vrot.lane.b32.xlu0 %v4484_v36, %s4880_s23  ;;  %v2581_v13 = vrot.slane %v2580_v4, 4  ;;  %v580_v14 = vrot.slane %v578_v7, 4  ;;  %v583_v15 = vrot.slane %v581_v8, 5  ;;  %v601_v16 = vshll.u32 %v4206_v6, 16  ;;  %v4432_v6 = vld [vmem:[%s4917_s17 + $0xb4] sm:$0x1] }
  0x54   : > { %v2572_v18 = vsel %vm4942_vm2, %v2567_v9, %v2571_v0  ;;  %v594_v19 = vrot.slane %v592_v11, 4  ;;  %v597_v20 = vrot.slane %v595_v12, 5  ;;  %v589_v24 = vrot.slane %v587_v10, 5  ;;  %v4431_v0 = vld [vmem:[%s4917_s17 + $0xb0] sm:$0xf] }
  0x55   : > { %v2586_v22 = vsel %vm4942_vm2, %v2581_v13, %v2585_v1  ;;  %v584_v23 = vor.u32 %v583_v15, %v580_v14  ;;  %v603_v25 = vrot.slane %v601_v16, 5  ;;  %v2588_v34 = vshrl.u32 %v4515_v26, 16  ;;  %v4433_v11 = vld [vmem:[%s4917_s17 + $0xb8] sm:$0xf]  ;;  %v4819_v13 = vld [vmem:[%s4917_s17 + $0x28] ss:$8 sps:$4 sm:$0xff]  }
  0x56   : > { %v4527_v28 = vcombine.low %v2572_v18, %v2586_v22  ;;  %v598_v31 = vor.u32 %v597_v20, %v594_v19  ;;  %v2591_v35 = vshll.u32 %v4515_v26, 16  ;;  %v2597_v37 = vshll.u32 %v4516_v27, 16  ;;  %v4434_v16 = vld [vmem:[%s4917_s17 + $0xbc] sm:$0x1] }
  0x57   : > { %446 = vrot.lane.b32.xlu1 %v4811_v39, %s4875_s18  ;;  %402 = vrot.lane.b32.xlu0 %v4170_v54, %s4878_s21  ;;  %v585_v36 = vrot.slane %v584_v23, 4  ;;  %v2602_v38 = vshrl.u32 %v4517_v32, 16  ;;  %v2605_v39 = vshll.u32 %v4517_v32, 16  ;;  %v2590_v41 = vrot.slane %v2588_v34, 4  ;;  %v4207_v54 = vld [vmem:[%s4917_s17 + $0xc0] sm:$0xf] }
  0x58   : > { %v599_v40 = vrot.slane %v598_v31, 4  ;;  %v2593_v42 = vrot.slane %v2591_v35, 5  ;;  %v2611_v43 = vshll.u32 %v4518_v33, 16  ;;  %v2599_v50 = vrot.slane %v2597_v37, 5 }
  0x59   : > { %v590_v44 = vsel %vm4942_vm2, %v585_v36, %v589_v24  ;;  %v2607_v46 = vrot.slane %v2605_v39, 5  ;;  %v609_v61 = vshll.u32 %v4207_v54, 16  ;;  %v620_v63 = vshrl.u32 %v4209_v57, 16 }
  0x5a   : > { %v604_v47 = vsel %vm4942_vm2, %v599_v40, %v603_v25  ;;  %v2594_v49 = vor.u32 %v2593_v42, %v2590_v41  ;;  %v2613_v53 = vrot.slane %v2611_v43, 5  ;;  %v623_v4 = vshll.u32 %v4209_v57, 16  ;;  %v4820_v40 = vld [vmem:[%s4917_s17 + $0x108] ss:$8 sps:$4 sm:$0xff]   ;;  %v4435_v42 = vld [vmem:[%s4917_s17 + $0xc0] sm:$0xf] }
  0x5b   : > { %2527 = vrot.lane.b32.xlu1 %v4812_v45, %s4881_s24  ;;  %2484 = vrot.lane.b32.xlu0 %v4813_v59, %s4879_s22  ;;  %v2604_v45 = vrot.slane %v2602_v38, 4  ;;  %v4213_v51 = vcombine.low %v590_v44, %v604_v47  ;;  %v606_v59 = vshrl.u32 %v4207_v54, 16  ;;  %v629_v5 = vshll.u32 %v4210_v58, 16  ;;  %v4436_v43 = vld [vmem:[%s4917_s17 + $0xc4] sm:$0x1] }
  0x5c   : > { %v2595_v56 = vrot.slane %v2594_v49, 4  ;;  %v611_v8 = vrot.slane %v609_v61, 5  ;;  %v622_v10 = vrot.slane %v620_v63, 4  ;;  %v625_v14 = vrot.slane %v623_v4, 5  ;;  %v4250_v4 = vld [vmem:[%s4917_s17 + $0x34] sm:$0x1] }
  0x5d   : > { %v2608_v52 = vor.u32 %v2607_v46, %v2604_v45  ;;  %v608_v3 = vrot.slane %v606_v59, 4  ;;  %v631_v15 = vrot.slane %v629_v5, 5  ;;  %v2129_v19 = vshll.u32 %v4431_v0, 16  ;;  %v4437_v45 = vld [vmem:[%s4917_s17 + $0xc8] sm:$0xf] }
  0x5e   : > { %v2600_v1 = vsel %vm4942_vm2, %v2595_v56, %v2599_v50  ;;  %v2135_v20 = vshll.u32 %v4432_v6, 16  ;;  %v2140_v21 = vshrl.u32 %v4433_v11, 16  ;;  %v626_v22 = vor.u32 %v625_v14, %v622_v10  ;;  %v4438_v46 = vld [vmem:[%s4917_s17 + $0xcc] sm:$0x1]  ;;  %v4822_v56 = vld [vmem:[%s4917_s17 + $0x38] ss:$8 sps:$4 sm:$0xff]  }
  0x5f   : > { %492 = vrot.lane.b32.xlu1 %v4814_v62, %s4877_s20  ;;  %448 = vrot.lane.b32.xlu0 %v4815_v17, %s4875_s18  ;;  %v2609_v60 = vrot.slane %v2608_v52, 4  ;;  %v615_v62 = vshll.u32 %v4208_v55, 16  ;;  %v2126_v17 = vshrl.u32 %v4431_v0, 16  ;;  %v612_v18 = vor.u32 %v611_v8, %v608_v3  ;;  %v4821_v55 = vld [vmem:[%s4917_s17 + $0x70] ss:$8 sps:$4 sm:$0xff]  }
  0x60   : > { %v2143_v24 = vshll.u32 %v4433_v11, 16  ;;  %v2149_v25 = vshll.u32 %v4434_v16, 16  ;;  %v2131_v27 = vrot.slane %v2129_v19, 5  ;;  %v2137_v34 = vrot.slane %v2135_v20, 5  ;;  %v4249_v0 = vld [vmem:[%s4917_s17 + $0x30] sm:$0xf] }
  0x61   : > { %v2614_v7 = vsel %vm4942_vm2, %v2609_v60, %v2613_v53  ;;  %v617_v9 = vrot.slane %v615_v62, 5  ;;  %v2128_v23 = vrot.slane %v2126_v17, 4  ;;  %v613_v26 = vrot.slane %v612_v18, 4  ;;  %v4247_v53 = vld [vmem:[%s4917_s17 + $0x28] sm:$0xf] }
  0x62   : > { %v4528_v12 = vcombine.low %v2600_v1, %v2614_v7  ;;  %v2145_v31 = vrot.slane %v2143_v24, 5  ;;  %v2151_v37 = vrot.slane %v2149_v25, 5  ;;  %v2154_v47 = vshrl.u32 %v4435_v42, 16  ;;  %v4248_v60 = vld [vmem:[%s4917_s17 + $0x2c] sm:$0x1] }
  0x63   : > { %2683 = vrot.lane.b32.xlu1 %v4527_v28, %s4882_s25  ;;  %2529 = vrot.lane.b32.xlu0 %v4816_v29, %s4881_s24  ;;  %v2142_v28 = vrot.slane %v2140_v21, 4  ;;  %v627_v29 = vrot.slane %v626_v22, 4  ;;  %v618_v32 = vsel %vm4942_vm2, %v613_v26, %v617_v9  ;;  %v2132_v33 = vor.u32 %v2131_v27, %v2128_v23  ;;  %v4823_v14 = vld [vmem:[%s4917_s17 + $0x28] ss:$8 sps:$4 sm:$0xff]   ;;  %v948_v27 = vld [vmem:[%s4917_s17] sm:$0xf] }
  0x64   : > { %v2163_v50 = vshll.u32 %v4436_v43, 16  ;;  %v2171_v52 = vshll.u32 %v4437_v45, 16  ;;  %v2156_v57 = vrot.slane %v2154_v47, 4  ;;  %v2177_v59 = vshll.u32 %v4438_v46, 16  ;;  %v4824_v26 = vld [vmem:[%s4917_s17 + $0x80] ss:$8 sps:$4 sm:$0xff]  }
  0x65   : > { %v632_v35 = vsel %vm4942_vm2, %v627_v29, %v631_v15  ;;  %v2146_v36 = vor.u32 %v2145_v31, %v2142_v28  ;;  %v2133_v39 = vrot.slane %v2132_v33, 4  ;;  %v827_v1 = vshrl.u32 %v4247_v53, 16  ;;  %v949_v29 = vld [vmem:[%s4917_s17 + $0x4] sm:$0x1]  ;;  %v950_v31 = vld [vmem:[%s4917_s17 + $0x8] sm:$0xf] }
  0x66   : > { %v4214_v38 = vcombine.low %v618_v32, %v632_v35  ;;  %v2165_v61 = vrot.slane %v2163_v50, 5  ;;  %v2173_v63 = vrot.slane %v2171_v52, 5  ;;  %v2179_v3 = vrot.slane %v2177_v59, 5 }
  0x67   : > { %649 = vrot.lane.b32.xlu1 %v4213_v51, %s4880_s23  ;;  %494 = vrot.lane.b32.xlu0 %v4817_v48, %s4877_s20  ;;  %v2147_v41 = vrot.slane %v2146_v36, 4  ;;  %v2138_v44 = vsel %vm4942_vm2, %v2133_v39, %v2137_v34  ;;  %v2157_v48 = vshll.u32 %v4435_v42, 16  ;;  %v2168_v51 = vshrl.u32 %v4437_v45, 16  ;;  %v951_v34 = vld [vmem:[%s4917_s17 + $0xc] sm:$0x1] }
  0x68   : > { %v830_v5 = vshll.u32 %v4247_v53, 16  ;;  %v836_v6 = vshll.u32 %v4248_v60, 16  ;;  %v829_v8 = vrot.slane %v827_v1, 4  ;;  %v841_v9 = vshrl.u32 %v4249_v0, 16  ;;  %v4251_v42 = vld [vmem:[%s4917_s17 + $0x38] sm:$0xf] }
  0x69   : > { %v2152_v49 = vsel %vm4942_vm2, %v2147_v41, %v2151_v37  ;;  %v2159_v58 = vrot.slane %v2157_v48, 5  ;;  %v2170_v62 = vrot.slane %v2168_v51, 4  ;;  %v844_v10 = vshll.u32 %v4249_v0, 16  ;;  %v4826_v45 = vld [vmem:[%s4917_s17 + $0x38] ss:$8 sps:$4 sm:$0xff]  }
  0x6a   : > { %v4441_v54 = vcombine.low %v2138_v44, %v2152_v49  ;;  %v843_v16 = vrot.slane %v841_v9, 4  ;;  %v838_v20 = vrot.slane %v836_v6, 5  ;;  %v965_v32 = vshrl.u32 %v948_v27, 16  ;;  %v4825_v44 = vld [vmem:[%s4917_s17 + $0x70] ss:$8 sps:$4 sm:$0xff]  }
  0x6b   : > { %2685 = vrot.lane.b32.xlu1 %v4528_v12, %s4882_s25  ;;  %2041 = vrot.lane.b32.xlu0 %v4818_v2, %s4876_s19  ;;  %v2160_v2 = vor.u32 %v2159_v58, %v2156_v57  ;;  %v2174_v7 = vor.u32 %v2173_v63, %v2170_v62  ;;  %v832_v12 = vrot.slane %v830_v5, 5  ;;  %v846_v17 = vrot.slane %v844_v10, 5  ;;  %v4252_v49 = vld [vmem:[%s4917_s17 + $0x3c] sm:$0x1]  ;;  %v4253_v53 = vld [vmem:[%s4917_s17 + $0x40] sm:$0xf] }
  0x6c   : > { %v968_v35 = vshll.u32 %v948_v27, 16  ;;  %v974_v36 = vshll.u32 %v949_v29, 16  ;;  %v979_v37 = vshrl.u32 %v950_v31, 16  ;;  %v967_v39 = vrot.slane %v965_v32, 4  ;;  %v4475_v60 = vld [vmem:[%s4917_s17 + $0x28] sm:$0xf] }
  0x6d   : > { %v2161_v11 = vrot.slane %v2160_v2, 4  ;;  %v2175_v15 = vrot.slane %v2174_v7, 4  ;;  %v833_v19 = vor.u32 %v832_v12, %v829_v8  ;;  %v847_v22 = vor.u32 %v846_v17, %v843_v16  ;;  %v4476_v1 = vld [vmem:[%s4917_s17 + $0x2c] sm:$0x1]  ;;  %v4477_v6 = vld [vmem:[%s4917_s17 + $0x30] sm:$0xf] }
  0x6e   : > { %v988_v41 = vshll.u32 %v951_v34, 16  ;;  %v970_v46 = vrot.slane %v968_v35, 5  ;;  %v976_v47 = vrot.slane %v974_v36, 5  ;;  %v981_v48 = vrot.slane %v979_v37, 4  ;;  %v4828_v29 = vld [vmem:[%s4917_s17] ss:$8 sps:$4 sm:$0xff]  }
  0x6f   : > { %695 = vrot.lane.b32.xlu1 %v4819_v13, %s4879_s22  ;;  %651 = vrot.lane.b32.xlu0 %v4214_v38, %s4880_s23  ;;  %v850_v13 = vshll.u32 %v4250_v4, 16  ;;  %v2166_v18 = vsel %vm4942_vm2, %v2161_v11, %v2165_v61  ;;  %v2180_v21 = vsel %vm4942_vm2, %v2175_v15, %v2179_v3  ;;  %v834_v25 = vrot.slane %v833_v19, 4  ;;  %v4275_v35 = vld [vmem:[%s4917_s17 + $0x48] sm:$0xf]  ;;  %v4276_v36 = vld [vmem:[%s4917_s17 + $0x4c] sm:$0x1] }
  0x70   : > { %v4442_v24 = vcombine.low %v2166_v18, %v2180_v21  ;;  %v848_v28 = vrot.slane %v847_v22, 4  ;;  %v990_v52 = vrot.slane %v988_v41, 5  ;;  %v855_v57 = vshrl.u32 %v4251_v42, 16  ;;  %v4478_v18 = vld [vmem:[%s4917_s17 + $0x34] sm:$0x1]  ;;  %203 = vst.msk [vmem:[#allocation2] sm:$0xff] %vm202_vm3, %v4828_v29 }
  0x71   : > { %v852_v23 = vrot.slane %v850_v13, 5  ;;  %v839_v33 = vsel %vm4942_vm2, %v834_v25, %v838_v20  ;;  %v858_v58 = vshll.u32 %v4251_v42, 16  ;;  %v864_v59 = vshll.u32 %v4252_v49, 16  ;;  %v4480_v29 = vld [vmem:[%s4917_s17 + $0x3c] sm:$0x1] }
  0x72   : > { %v869_v62 = vshrl.u32 %v4253_v53, 16  ;;  %v872_v63 = vshll.u32 %v4253_v53, 16  ;;  %v857_v3 = vrot.slane %v855_v57, 4  ;;  %v2373_v15 = vshll.u32 %v4475_v60, 16 }
  0x73   : > { %2197 = vrot.lane.b32.xlu1 %v4441_v54, %s4878_s21  ;;  %2043 = vrot.lane.b32.xlu0 %v4820_v40, %s4876_s19  ;;  %v853_v38 = vsel %vm4942_vm2, %v848_v28, %v852_v23  ;;  %v982_v40 = vshll.u32 %v950_v31, 16  ;;  %v4254_v54 = vld [vmem:[%s4917_s17 + $0x44] sm:$0x1]  ;;  %v860_v4 = vrot.slane %v858_v58, 5  ;;  %v866_v5 = vrot.slane %v864_v59, 5 }
  0x74   : > { %v4257_v43 = vcombine.low %v839_v33, %v853_v38  ;;  %v878_v0 = vshll.u32 %v4254_v54, 16  ;;  %v871_v8 = vrot.slane %v869_v62, 4  ;;  %v874_v9 = vrot.slane %v872_v63, 5  ;;  %v953_v54 = vld [vmem:[%s4917_s17 + $0x14] sm:$0x1] }
  0x75   : > { %v984_v51 = vrot.slane %v982_v40, 5  ;;  %v861_v13 = vor.u32 %v860_v4, %v857_v3  ;;  %v2379_v19 = vshll.u32 %v4476_v1, 16  ;;  %v2384_v20 = vshrl.u32 %v4477_v6, 16  ;;  %v4278_v40 = vld [vmem:[%s4917_s17 + $0x54] sm:$0x1] }
  0x76   : > { %v880_v10 = vrot.slane %v878_v0, 5  ;;  %v875_v17 = vor.u32 %v874_v9, %v871_v8  ;;  %v2375_v25 = vrot.slane %v2373_v15, 5  ;;  %v2387_v28 = vshll.u32 %v4477_v6, 16  ;;  %v955_v0 = vld [vmem:[%s4917_s17 + $0x1c] sm:$0x1] }
  0x77   : > { %741 = vrot.lane.b32.xlu1 %v4821_v55, %s4881_s24  ;;  %697 = vrot.lane.b32.xlu0 %v4822_v56, %s4879_s22  ;;  %v971_v56 = vor.u32 %v970_v46, %v967_v39  ;;  %v985_v61 = vor.u32 %v984_v51, %v981_v48  ;;  %v862_v23 = vrot.slane %v861_v13, 4  ;;  %v2386_v27 = vrot.slane %v2384_v20, 4  ;;  %v4277_v39 = vld [vmem:[%s4917_s17 + $0x50] sm:$0xf]  ;;  %v4827_v46 = vld [vmem:[%s4917_s17 + $0x80] ss:$8 sps:$4 sm:$0xff]  }
  0x78   : > { %v2381_v33 = vrot.slane %v2379_v19, 5  ;;  %v2393_v34 = vshll.u32 %v4478_v18, 16  ;;  %v2389_v38 = vrot.slane %v2387_v28, 5  ;;  %v1121_v41 = vshrl.u32 %v4275_v35, 16  ;;  %v952_v48 = vld [vmem:[%s4917_s17 + $0x10] sm:$0xf] }
  0x79   : > { %v972_v2 = vrot.slane %v971_v56, 4  ;;  %v986_v7 = vrot.slane %v985_v61, 4  ;;  %v867_v31 = vsel %vm4942_vm2, %v862_v23, %v866_v5  ;;  %v1135_v53 = vshrl.u32 %v4277_v39, 16  ;;  %v954_v61 = vld [vmem:[%s4917_s17 + $0x18] sm:$0xf] }
  0x7a   : > { %v2390_v49 = vor.u32 %v2389_v38, %v2386_v27  ;;  %v1123_v51 = vrot.slane %v1121_v41, 4  ;;  %v1138_v59 = vshll.u32 %v4277_v39, 16  ;;  %v993_v1 = vshrl.u32 %v952_v48, 16 }
  0x7b   : > { %2241 = vrot.lane.b32.xlu1 %v4823_v14, %s4875_s18  ;;  %2199 = vrot.lane.b32.xlu0 %v4442_v24, %s4878_s21  ;;  %v977_v12 = vsel %vm4942_vm2, %v972_v2, %v976_v47  ;;  %v2370_v14 = vshrl.u32 %v4475_v60, 16  ;;  %v991_v16 = vsel %vm4942_vm2, %v986_v7, %v990_v52  ;;  %v1124_v47 = vshll.u32 %v4275_v35, 16  ;;  %v4482_v35 = vld [vmem:[%s4917_s17 + $0x44] sm:$0x1] }
  0x7c   : > { %v4271_v22 = vcombine.low %v977_v12, %v991_v16  ;;  %v1130_v52 = vshll.u32 %v4276_v36, 16  ;;  %v1144_v60 = vshll.u32 %v4278_v40, 16  ;;  %v2391_v62 = vrot.slane %v2390_v49, 4  ;;  %v4829_v16 = vld [vmem:[%s4917_s17 + $0x10] ss:$8 sps:$4 sm:$0xff]  }
  0x7d   : > { %v2372_v24 = vrot.slane %v2370_v14, 4  ;;  %v1126_v58 = vrot.slane %v1124_v47, 5  ;;  %v1137_v63 = vrot.slane %v1135_v53, 4  ;;  %v1140_v3 = vrot.slane %v1138_v59, 5  ;;  %204 = vst.msk [vmem:[#allocation2 + $0x8] sm:$0xff] %vm202_vm3, %v4829_v16 }
  0x7e   : > { %v1146_v4 = vrot.slane %v1144_v60, 5  ;;  %v996_v5 = vshll.u32 %v952_v48, 16  ;;  %v995_v7 = vrot.slane %v993_v1, 4  ;;  %v1002_v8 = vshll.u32 %v953_v54, 16  ;;  %v4830_v40 = vld [vmem:[%s4917_s17 + $0xb8] ss:$8 sps:$4 sm:$0xff]  }
  0x7f   : > { %898 = vrot.lane.b32.xlu1 %v4257_v43, %s4882_s25  ;;  %743 = vrot.lane.b32.xlu0 %v4824_v26, %s4881_s24  ;;  %v876_v26 = vrot.slane %v875_v17, 4  ;;  %v2376_v32 = vor.u32 %v2375_v25, %v2372_v24  ;;  %v1127_v2 = vor.u32 %v1126_v58, %v1123_v51  ;;  %v1007_v9 = vshrl.u32 %v954_v61, 16  ;;  %v4279_v58 = vld [vmem:[%s4917_s17 + $0x58] sm:$0xf]  ;;  %v4280_v59 = vld [vmem:[%s4917_s17 + $0x5c] sm:$0x1] }
  0x80   : > { %v1141_v14 = vor.u32 %v1140_v3, %v1137_v63  ;;  %v998_v15 = vrot.slane %v996_v5, 5  ;;  %v1010_v18 = vshll.u32 %v954_v61, 16  ;;  %v1016_v19 = vshll.u32 %v955_v0, 16  ;;  %v4281_v63 = vld [vmem:[%s4917_s17 + $0x60] sm:$0xf] }
  0x81   : > { %v881_v37 = vsel %vm4942_vm2, %v876_v26, %v880_v10  ;;  %v1128_v13 = vrot.slane %v1127_v2, 4  ;;  %v1009_v17 = vrot.slane %v1007_v9, 4  ;;  %v1004_v25 = vrot.slane %v1002_v8, 5  ;;  %v4479_v26 = vld [vmem:[%s4917_s17 + $0x38] sm:$0xf] }
  0x82   : > { %v4258_v43 = vcombine.low %v867_v31, %v881_v37  ;;  %v1142_v23 = vrot.slane %v1141_v14, 4  ;;  %v999_v24 = vor.u32 %v998_v15, %v995_v7  ;;  %v1012_v27 = vrot.slane %v1010_v18, 5  ;;  %v4481_v31 = vld [vmem:[%s4917_s17 + $0x40] sm:$0xf]  ;;  %v4282_v0 = vld [vmem:[%s4917_s17 + $0x64] sm:$0x1] }
  0x83   : > { %2285 = vrot.lane.b32.xlu1 %v4825_v44, %s4877_s20  ;;  %2243 = vrot.lane.b32.xlu0 %v4826_v45, %s4875_s18  ;;  %v2377_v44 = vrot.slane %v2376_v32, 4  ;;  %v2395_v45 = vrot.slane %v2393_v34, 5  ;;  %v1018_v28 = vrot.slane %v1016_v19, 5  ;;  %v2398_v36 = vshrl.u32 %v4479_v26, 16  ;;  %v4833_v15 = vld [vmem:[%s4917_s17 + $0x100] ss:$8 sps:$4 sm:$0xff]  }
  0x84   : > { %v5174_v50 = vpop.permute.xlu1 %444  ;;  %v1000_v34 = vrot.slane %v999_v24, 4  ;;  %v2401_v37 = vshll.u32 %v4479_v26, 16  ;;  %v1013_v39 = vor.u32 %v1012_v27, %v1009_v17  ;;  %v2407_v41 = vshll.u32 %v4480_v29, 16  ;;  %v4309_v24 = vld [vmem:[%s4917_s17 + $0x98] sm:$0xf] }
  0x85   : > { %v5178_v55 = vpop.permute.xlu0 %236  ;;  %v2382_v57 = vsel %vm4942_vm2, %v2377_v44, %v2381_v33  ;;  %v2396_v6 = vsel %vm4942_vm2, %v2391_v62, %v2395_v45  ;;  %v1147_v33 = vsel %vm4942_vm2, %v1142_v23, %v1146_v4  ;;  %v2415_v45 = vshll.u32 %v4481_v31, 16  ;;  %v4308_v23 = vld [vmem:[%s4917_s17 + $0x94] sm:$0x1] }
  0x86   : > { %249 = vst.msk [vmem:[#allocation2] sm:$0xff] %vm248_vm4, %v5178_v55  ;;  %v1132_v55 = vrot.slane %v1130_v52, 5  ;;  %v4485_v12 = vcombine.low %v2382_v57, %v2396_v6  ;;  %v2403_v44 = vrot.slane %v2401_v37, 5  ;;  %v1005_v47 = vsel %vm4942_vm2, %v1000_v34, %v1004_v25  ;;  %v4832_v57 = vld [vmem:[%s4917_s17 + $0xd8] ss:$8 sps:$4 sm:$0xff]  }
  0x87   : > { %1088 = vrot.lane.b32.xlu1 %v4271_v22, %s4876_s19  ;;  %900 = vrot.lane.b32.xlu0 %v4258_v43, %s4882_s25  ;;  %v2412_v43 = vshrl.u32 %v4481_v31, 16  ;;  %v1014_v48 = vrot.slane %v1013_v39, 4  ;;  %v2421_v51 = vshll.u32 %v4482_v35, 16  ;;  %v2409_v52 = vrot.slane %v2407_v41, 5  ;;  %v4310_v25 = vld [vmem:[%s4917_s17 + $0x9c] sm:$0x1] }
  0x88   : > { %v5185_v11 = vpop.permute.xlu1 %490  ;;  %v1133_v22 = vsel %vm4942_vm2, %v1128_v13, %v1132_v55  ;;  %v2417_v53 = vrot.slane %v2415_v45, 5  ;;  %v1149_v1 = vshrl.u32 %v4279_v58, 16  ;;  %v1152_v2 = vshll.u32 %v4279_v58, 16  ;;  %v4834_v45 = vld [vmem:[%s4917_s17 + $0xc8] ss:$8 sps:$4 sm:$0xff]  }
  0x89   : > { %v5194_v21 = vpop.permute.xlu0 %238  ;;  %v4291_v38 = vcombine.low %v1133_v22, %v1147_v33  ;;  %v2414_v49 = vrot.slane %v2412_v43, 4  ;;  %v1019_v54 = vsel %vm4942_vm2, %v1014_v48, %v1018_v28  ;;  %v1158_v3 = vshll.u32 %v4280_v59, 16  ;;  %v4307_v22 = vld [vmem:[%s4917_s17 + $0x90] sm:$0xf]  ;;  %v4519_v43 = vld [vmem:[%s4917_s17 + $0xb8] sm:$0xf] }
  0x8a   : > { %250 = vst.msk [vmem:[#allocation2 + $0x8] sm:$0xff] %vm248_vm4, %v5194_v21  ;;  %v2400_v21 = vrot.slane %v2398_v36, 4  ;;  %v4272_v61 = vcombine.low %v1005_v47, %v1019_v54  ;;  %v1163_v4 = vshrl.u32 %v4281_v63, 16  ;;  %v1166_v5 = vshll.u32 %v4281_v63, 16 }
  0x8b   : > { %2287 = vrot.lane.b32.xlu0 %v4827_v46, %s4877_s20  ;;  %2441 = vrot.lane.b32.xlu1 %v4485_v12, %s4880_s23  ;;  %v4831_v46 = vld [vmem:[%s4917_s17 + $0x90] ss:$8 sps:$4 sm:$0xff]   ;;  %v2418_v55 = vor.u32 %v2417_v53, %v2414_v49  ;;  %v1151_v7 = vrot.slane %v1149_v1, 4  ;;  %v1172_v8 = vshll.u32 %v4282_v0, 16  ;;  %v1154_v9 = vrot.slane %v1152_v2, 5 }
  0x8c   : > { %v5207_v42 = vpop.permute.xlu1 %2037  ;;  %2005 = vst.msk [vmem:[#allocation2 + $0x40] sm:$0xff] %vm202_vm3, %v4831_v46  ;;  %v1165_v12 = vrot.slane %v1163_v4, 4  ;;  %v1168_v13 = vrot.slane %v1166_v5, 5  ;;  %v1321_v26 = vshrl.u32 %v4307_v22, 16  ;;  %v1324_v27 = vshll.u32 %v4307_v22, 16 }
  0x8d   : > { %v443_v56 = vpop.permute.xlu0 %442  ;;  %2049 = vst.msk [vmem:[#allocation2 + $0x40] sm:$0xff] %vm248_vm4, %v5207_v42  ;;  %v2419_v6 = vrot.slane %v2418_v55, 4  ;;  %v1155_v18 = vor.u32 %v1154_v9, %v1151_v7  ;;  %v1330_v31 = vshll.u32 %v4308_v23, 16  ;;  %v1338_v35 = vshll.u32 %v4309_v24, 16  ;;  %v4520_v49 = vld [vmem:[%s4917_s17 + $0xbc] sm:$0x1] }
  0x8e   : > { %v1169_v19 = vor.u32 %v1168_v13, %v1165_v12  ;;  %v1323_v33 = vrot.slane %v1321_v26, 4  ;;  %v1326_v34 = vrot.slane %v1324_v27, 5  ;;  %v1344_v36 = vshll.u32 %v4310_v25, 16  ;;  %v4327_v9 = vld [vmem:[%s4917_s17 + $0xd8] sm:$0xf] }
  0x8f   : > { %1244 = vrot.lane.b32.xlu1 %v4291_v38, %s4878_s21  ;;  %1090 = vrot.lane.b32.xlu0 %v4272_v61, %s4876_s19  ;;  %v1156_v28 = vrot.slane %v1155_v18, 4  ;;  %v1340_v47 = vrot.slane %v1338_v35, 5  ;;  %v2619_v53 = vshll.u32 %v4519_v43, 16  ;;  %v4329_v12 = vld [vmem:[%s4917_s17 + $0xe0] sm:$0xf]  ;;  %v1480_v18 = vshll.u32 %v4327_v9, 16 }
  0x90   : > { %v1170_v29 = vrot.slane %v1169_v19, 4  ;;  %v1327_v46 = vor.u32 %v1326_v34, %v1323_v33  ;;  %v1346_v48 = vrot.slane %v1344_v36, 5  ;;  %v4836_v22 = vld [vmem:[%s4917_s17 + $0x110] ss:$8 sps:$4 sm:$0xff]   ;;  %v1494_v25 = vshll.u32 %v4329_v12, 16 }
  0x91   : > { %v489_v20 = vpop.permute.xlu0 %488  ;;  %v4311_v26 = vld [vmem:[%s4917_s17 + $0xa0] sm:$0xf] }
  0x92   : > { %v397_v10 = vpop.permute.xlu1 %396  ;;  %v1496_v36 = vrot.slane %v1494_v25, 5 }
  0x93   : > { %409 = vst.msk [vmem:[#allocation2] sm:$0xff] %vm408_vm5, %v397_v10  ;;  %2486 = vrot.lane.b32.xlu1 %v4830_v40, %s4879_s22  ;;  %v1160_v10 = vrot.slane %v1158_v3, 5  ;;  %v1332_v40 = vrot.slane %v1330_v31, 5  ;;  %v4835_v3 = vld [vmem:[%s4917_s17 + $0xe8] ss:$8 sps:$4 sm:$0xff]  }
  0x94   : > { %455 = vst.msk [vmem:[#allocation2] sm:$0xff] %vm454_vm6, %v443_v56  ;;  %v2423_v56 = vrot.slane %v2421_v51, 5  ;;  %v4521_v51 = vld [vmem:[%s4917_s17 + $0xc0] sm:$0xf] }
  0x95   : > { %501 = vst.msk [vmem:[#allocation2] sm:$0xff] %vm500_vm7, %v489_v20  ;;  %v1174_v20 = vrot.slane %v1172_v8, 5  ;;  %v1161_v38 = vsel %vm4942_vm2, %v1156_v28, %v1160_v10  ;;  %v2630_v54 = vshrl.u32 %v4521_v51, 16  ;;  %v2633_v58 = vshll.u32 %v4521_v51, 16  ;;  %v4328_v10 = vld [vmem:[%s4917_s17 + $0xdc] sm:$0x1] }
  0x96   : > { %v399_v32 = vpop.permute.xlu1 %398  ;;  %v2424_v14 = vsel %vm4942_vm2, %v2419_v6, %v2423_v56  ;;  %v1328_v56 = vrot.slane %v1327_v46, 4  ;;  %v4837_v6 = vld [vmem:[%s4917_s17 + $0xa0] ss:$8 sps:$4 sm:$0xff]   ;;  %v1486_v23 = vshll.u32 %v4328_v10, 16  ;;  %v1352_v46 = vshll.u32 %v4311_v26, 16 }
  0x97   : > { %410 = vst.msk [vmem:[#allocation2 + $0x8] sm:$0xff] %vm408_vm5, %v399_v32  ;;  %1288 = vrot.lane.b32.xlu1 %v4832_v57, %s4875_s18  ;;  %v1335_v32 = vshrl.u32 %v4309_v24, 16  ;;  %v1175_v39 = vsel %vm4942_vm2, %v1170_v29, %v1174_v20  ;;  %v2632_v63 = vrot.slane %v2630_v54, 4  ;;  %v2635_v4 = vrot.slane %v2633_v58, 5  ;;  %v4524_v10 = vld [vmem:[%s4917_s17 + $0xcc] sm:$0x1] }
  0x98   : > { %456 = vst.msk [vmem:[#allocation2 + $0x8] sm:$0xff] %vm454_vm6, %v5174_v50  ;;  %v2404_v50 = vor.u32 %v2403_v44, %v2400_v21  ;;  %v4292_v44 = vcombine.low %v1161_v38, %v1175_v39  ;;  %v1333_v1 = vsel %vm4942_vm2, %v1328_v56, %v1332_v40  ;;  %v1491_v24 = vshrl.u32 %v4329_v12, 16 }
  0x99   : > { %502 = vst.msk [vmem:[#allocation2 + $0x8] sm:$0xff] %vm500_vm7, %v5185_v11  ;;  %v1337_v41 = vrot.slane %v1335_v32, 4  ;;  %v2636_v8 = vor.u32 %v2635_v4, %v2632_v63  ;;  %v1482_v29 = vrot.slane %v1480_v18, 5  ;;  %v4312_v32 = vld [vmem:[%s4917_s17 + $0xa4] sm:$0x1]  ;;  %v1488_v34 = vrot.slane %v1486_v23, 5 }
  0x9a   : > { %v692_v11 = vpop.permute.xlu1 %691  ;;  %v2405_v62 = vrot.slane %v2404_v50, 4  ;;  %v4522_v50 = vld [vmem:[%s4917_s17 + $0xc4] sm:$0x1]  ;;  %2006 = vst.msk [vmem:[#allocation2 + $0x48] sm:$0xff] %vm202_vm3, %v4837_v6  ;;  %v1493_v35 = vrot.slane %v1491_v24, 4  ;;  %v1354_v56 = vrot.slane %v1352_v46, 5 }
  0x9b   : > { %2531 = vrot.lane.b32.xlu1 %v4833_v15, %s4881_s24  ;;  %v1341_v57 = vor.u32 %v1340_v47, %v1337_v41  ;;  %v2639_v59 = vshll.u32 %v4522_v50, 16  ;;  %v2637_v20 = vrot.slane %v2636_v8, 4  ;;  %v1358_v47 = vshll.u32 %v4312_v32, 16 }
  0x9c   : > { %v646_v60 = vpop.permute.xlu0 %645  ;;  %v2410_v42 = vsel %vm4942_vm2, %v2405_v62, %v2409_v52  ;;  %v2616_v52 = vshrl.u32 %v4519_v43, 16  ;;  %v2621_v62 = vrot.slane %v2619_v53, 5  ;;  %v4314_v43 = vld [vmem:[%s4917_s17 + $0xac] sm:$0x1] }
  0x9d   : > { %658 = vst.msk [vmem:[#allocation2] sm:$0xff] %vm657_vm8, %v646_v60  ;;  %v4486_v17 = vcombine.low %v2410_v42, %v2424_v14  ;;  %v1342_v2 = vrot.slane %v1341_v57, 4  ;;  %v2641_v5 = vrot.slane %v2639_v59, 5  ;;  %v1372_v53 = vshll.u32 %v4314_v43, 16  ;;  %v4545_v59 = vld [vmem:[%s4917_s17 + $0x98] sm:$0xf] }
  0x9e   : > { %704 = vst.msk [vmem:[#allocation2] sm:$0xff] %vm703_vm9, %v692_v11  ;;  %v2625_v11 = vshll.u32 %v4520_v49, 16  ;;  %v2618_v61 = vrot.slane %v2616_v52, 4  ;;  %v4543_v49 = vld [vmem:[%s4917_s17 + $0x90] sm:$0xf]  ;;  %v1360_v57 = vrot.slane %v1358_v47, 5 }
  0x9f   : > { %2443 = vrot.lane.b32.xlu0 %v4486_v17, %s4880_s23  ;;  %v1347_v7 = vsel %vm4942_vm2, %v1342_v2, %v1346_v48  ;;  %v1477_v17 = vshrl.u32 %v4327_v9, 16  ;;  %v2642_v33 = vsel %vm4942_vm2, %v2637_v20, %v2641_v5  ;;  %v2753_v63 = vshrl.u32 %v4543_v49, 16 }
  0xa0   : > { %v2627_v55 = vrot.slane %v2625_v11, 5  ;;  %v2622_v42 = vor.u32 %v2621_v62, %v2618_v61  ;;  %v4323_v14 = vcombine.low %v1333_v1, %v1347_v7  ;;  %v4544_v11 = vld [vmem:[%s4917_s17 + $0x94] sm:$0x1]  ;;  %v2756_v4 = vshll.u32 %v4543_v49, 16 }
  0xa1   : > { %v648_v16 = vpop.permute.xlu0 %647  ;;  %v1479_v28 = vrot.slane %v1477_v17, 4  ;;  %v2762_v5 = vshll.u32 %v4544_v11, 16  ;;  %v2755_v8 = vrot.slane %v2753_v63, 4  ;;  %v2767_v9 = vshrl.u32 %v4545_v59, 16 }
  0xa2   : > { %659 = vst.msk [vmem:[#allocation2 + $0x8] sm:$0xff] %vm657_vm8, %v648_v16  ;;  %v2623_v15 = vrot.slane %v2622_v42, 4  ;;  %v4330_v16 = vld [vmem:[%s4917_s17 + $0xe4] sm:$0x1]  ;;  %1444 = vrot.lane.b32.xlu1 %v4323_v14, %s4877_s20  ;;  %v4523_v42 = vld [vmem:[%s4917_s17 + $0xc8] sm:$0xf] }
  0xa3   : > { %1246 = vrot.lane.b32.xlu0 %v4292_v44, %s4878_s21  ;;  %v1500_v31 = vshll.u32 %v4330_v16, 16  ;;  %v1483_v40 = vor.u32 %v1482_v29, %v1479_v28  ;;  %v2764_v14 = vrot.slane %v2762_v5, 5  ;;  %v2769_v18 = vrot.slane %v2767_v9, 4  ;;  %v4566_v9 = vld [vmem:[%s4917_s17 + $0xe4] sm:$0x1] }
  0xa4   : > { %v2628_v27 = vsel %vm4942_vm2, %v2623_v15, %v2627_v55  ;;  %v1374_v55 = vrot.slane %v1372_v53, 5  ;;  %v2770_v15 = vshll.u32 %v4545_v59, 16  ;;  %v2644_v20 = vshrl.u32 %v4523_v42, 16 }
  0xa5   : > { %v2040_v37 = vpop.permute.xlu0 %2039  ;;  %v2194_v21 = vpop.permute.xlu1 %2193  ;;  %v4529_v39 = vcombine.low %v2628_v27, %v2642_v33  ;;  %v1502_v41 = vrot.slane %v1500_v31, 5  ;;  %v1484_v51 = vrot.slane %v1483_v40, 4  ;;  %v4526_v27 = vld [vmem:[%s4917_s17 + $0xd4] sm:$0x1]  ;;  %v2647_v28 = vshll.u32 %v4523_v42, 16 }
  0xa6   : > { %2205 = vst.msk [vmem:[#allocation2 + $0x40] sm:$0xff] %vm408_vm5, %v2194_v21  ;;  %v1349_v21 = vshrl.u32 %v4311_v26, 16  ;;  %v2772_v25 = vrot.slane %v2770_v15, 5  ;;  %v4525_v26 = vld [vmem:[%s4917_s17 + $0xd0] sm:$0xf]  ;;  %v2646_v32 = vrot.slane %v2644_v20, 4 }
  0xa7   : > { %2488 = vrot.lane.b32.xlu0 %v4834_v45, %s4879_s22  ;;  %2050 = vst.msk [vmem:[#allocation2 + $0x48] sm:$0xff] %vm248_vm4, %v2040_v37  ;;  %v4313_v37 = vld [vmem:[%s4917_s17 + $0xa8] sm:$0xf]  ;;  %v1497_v45 = vor.u32 %v1496_v36, %v1493_v35  ;;  %2687 = vrot.lane.b32.xlu1 %v4529_v39, %s4882_s25  ;;  %v1489_v61 = vsel %vm4942_vm2, %v1484_v51, %v1488_v34  ;;  %v2653_v33 = vshll.u32 %v4524_v10, 16  ;;  %v2649_v39 = vrot.slane %v2647_v28, 5 }
  0xa8   : > { %v1363_v48 = vshrl.u32 %v4313_v37, 16  ;;  %v1351_v50 = vrot.slane %v1349_v21, 4  ;;  %v1366_v52 = vshll.u32 %v4313_v37, 16  ;;  %v4331_v34 = vld [vmem:[%s4917_s17 + $0xe8] sm:$0xf]  ;;  %v2658_v43 = vshrl.u32 %v4525_v26, 16 }
  0xa9   : > { %v694_v60 = vpop.permute.xlu0 %693  ;;  %v738_v0 = vpop.permute.xlu1 %737  ;;  %v1498_v54 = vrot.slane %v1497_v45, 4  ;;  %v2661_v21 = vshll.u32 %v4525_v26, 16  ;;  %v4332_v45 = vld [vmem:[%s4917_s17 + $0xec] sm:$0x1]  ;;  %v2650_v49 = vor.u32 %v2649_v39, %v2646_v32  ;;  %v4333_v51 = vld [vmem:[%s4917_s17 + $0xf0] sm:$0xf] }
  0xaa   : > { %705 = vst.msk [vmem:[#allocation2 + $0x8] sm:$0xff] %vm703_vm9, %v694_v60  ;;  %v1365_v58 = vrot.slane %v1363_v48, 4  ;;  %v1368_v62 = vrot.slane %v1366_v52, 5  ;;  %v1355_v2 = vor.u32 %v1354_v56, %v1351_v50  ;;  %v1505_v50 = vshrl.u32 %v4331_v34, 16  ;;  %v4547_v15 = vld [vmem:[%s4917_s17 + $0xa0] sm:$0xf] }
  0xab   : > { %750 = vst.msk [vmem:[#allocation2] sm:$0xff] %vm749_vm10, %v738_v0  ;;  %1290 = vrot.lane.b32.xlu0 %v4835_v3, %s4875_s18  ;;  %v1503_v1 = vsel %vm4942_vm2, %v1498_v54, %v1502_v41  ;;  %v4546_v3 = vld [vmem:[%s4917_s17 + $0x9c] sm:$0x1]  ;;  %v2655_v41 = vrot.slane %v2653_v33, 5  ;;  %v2660_v52 = vrot.slane %v2658_v43, 4  ;;  %v2663_v53 = vrot.slane %v2661_v21, 5 }
  0xac   : > { %v4343_v6 = vcombine.low %v1489_v61, %v1503_v1  ;;  %v1369_v7 = vor.u32 %v1368_v62, %v1365_v58  ;;  %v1356_v12 = vrot.slane %v1355_v2, 4  ;;  %v4334_v54 = vld [vmem:[%s4917_s17 + $0xf4] sm:$0x1]  ;;  %v1508_v56 = vshll.u32 %v4331_v34, 16  ;;  %v4563_v61 = vld [vmem:[%s4917_s17 + $0xd8] sm:$0xf] }
  0xad   : > { %v2196_v13 = vpop.permute.xlu0 %2195  ;;  %v2238_v19 = vpop.permute.xlu1 %2237  ;;  %v2651_v58 = vrot.slane %v2650_v49, 4  ;;  %v1507_v59 = vrot.slane %v1505_v50, 4  ;;  %v2664_v63 = vor.u32 %v2663_v53, %v2660_v52  ;;  %v1519_v2 = vshrl.u32 %v4333_v51, 16  ;;  %v4550_v39 = vld [vmem:[%s4917_s17 + $0xac] sm:$0x1] }
  0xae   : > { %2249 = vst.msk [vmem:[#allocation2 + $0x40] sm:$0xff] %vm454_vm6, %v2238_v19  ;;  %1600 = vrot.lane.b32.xlu1 %v4343_v6, %s4880_s23  ;;  %v1370_v17 = vrot.slane %v1369_v7, 4  ;;  %v2776_v19 = vshll.u32 %v4546_v3, 16  ;;  %v1361_v23 = vsel %vm4942_vm2, %v1356_v12, %v1360_v57  ;;  %v1510_v1 = vrot.slane %v1508_v56, 5  ;;  %v4564_v3 = vld [vmem:[%s4917_s17 + $0xdc] sm:$0x1] }
  0xaf   : > { %2206 = vst.msk [vmem:[#allocation2 + $0x48] sm:$0xff] %vm408_vm5, %v2196_v13  ;;  %2533 = vrot.lane.b32.xlu0 %v4836_v22, %s4881_s24  ;;  %v2758_v13 = vrot.slane %v2756_v4, 5  ;;  %v4565_v4 = vld [vmem:[%s4917_s17 + $0xe0] sm:$0xf]  ;;  %v2656_v42 = vsel %vm4942_vm2, %v2651_v58, %v2655_v41  ;;  %v1522_v7 = vshll.u32 %v4333_v51, 16  ;;  %v2665_v10 = vrot.slane %v2664_v63, 4 }
  0xb0   : > { %v1375_v29 = vsel %vm4942_vm2, %v1370_v17, %v1374_v55  ;;  %v2778_v31 = vrot.slane %v2776_v19, 5  ;;  %v1511_v12 = vor.u32 %v1510_v1, %v1507_v59  ;;  %v2912_v19 = vshll.u32 %v4563_v61, 16  ;;  %v4361_v51 = vld [vmem:[%s4917_s17 + $0x10] sm:$0xf]  ;;  %v4841_v56 = vld [vmem:[%s4917_s17 + $0x20] ss:$8 sps:$4 sm:$0xff]  }
  0xb1   : > { %v740_v38 = vpop.permute.xlu0 %739  ;;  %v895_v44 = vpop.permute.xlu1 %894  ;;  %v2759_v24 = vor.u32 %v2758_v13, %v2755_v8  ;;  %v4324_v36 = vcombine.low %v1361_v23, %v1375_v29  ;;  %v1528_v8 = vshll.u32 %v4334_v54, 16  ;;  %v1521_v13 = vrot.slane %v1519_v2, 4  ;;  %v4362_v2 = vld [vmem:[%s4917_s17 + $0x14] sm:$0x1]  ;;  %205 = vst.msk [vmem:[#allocation2 + $0x10] sm:$0xff] %vm202_vm3, %v4841_v56 }
  0xb2   : > { %751 = vst.msk [vmem:[#allocation2 + $0x8] sm:$0xff] %vm749_vm10, %v740_v38  ;;  %v2773_v38 = vor.u32 %v2772_v25, %v2769_v18  ;;  %v1524_v17 = vrot.slane %v1522_v7, 5  ;;  %v2918_v20 = vshll.u32 %v4564_v3, 16  ;;  %v2923_v26 = vshrl.u32 %v4565_v4, 16  ;;  %v4567_v7 = vld [vmem:[%s4917_s17 + $0xe8] sm:$0xf] }
  0xb3   : > { %907 = vst.msk [vmem:[#allocation2] sm:$0xff] %vm906_vm11, %v895_v44  ;;  %v2760_v37 = vrot.slane %v2759_v24, 4  ;;  %v2667_v44 = vshll.u32 %v4526_v27, 16  ;;  %1446 = vrot.lane.b32.xlu0 %v4324_v36, %s4877_s20  ;;  %v1530_v18 = vrot.slane %v1528_v8, 5  ;;  %v1512_v24 = vrot.slane %v1511_v12, 4 }
  0xb4   : > { %v2774_v48 = vrot.slane %v2773_v38, 4  ;;  %v4549_v27 = vld [vmem:[%s4917_s17 + $0xa8] sm:$0xf]  ;;  %v2914_v32 = vrot.slane %v2912_v19, 5  ;;  %v5369_v33 = vrot.slane %v2918_v20, 5  ;;  %v2925_v36 = vrot.slane %v2923_v26, 4 }
  0xb5   : > { %v2240_v60 = vpop.permute.xlu0 %2239  ;;  %v2282_v0 = vpop.permute.xlu1 %2281  ;;  %v2765_v47 = vsel %vm4942_vm2, %v2760_v37, %v2764_v14  ;;  %v2669_v11 = vrot.slane %v2667_v44, 5  ;;  %v2909_v14 = vshrl.u32 %v4563_v61, 16  ;;  %v2926_v37 = vshll.u32 %v4565_v4, 16  ;;  %v4359_v44 = vld [vmem:[%s4917_s17 + $0x8] sm:$0xf] }
  0xb6   : > { %2250 = vst.msk [vmem:[#allocation2 + $0x48] sm:$0xff] %vm454_vm6, %v2240_v60  ;;  %v2779_v57 = vsel %vm4942_vm2, %v2774_v48, %v2778_v31  ;;  %v1514_v60 = vshll.u32 %v4332_v45, 16  ;;  %v1525_v31 = vor.u32 %v1524_v17, %v1521_v13  ;;  %v2932_v38 = vshll.u32 %v4566_v9, 16  ;;  %v4360_v45 = vld [vmem:[%s4917_s17 + $0xc] sm:$0x1] }
  0xb7   : > { %2293 = vst.msk [vmem:[#allocation2 + $0x40] sm:$0xff] %vm500_vm7, %v2282_v0  ;;  %v4559_v55 = vcombine.low %v2765_v47, %v2779_v57  ;;  %v4838_v0 = vld [vmem:[%s4917_s17 + $0x50] ss:$8 sps:$4 sm:$0xff]   ;;  %v2670_v23 = vsel %vm4942_vm2, %v2665_v10, %v2669_v11  ;;  %v2911_v25 = vrot.slane %v2909_v14, 4  ;;  %v2781_v43 = vshrl.u32 %v4547_v15, 16 }
  0xb8   : > { %v1516_v6 = vrot.slane %v1514_v60, 5  ;;  %v4530_v29 = vcombine.low %v2656_v42, %v2670_v23  ;;  %v2784_v21 = vshll.u32 %v4547_v15, 16  ;;  %v2934_v47 = vrot.slane %v2932_v38, 5  ;;  %v4568_v14 = vld [vmem:[%s4917_s17 + $0xec] sm:$0x1] }
  0xb9   : > { %v5330_v16 = vpop.permute.xlu0 %240  ;;  %v897_v22 = vpop.permute.xlu1 %896  ;;  %2876 = vrot.lane.b32.xlu1 %v4559_v55, %s4876_s19  ;;  %v2915_v41 = vor.u32 %v2914_v32, %v2911_v25  ;;  %v2795_v49 = vshrl.u32 %v4549_v27, 16  ;;  %v2783_v11 = vrot.slane %v2781_v43, 4  ;;  %v2804_v1 = vshll.u32 %v4550_v39, 16  ;;  %v4844_v25 = vld [vmem:[%s6054_s1 + $0x10] ss:$0 sps:$4 sm:$0x33]  }
  0xba   : > { %908 = vst.msk [vmem:[#allocation2 + $0x8] sm:$0xff] %vm906_vm11, %v897_v22  ;;  %v3760_v35 = vld [vmem:[#allocation2] sm:$0xff]  ;;  %2689 = vrot.lane.b32.xlu0 %v4530_v29, %s4882_s25  ;;  %v2786_v54 = vrot.slane %v2784_v21, 5  ;;  %v1677_v4 = vshrl.u32 %v4359_v44, 16  ;;  %v1680_v42 = vshll.u32 %v4359_v44, 16  ;;  %v1691_v13 = vshrl.u32 %v4361_v51, 16  ;;  %4772 = vmatprep.subr.msk.bf16.mxu0 %vm3845_vm13, %v4844_v25 }
  0xbb   : > { %4734 = vmatprep.mubr.msk.bf16.mxu0 %vm3796_vm12, %v3760_v35  ;;  %v4548_v22 = vld [vmem:[%s4917_s17 + $0xa4] sm:$0x1]  ;;  %v1517_v35 = vsel %vm4942_vm2, %v1512_v24, %v1516_v6  ;;  %v2916_v53 = vrot.slane %v2915_v41, 4  ;;  %v2797_v60 = vrot.slane %v2795_v49, 4  ;;  %v1686_v6 = vshll.u32 %v4360_v45, 16  ;;  %251 = vst.msk [vmem:[#allocation2 + $0x10] sm:$0xff] %vm248_vm4, %v5330_v16  ;;  %4773 = vmatprep.subr.msk.bf16.mxu1 %vm3845_vm13, %v4844_v25 }
  0xbc   : > { %v2790_v48 = vshll.u32 %v4548_v22, 16  ;;  %v2787_v63 = vor.u32 %v2786_v54, %v2783_v11  ;;  %v2806_v12 = vrot.slane %v2804_v1, 5  ;;  %v1679_v17 = vrot.slane %v1677_v4, 4  ;;  %v4569_v16 = vld [vmem:[%s4917_s17 + $0xf0] sm:$0xf] }
  0xbd   : > { %v2284_v40 = vpop.permute.xlu0 %2283  ;;  %v2438_v46 = vpop.permute.xlu1 %2437  ;;  %1644 = vrot.lane.b32.xlu1 %v4838_v0, %s4879_s22  ;;  %v2921_v55 = vsel %vm4942_vm2, %v2916_v53, %v5369_v33  ;;  %v2798_v0 = vshll.u32 %v4549_v27, 16  ;;  %v5403_v19 = vrot.slane %v1686_v6, 5  ;;  %v1693_v24 = vrot.slane %v1691_v13, 4  ;;  %v4570_v33 = vld [vmem:[%s4917_s17 + $0xf4] sm:$0x1] }
  0xbe   : > { %2294 = vst.msk [vmem:[#allocation2 + $0x48] sm:$0xff] %vm500_vm7, %v2284_v40  ;;  %v1526_v40 = vrot.slane %v1525_v31, 4  ;;  %v5384_v59 = vrot.slane %v2790_v48, 5  ;;  %v2788_v9 = vrot.slane %v2787_v63, 4  ;;  %v1694_v27 = vshll.u32 %v4361_v51, 16 }
  0xbf   : > { %2449 = vst.msk [vmem:[#allocation2 + $0x40] sm:$0xff] %vm657_vm8, %v2438_v46  ;;  %v2928_v46 = vrot.slane %v2926_v37, 5  ;;  %v2800_v10 = vrot.slane %v2798_v0, 5  ;;  %v2937_v29 = vshrl.u32 %v4567_v7, 16  ;;  %v4379_v41 = vld [vmem:[%s4917_s17 + $0x50] sm:$0xf] }
  0xc0   : > { %v1531_v52 = vsel %vm4942_vm2, %v1526_v40, %v1530_v18  ;;  %v1682_v18 = vrot.slane %v1680_v42, 5  ;;  %v2793_v23 = vsel %vm4942_vm2, %v2788_v9, %v5384_v59  ;;  %v1696_v38 = vrot.slane %v1694_v27, 5  ;;  %v4381_v53 = vld [vmem:[%s4917_s17 + $0x58] sm:$0xf]  ;;  %v4595_v27 = vld [vmem:[%s4917_s17 + $0x8] sm:$0xf] }
  0xc1   : > { %v5353_v62 = vpop.permute.xlu0 %242  ;;  %v5358_v5 = vpop.permute.xlu1 %400  ;;  %v4344_v57 = vcombine.low %v1517_v35, %v1531_v52  ;;  %v2929_v58 = vor.u32 %v2928_v46, %v2925_v36  ;;  %v2946_v35 = vshll.u32 %v4568_v14, 16  ;;  %v2951_v36 = vshrl.u32 %v4569_v16, 16  ;;  %v4365_v14 = vld [vmem:[%s4917_s17 + $0x20] sm:$0xf] }
  0xc2   : > { %411 = vst.msk [vmem:[#allocation2 + $0x10] sm:$0xff] %vm408_vm5, %v5358_v5  ;;  %v2801_v5 = vor.u32 %v2800_v10, %v2797_v60  ;;  %v1683_v26 = vor.u32 %v1682_v18, %v1679_v17  ;;  %v2939_v40 = vrot.slane %v2937_v29, 4  ;;  %v1697_v51 = vor.u32 %v1696_v38, %v1693_v24  ;;  %v4363_v60 = vld [vmem:[%s4917_s17 + $0x18] sm:$0xf] }
  0xc3   : > { %1602 = vrot.lane.b32.xlu0 %v4344_v57, %s4880_s23  ;;  %v2930_v3 = vrot.slane %v2929_v58, 4  ;;  %v5424_v45 = vrot.slane %v2946_v35, 5  ;;  %v2953_v46 = vrot.slane %v2951_v36, 4  ;;  %v2954_v52 = vshll.u32 %v4569_v16, 16  ;;  %v4382_v58 = vld [vmem:[%s4917_s17 + $0x5c] sm:$0x1] }
  0xc4   : > { %v2802_v32 = vrot.slane %v2801_v5, 4  ;;  %v1684_v37 = vrot.slane %v1683_v26, 4  ;;  %v2960_v56 = vshll.u32 %v4570_v33, 16  ;;  %v3847_v57 = vsel %vm3845_vm13, %v4844_v25, 0 }
  0xc5   : > { %v2483_v28 = vpop.permute.xlu1 %2482  ;;  %v2440_v34 = vpop.permute.xlu0 %2439  ;;  %v2935_v15 = vsel %vm4942_vm2, %v2930_v3, %v2934_v47  ;;  %v4380_v47 = vld [vmem:[%s4917_s17 + $0x54] sm:$0x1]  ;;  %v1833_v59 = vshrl.u32 %v4379_v41, 16  ;;  %v1698_v63 = vrot.slane %v1697_v51, 4  ;;  %v2956_v0 = vrot.slane %v2954_v52, 5  ;;  %4733 = vmatpush3.bf16.msra.mxu0 %v3847_v57  ;;  %4771 = vmatpush3.bf16.msra.mxu1 %v3847_v57 }
  0xc6   : > { %2494 = vst.msk [vmem:[#allocation2 + $0x40] sm:$0xff] %vm703_vm9, %v2483_v28  ;;  %v4579_v22 = vcombine.low %v2921_v55, %v2935_v15  ;;  %v1700_v28 = vshll.u32 %v4362_v2, 16  ;;  %v2807_v21 = vsel %vm4942_vm2, %v2802_v32, %v2806_v12  ;;  %v1689_v49 = vsel %vm4942_vm2, %v1684_v37, %v5403_v19  ;;  %v3761_v55 = vld [vmem:[#allocation2 + $0x8] sm:$0xff]  ;;  %v4364_v3 = vld [vmem:[%s4917_s17 + $0x1c] sm:$0x1] }
  0xc7   : > { %2450 = vst.msk [vmem:[#allocation2 + $0x48] sm:$0xff] %vm657_vm8, %v2440_v34  ;;  %v2940_v34 = vshll.u32 %v4567_v7, 16  ;;  %v4560_v48 = vcombine.low %v2793_v23, %v2807_v21  ;;  %v1836_v1 = vshll.u32 %v4379_v41, 16  ;;  %v1842_v2 = vshll.u32 %v4380_v47, 16  ;;  %v4845_v15 = vld [vmem:[%s4917_s17 + $0x30] ss:$8 sps:$4 sm:$0xff]  }
  0xc8   : > { %3032 = vrot.lane.b32.xlu1 %v4579_v22, %s4878_s21  ;;  %v1702_v39 = vrot.slane %v1700_v28, 5  ;;  %v2962_v6 = vrot.slane %v2960_v56, 5  ;;  %v1835_v7 = vrot.slane %v1833_v59, 4  ;;  %v2957_v10 = vor.u32 %v2956_v0, %v2953_v46  ;;  %v4843_v19 = vld [vmem:[%s4917_s17 + $0x50] ss:$8 sps:$4 sm:$0xff]   ;;  %4735 = vmatmul.mubr.msk.bf16.vlgmr.msra.gmra.mrb[0].mxu0 %vm3796_vm12, %v3761_v55  ;;  %206 = vst.msk [vmem:[#allocation2 + $0x18] sm:$0xff] %vm202_vm3, %v4845_v15 }
  0xc9   : > { %v447_v50 = vpop.permute.xlu1 %446  ;;  %v5386_v61 = vpop.permute.xlu0 %402  ;;  %v2942_v44 = vrot.slane %v2940_v34, 5  ;;  %2878 = vrot.lane.b32.xlu0 %v4560_v48, %s4876_s19  ;;  %v1838_v12 = vrot.slane %v1836_v1, 5  ;;  %v5441_v13 = vrot.slane %v1842_v2, 5  ;;  %v1850_v22 = vshll.u32 %v4381_v53, 16  ;;  %v4366_v23 = vld [vmem:[%s4917_s17 + $0x24] sm:$0x1] }
  0xca   : > { %457 = vst.msk [vmem:[#allocation2 + $0x10] sm:$0xff] %vm454_vm6, %v447_v50  ;;  %v4840_v50 = vld [vmem:[%s4917_s17 + $0x60] ss:$8 sps:$4 sm:$0xff]   ;;  %v1703_v9 = vsel %vm4942_vm2, %v1698_v63, %v1702_v39  ;;  %v2958_v5 = vrot.slane %v2957_v10, 4  ;;  %v1856_v25 = vshll.u32 %v4382_v58, 16  ;;  %v1705_v26 = vshrl.u32 %v4363_v60, 16 }
  0xcb   : > { %v2943_v54 = vor.u32 %v2942_v44, %v2939_v40  ;;  %v4375_v18 = vcombine.low %v1689_v49, %v1703_v9  ;;  %v1839_v24 = vor.u32 %v1838_v12, %v1835_v7  ;;  %v1852_v29 = vrot.slane %v1850_v22, 5  ;;  %252 = vst.msk [vmem:[#allocation2 + $0x18] sm:$0xff] %vm248_vm4, %v5353_v62  ;;  %v4597_v46 = vld [vmem:[%s4917_s17 + $0x10] sm:$0xf]  ;;  %v4383_v58 = vld [vmem:[%s4917_s17 + $0x60] sm:$0xf] }
  0xcc   : > { %v1714_v32 = vshll.u32 %v4364_v3, 16  ;;  %v1719_v33 = vshrl.u32 %v4365_v14, 16  ;;  %v2963_v34 = vsel %vm4942_vm2, %v2958_v5, %v2962_v6  ;;  %v1858_v36 = vrot.slane %v1856_v25, 5  ;;  %412 = vst.msk [vmem:[#allocation2 + $0x18] sm:$0xff] %vm408_vm5, %v5386_v61  ;;  %v4384_v1 = vld [vmem:[%s4917_s17 + $0x64] sm:$0x1] }
  0xcd   : > { %v2528_v8 = vpop.permute.xlu1 %2527  ;;  %v2485_v20 = vpop.permute.xlu0 %2484  ;;  %v2944_v42 = vrot.slane %v2943_v54, 4  ;;  %1646 = vrot.lane.b32.xlu0 %v4840_v50, %s4879_s22  ;;  %1800 = vrot.lane.b32.xlu1 %v4375_v18, %s4881_s24  ;;  %v1840_v35 = vrot.slane %v1839_v24, 4  ;;  %v1707_v37 = vrot.slane %v1705_v26, 4  ;;  %v1722_v47 = vshll.u32 %v4365_v14, 16  ;;  %v4598_v50 = vld [vmem:[%s4917_s17 + $0x14] sm:$0x1] }
  0xce   : > { %2539 = vst.msk [vmem:[#allocation2 + $0x40] sm:$0xff] %vm749_vm10, %v2528_v8  ;;  %v1847_v8 = vshrl.u32 %v4381_v53, 16  ;;  %v1716_v44 = vrot.slane %v1714_v32, 5  ;;  %v1721_v61 = vrot.slane %v1719_v33, 4  ;;  %v1728_v48 = vshll.u32 %v4366_v23, 16 }
  0xcf   : > { %2495 = vst.msk [vmem:[#allocation2 + $0x48] sm:$0xff] %vm703_vm9, %v2485_v20  ;;  %v2949_v16 = vsel %vm4942_vm2, %v2944_v42, %v5424_v45  ;;  %v4596_v45 = vld [vmem:[%s4917_s17 + $0xc] sm:$0x1]  ;;  %v1845_v62 = vsel %vm4942_vm2, %v1840_v35, %v5441_v13  ;;  %v3109_v52 = vshrl.u32 %v4595_v27, 16  ;;  %v3112_v53 = vshll.u32 %v4595_v27, 16 }
  0xd0   : > { %v1849_v20 = vrot.slane %v1847_v8, 4  ;;  %v4580_v40 = vcombine.low %v2949_v16, %v2963_v34  ;;  %v1730_v54 = vrot.slane %v1728_v48, 5  ;;  %v3118_v56 = vshll.u32 %v4596_v45, 16  ;;  %v4385_v6 = vld [vmem:[%s4917_s17 + $0x68] sm:$0xf] }
  0xd1   : > { %v493_v31 = vpop.permute.xlu1 %492  ;;  %v5419_v43 = vpop.permute.xlu0 %448  ;;  %3076 = vrot.lane.b32.xlu1 %v4843_v19, %s4875_s18  ;;  %v3123_v57 = vshrl.u32 %v4597_v46, 16  ;;  %v3111_v63 = vrot.slane %v3109_v52, 4  ;;  %v3114_v0 = vrot.slane %v3112_v53, 5  ;;  %v3126_v9 = vshll.u32 %v4597_v46, 16  ;;  %v4386_v12 = vld [vmem:[%s4917_s17 + $0x6c] sm:$0x1] }
  0xd2   : > { %503 = vst.msk [vmem:[#allocation2 + $0x10] sm:$0xff] %vm500_vm7, %v493_v31  ;;  %v1708_v31 = vshll.u32 %v4363_v60, 16  ;;  %v1853_v41 = vor.u32 %v1852_v29, %v1849_v20  ;;  %3034 = vrot.lane.b32.xlu0 %v4580_v40, %s4878_s21  ;;  %v3132_v10 = vshll.u32 %v4598_v50, 16  ;;  %v1861_v15 = vshrl.u32 %v4383_v58, 16  ;;  %v956_v19 = vld [vmem:[%s4917_s17 + $0x20] sm:$0xf] }
  0xd3   : > { %458 = vst.msk [vmem:[#allocation2 + $0x18] sm:$0xff] %vm454_vm6, %v5419_v43  ;;  %v3125_v42 = vrot.slane %v3123_v57, 4  ;;  %v3115_v8 = vor.u32 %v3114_v0, %v3111_v63  ;;  %v1870_v18 = vshll.u32 %v4384_v1, 16  ;;  %v3128_v20 = vrot.slane %v3126_v9, 5  ;;  %v957_v5 = vld [vmem:[%s4917_s17 + $0x24] sm:$0x1] }
  0xd4   : > { %v1710_v21 = vrot.slane %v1708_v31, 5  ;;  %v1854_v43 = vrot.slane %v1853_v41, 4  ;;  %v3134_v22 = vrot.slane %v3132_v10, 5  ;;  %v1875_v23 = vshrl.u32 %v4385_v6, 16  ;;  %v4846_v34 = vld [vmem:[%s4917_s17 + $0x60] ss:$8 sps:$4 sm:$0xff]  }
  0xd5   : > { %v2684_v11 = vpop.permute.xlu1 %2683  ;;  %v2530_v4 = vpop.permute.xlu0 %2529  ;;  %v3116_v16 = vrot.slane %v3115_v8, 4  ;;  %v1863_v25 = vrot.slane %v1861_v15, 4  ;;  %v5492_v27 = vrot.slane %v1870_v18, 5  ;;  %v3129_v33 = vor.u32 %v3128_v20, %v3125_v42  ;;  %v959_v41 = vld [vmem:[%s4917_s17 + $0x2c] sm:$0x1] }
  0xd6   : > { %2695 = vst.msk [vmem:[#allocation2 + $0x40] sm:$0xff] %vm906_vm11, %v2684_v11  ;;  %v1711_v51 = vor.u32 %v1710_v21, %v1707_v37  ;;  %v1724_v11 = vrot.slane %v1722_v47, 5  ;;  %v1859_v60 = vsel %vm4942_vm2, %v1854_v43, %v1858_v36  ;;  %v1877_v35 = vrot.slane %v1875_v23, 4  ;;  %v4616_v50 = vld [vmem:[%s4917_s17 + $0x54] sm:$0x1] }
  0xd7   : > { %2540 = vst.msk [vmem:[#allocation2 + $0x48] sm:$0xff] %vm749_vm10, %v2530_v4  ;;  %v4395_v2 = vcombine.low %v1845_v62, %v1859_v60  ;;  %v3120_v4 = vrot.slane %v3118_v56, 5  ;;  %v1884_v40 = vshll.u32 %v4386_v12, 16  ;;  %v1021_v21 = vshrl.u32 %v956_v19, 16  ;;  %v4617_v56 = vld [vmem:[%s4917_s17 + $0x58] sm:$0xf] }
  0xd8   : > { %v1712_v55 = vrot.slane %v1711_v51, 4  ;;  %v1725_v3 = vor.u32 %v1724_v11, %v1721_v61  ;;  %v1024_v45 = vshll.u32 %v956_v19, 16  ;;  %v1030_v46 = vshll.u32 %v957_v5, 16  ;;  %v4615_v61 = vld [vmem:[%s4917_s17 + $0x50] sm:$0xf] }
  0xd9   : > { %v650_v17 = vpop.permute.xlu1 %649  ;;  %v495_v28 = vpop.permute.xlu0 %494  ;;  %1956 = vrot.lane.b32.xlu1 %v4395_v2, %s4882_s25  ;;  %v3121_v32 = vsel %vm4942_vm2, %v3116_v16, %v3120_v4  ;;  %v1886_v43 = vrot.slane %v1884_v40, 5  ;;  %v1023_v51 = vrot.slane %v1021_v21, 4  ;;  %v1044_v1 = vshll.u32 %v959_v41, 16  ;;  %v4618_v2 = vld [vmem:[%s4917_s17 + $0x5c] sm:$0x1] }
  0xda   : > { %660 = vst.msk [vmem:[#allocation2 + $0x10] sm:$0xff] %vm657_vm8, %v650_v17  ;;  %v1717_v7 = vsel %vm4942_vm2, %v1712_v55, %v1716_v44  ;;  %v1726_v14 = vrot.slane %v1725_v3, 4  ;;  %v1864_v17 = vshll.u32 %v4383_v58, 16  ;;  %v3130_v44 = vrot.slane %v3129_v33, 4  ;;  %v4599_v9 = vld [vmem:[%s4917_s17 + $0x18] sm:$0xf] }
  0xdb   : > { %504 = vst.msk [vmem:[#allocation2 + $0x18] sm:$0xff] %vm500_vm7, %v495_v28  ;;  %v958_v28 = vld [vmem:[%s4917_s17 + $0x28] sm:$0xf]  ;;  %v1026_v53 = vrot.slane %v1024_v45, 5  ;;  %v1032_v11 = vrot.slane %v1030_v46, 5  ;;  %v3265_v3 = vshrl.u32 %v4615_v61, 16 }
  0xdc   : > { %v1731_v24 = vsel %vm4942_vm2, %v1726_v14, %v1730_v54  ;;  %v1866_v26 = vrot.slane %v1864_v17, 5  ;;  %v1035_v62 = vshrl.u32 %v958_v28, 16  ;;  %v3135_v52 = vsel %vm4942_vm2, %v3130_v44, %v3134_v22  ;;  %v4600_v15 = vld [vmem:[%s4917_s17 + $0x1c] sm:$0x1]  ;;  %v4601_v23 = vld [vmem:[%s4917_s17 + $0x20] sm:$0xf] }
  0xdd   : > { %v2686_v38 = vpop.permute.xlu1 %2685  ;;  %v3768_v39 = vld [vmem:[#allocation2 + $0x40] sm:$0xff]  ;;  %v5472_v49 = vpop.permute.xlu0 %2041  ;;  %v4376_v31 = vcombine.low %v1717_v7, %v1731_v24  ;;  %v1038_v63 = vshll.u32 %v958_v28, 16  ;;  %v1027_v0 = vor.u32 %v1026_v53, %v1023_v51  ;;  %v3268_v4 = vshll.u32 %v4615_v61, 16  ;;  %v4285_v51 = vld [vmem:[%s4917_s17 + $0x70] sm:$0xf] }
  0xde   : > { %2696 = vst.msk [vmem:[#allocation2 + $0x48] sm:$0xff] %vm906_vm11, %v2686_v38  ;;  %4750 = vmatprep.mubr.msk.bf16.mxu1 %vm3796_vm12, %v3768_v39  ;;  %v1867_v38 = vor.u32 %v1866_v26, %v1863_v25  ;;  %v1878_v39 = vshll.u32 %v4385_v6, 16  ;;  %v1037_v54 = vrot.slane %v1035_v62, 4  ;;  %v3274_v7 = vshll.u32 %v4616_v50, 16  ;;  %v4284_v62 = vld [vmem:[%s4917_s17 + $0x6c] sm:$0x1] }
  0xdf   : > { %1802 = vrot.lane.b32.xlu0 %v4376_v31, %s4881_s24  ;;  %v1040_v6 = vrot.slane %v1038_v63, 5  ;;  %v3279_v8 = vshrl.u32 %v4617_v56, 16  ;;  %v1028_v10 = vrot.slane %v1027_v0, 4  ;;  %v1046_v12 = vrot.slane %v1044_v1, 5 }
  0xe0   : > { %v1868_v47 = vrot.slane %v1867_v38, 4  ;;  %v1880_v48 = vrot.slane %v1878_v39, 5  ;;  %v3270_v14 = vrot.slane %v3268_v4, 5  ;;  %v3276_v20 = vrot.slane %v3274_v7, 5  ;;  %v4283_v39 = vld [vmem:[%s4917_s17 + $0x68] sm:$0xf] }
  0xe1   : > { %v696_v59 = vpop.permute.xlu1 %695  ;;  %v652_v13 = vpop.permute.xlu0 %651  ;;  %v1041_v16 = vor.u32 %v1040_v6, %v1037_v54  ;;  %v3281_v22 = vrot.slane %v3279_v8, 4  ;;  %v1033_v24 = vsel %vm4942_vm2, %v1028_v10, %v1032_v11  ;;  %v3282_v26 = vshll.u32 %v4617_v56, 16  ;;  %v4286_v54 = vld [vmem:[%s4917_s17 + $0x74] sm:$0x1]  ;;  %v962_v7 = vld [vmem:[%s4917_s17 + $0x38] sm:$0xf] }
  0xe2   : > { %706 = vst.msk [vmem:[#allocation2 + $0x10] sm:$0xff] %vm703_vm9, %v696_v59  ;;  %v4611_v59 = vcombine.low %v3121_v32, %v3135_v52  ;;  %v1873_v60 = vsel %vm4942_vm2, %v1868_v47, %v5492_v27  ;;  %v1881_v55 = vor.u32 %v1880_v48, %v1877_v35  ;;  %v3288_v28 = vshll.u32 %v4618_v2, 16  ;;  %v961_v2 = vld [vmem:[%s4917_s17 + $0x34] sm:$0x1] }
  0xe3   : > { %661 = vst.msk [vmem:[#allocation2 + $0x18] sm:$0xff] %vm657_vm8, %v652_v13  ;;  %3078 = vrot.lane.b32.xlu0 %v4846_v34, %s4875_s18  ;;  %v3267_v13 = vrot.slane %v3265_v3, 4  ;;  %v1042_v27 = vrot.slane %v1041_v16, 4  ;;  %v3137_v31 = vshrl.u32 %v4599_v9, 16  ;;  %v3140_v32 = vshll.u32 %v4599_v9, 16 }
  0xe4   : > { %3232 = vrot.lane.b32.xlu1 %v4611_v59, %s4877_s20  ;;  %v1882_v42 = vrot.slane %v1881_v55, 4  ;;  %v3284_v34 = vrot.slane %v3282_v26, 5  ;;  %v3146_v35 = vshll.u32 %v4600_v15, 16  ;;  %v3151_v38 = vshrl.u32 %v4601_v23, 16 }
  0xe5   : > { %v3769_v29 = vld [vmem:[#allocation2 + $0x48] sm:$0xff]  ;;  %v5498_v36 = vpop.permute.xlu1 %2197  ;;  %v5500_v37 = vpop.permute.xlu0 %2043  ;;  %v3271_v25 = vor.u32 %v3270_v14, %v3267_v13  ;;  %v1047_v21 = vsel %vm4942_vm2, %v1042_v27, %v1046_v12  ;;  %v3290_v44 = vrot.slane %v3288_v28, 5  ;;  %v3139_v45 = vrot.slane %v3137_v31, 4  ;;  %v4619_v27 = vld [vmem:[%s4917_s17 + $0x60] sm:$0xf] }
  0xe6   : > { %4751 = vmatmul.mubr.msk.bf16.vlgmr.msra.gmra.mrb[0].mxu1 %vm3796_vm12, %v3769_v29  ;;  %v1887_v19 = vsel %vm4942_vm2, %v1882_v42, %v1886_v43  ;;  %v4602_v29 = vld [vmem:[%s4917_s17 + $0x24] sm:$0x1]  ;;  %v3142_v46 = vrot.slane %v3140_v32, 5  ;;  %v4273_v61 = vcombine.low %v1033_v24, %v1047_v21  ;;  %v3285_v48 = vor.u32 %v3284_v34, %v3281_v22 }
  0xe7   : > { %v4396_v5 = vcombine.low %v1873_v60, %v1887_v19  ;;  %v3272_v33 = vrot.slane %v3271_v25, 4  ;;  %v3148_v43 = vrot.slane %v3146_v35, 5  ;;  %v3153_v52 = vrot.slane %v3151_v38, 4  ;;  %v960_v60 = vld [vmem:[%s4917_s17 + $0x30] sm:$0xf] }
  0xe8   : > { %v3143_v50 = vor.u32 %v3142_v46, %v3139_v45  ;;  %v3154_v53 = vshll.u32 %v4601_v23, 16  ;;  %v3160_v11 = vshll.u32 %v4602_v29, 16  ;;  %1092 = vrot.lane.b32.xlu0 %v4273_v61, %s4876_s19  ;;  %v3286_v56 = vrot.slane %v3285_v48, 4  ;;  %v4622_v48 = vld [vmem:[%s4917_s17 + $0x6c] sm:$0x1] }
  0xe9   : > { %v742_v57 = vpop.permute.xlu1 %741  ;;  %v698_v58 = vpop.permute.xlu0 %697  ;;  %1958 = vrot.lane.b32.xlu1 %v4396_v5, %s4882_s25  ;;  %v3277_v47 = vsel %vm4942_vm2, %v3272_v33, %v3276_v20  ;;  %v1186_v59 = vshll.u32 %v4284_v62, 16  ;;  %v1191_v1 = vshrl.u32 %v4285_v51, 16  ;;  %v1194_v19 = vshll.u32 %v4285_v51, 16  ;;  %v963_v20 = vld [vmem:[%s4917_s17 + $0x3c] sm:$0x1] }
  0xea   : > { %752 = vst.msk [vmem:[#allocation2 + $0x10] sm:$0xff] %vm749_vm10, %v742_v57  ;;  %v1177_v57 = vshrl.u32 %v4283_v39, 16  ;;  %v3144_v55 = vrot.slane %v3143_v50, 4  ;;  %v3156_v63 = vrot.slane %v3154_v53, 5  ;;  %v3162_v0 = vrot.slane %v3160_v11, 5 }
  0xeb   : > { %707 = vst.msk [vmem:[#allocation2 + $0x18] sm:$0xff] %vm703_vm9, %v698_v58  ;;  %v1180_v58 = vshll.u32 %v4283_v39, 16  ;;  %v3291_v3 = vsel %vm4942_vm2, %v3286_v56, %v3290_v44  ;;  %v1188_v6 = vrot.slane %v1186_v59, 5  ;;  %v1193_v14 = vrot.slane %v1191_v1, 4  ;;  %v4620_v33 = vld [vmem:[%s4917_s17 + $0x64] sm:$0x1] }
  0xec   : > { %v1179_v4 = vrot.slane %v1177_v57, 4  ;;  %v4631_v10 = vcombine.low %v3277_v47, %v3291_v3  ;;  %v3149_v12 = vsel %vm4942_vm2, %v3144_v55, %v3148_v43  ;;  %v3157_v13 = vor.u32 %v3156_v63, %v3153_v52  ;;  %v4287_v50 = vld [vmem:[%s4917_s17 + $0x78] sm:$0xf]  ;;  %v4288_v56 = vld [vmem:[%s4917_s17 + $0x7c] sm:$0x1] }
  0xed   : > { %v5520_v17 = vpop.permute.xlu1 %2241  ;;  %v5522_v18 = vpop.permute.xlu0 %2199  ;;  %v1182_v42 = vrot.slane %v1180_v58, 5  ;;  %v1200_v16 = vshll.u32 %v4286_v54, 16  ;;  %v1049_v22 = vshrl.u32 %v960_v60, 16  ;;  %v1052_v24 = vshll.u32 %v960_v60, 16  ;;  %v4850_v3 = vld [vmem:[%s4917_s17 + $0xb0] ss:$8 sps:$4 sm:$0xff]  }
  0xee   : > { %3388 = vrot.lane.b32.xlu1 %v4631_v10, %s4880_s23  ;;  %v3158_v5 = vrot.slane %v3157_v13, 4  ;;  %v1058_v25 = vshll.u32 %v961_v2, 16  ;;  %v1063_v26 = vshrl.u32 %v962_v7, 16  ;;  %v1196_v29 = vrot.slane %v1194_v19, 5  ;;  %v4289_v2 = vld [vmem:[%s4917_s17 + $0x80] sm:$0xf] }
  0xef   : > { %v1183_v15 = vor.u32 %v1182_v42, %v1179_v4  ;;  %v1202_v31 = vrot.slane %v1200_v16, 5  ;;  %v1051_v32 = vrot.slane %v1049_v22, 4  ;;  %v1054_v35 = vrot.slane %v1052_v24, 5  ;;  %v4647_v16 = vld [vmem:[%s4917_s17 + $0x98] sm:$0xf]  ;;  %2007 = vst.msk [vmem:[#allocation2 + $0x50] sm:$0xff] %vm202_vm3, %v4850_v3 }
  0xf0   : > { %v3163_v34 = vsel %vm4942_vm2, %v3158_v5, %v3162_v0  ;;  %v1060_v38 = vrot.slane %v1058_v25, 5  ;;  %v1065_v39 = vrot.slane %v1063_v26, 4  ;;  %v1197_v44 = vor.u32 %v1196_v29, %v1193_v14  ;;  %2051 = vst.msk [vmem:[#allocation2 + $0x50] sm:$0xff] %vm248_vm4, %v5472_v49  ;;  %v4649_v49 = vld [vmem:[%s4917_s17 + $0xa0] sm:$0xf] }
  0xf1   : > { %v899_v40 = vpop.permute.xlu1 %898  ;;  %v744_v41 = vpop.permute.xlu0 %743  ;;  %v1184_v28 = vrot.slane %v1183_v15, 4  ;;  %v1066_v45 = vshll.u32 %v962_v7, 16  ;;  %v1055_v61 = vor.u32 %v1054_v35, %v1051_v32  ;;  %v1072_v47 = vshll.u32 %v963_v20, 16  ;;  %v4648_v20 = vld [vmem:[%s4917_s17 + $0x9c] sm:$0x1]  ;;  %2207 = vst.msk [vmem:[#allocation2 + $0x50] sm:$0xff] %vm408_vm5, %v5498_v36 }
  0xf2   : > { %909 = vst.msk [vmem:[#allocation2 + $0x10] sm:$0xff] %vm906_vm11, %v899_v40  ;;  %v4621_v40 = vld [vmem:[%s4917_s17 + $0x68] sm:$0xf]  ;;  %v3293_v43 = vshrl.u32 %v4619_v27, 16  ;;  %v3296_v51 = vshll.u32 %v4619_v27, 16  ;;  %v1198_v52 = vrot.slane %v1197_v44, 4 }
  0xf3   : > { %753 = vst.msk [vmem:[#allocation2 + $0x18] sm:$0xff] %vm749_vm10, %v744_v41  ;;  %v4612_v41 = vcombine.low %v3149_v12, %v3163_v34  ;;  %v1189_v21 = vsel %vm4942_vm2, %v1184_v28, %v1188_v6  ;;  %v1068_v53 = vrot.slane %v1066_v45, 5  ;;  %v3302_v11 = vshll.u32 %v4620_v33, 16  ;;  %v4847_v6 = vld [vmem:[%s4917_s17 + $0xe0] ss:$8 sps:$4 sm:$0xff]  }
  0xf4   : > { %v3307_v54 = vshrl.u32 %v4621_v40, 16  ;;  %v1056_v57 = vrot.slane %v1055_v61, 4  ;;  %v1074_v58 = vrot.slane %v1072_v47, 5  ;;  %v3295_v59 = vrot.slane %v3293_v43, 4  ;;  %v4290_v12 = vld [vmem:[%s4917_s17 + $0x84] sm:$0x1] }
  0xf5   : > { %v5547_v8 = vpop.permute.xlu1 %2285  ;;  %v5549_v9 = vpop.permute.xlu0 %2243  ;;  %3234 = vrot.lane.b32.xlu0 %v4612_v41, %s4877_s20  ;;  %v3298_v60 = vrot.slane %v3296_v51, 5  ;;  %v1203_v55 = vsel %vm4942_vm2, %v1198_v52, %v1202_v31  ;;  %v1069_v63 = vor.u32 %v1068_v53, %v1065_v39  ;;  %v5572_v0 = vrot.slane %v3302_v11, 5  ;;  %v4848_v35 = vld [vmem:[%s4917_s17 + $0xf8] ss:$8 sps:$4 sm:$0xff]   ;;  %2251 = vst.msk [vmem:[#allocation2 + $0x50] sm:$0xff] %vm454_vm6, %v5520_v17 }
  0xf6   : > { %v3309_v1 = vrot.slane %v3307_v54, 4  ;;  %v4293_v4 = vcombine.low %v1189_v21, %v1203_v55  ;;  %v1061_v42 = vsel %vm4942_vm2, %v1056_v57, %v1060_v38  ;;  %v3310_v10 = vshll.u32 %v4621_v40, 16  ;;  %v4650_v21 = vld [vmem:[%s4917_s17 + $0xa4] sm:$0x1]  ;;  %2295 = vst.msk [vmem:[#allocation2 + $0x50] sm:$0xff] %vm500_vm7, %v5547_v8 }
  0xf7   : > { %v3299_v7 = vor.u32 %v3298_v60, %v3295_v59  ;;  %v1070_v13 = vrot.slane %v1069_v63, 4  ;;  %v3316_v14 = vshll.u32 %v4622_v48, 16  ;;  %v1205_v15 = vshrl.u32 %v4287_v50, 16  ;;  %v4315_v47 = vld [vmem:[%s4917_s17 + $0xb0] sm:$0xf] }
  0xf8   : > { %v1208_v19 = vshll.u32 %v4287_v50, 16  ;;  %1248 = vrot.lane.b32.xlu1 %v4293_v4, %s4878_s21  ;;  %v3312_v5 = vrot.slane %v3310_v10, 5  ;;  %v1214_v24 = vshll.u32 %v4288_v56, 16  ;;  %v1219_v25 = vshrl.u32 %v4289_v2, 16  ;;  %v4316_v52 = vld [vmem:[%s4917_s17 + $0xb4] sm:$0x1] }
  0xf9   : > { %v3762_v23 = vld [vmem:[#allocation2 + $0x10] sm:$0xff]  ;;  %v5563_v46 = vpop.permute.xlu1 %1088  ;;  %v901_v62 = vpop.permute.xlu0 %900  ;;  %v1075_v26 = vsel %vm4942_vm2, %v1070_v13, %v1074_v58  ;;  %v3318_v27 = vrot.slane %v3316_v14, 5  ;;  %v1207_v28 = vrot.slane %v1205_v15, 4  ;;  %v1222_v41 = vshll.u32 %v4289_v2, 16  ;;  %v4317_v57 = vld [vmem:[%s4917_s17 + $0xb8] sm:$0xf] }
  0xfa   : > { %4738 = vmatprep.mubr.msk.bf16.mxu0 %vm3796_vm12, %v3762_v23  ;;  %910 = vst.msk [vmem:[#allocation2 + $0x18] sm:$0xff] %vm906_vm11, %v901_v62  ;;  %v3300_v23 = vrot.slane %v3299_v7, 4  ;;  %v1210_v29 = vrot.slane %v1208_v19, 5  ;;  %v4274_v32 = vcombine.low %v1061_v42, %v1075_v26  ;;  %v3313_v34 = vor.u32 %v3312_v5, %v3309_v1  ;;  %v4318_v2 = vld [vmem:[%s4917_s17 + $0xbc] sm:$0x1] }
  0xfb   : > { %v1216_v38 = vrot.slane %v1214_v24, 5  ;;  %v1221_v40 = vrot.slane %v1219_v25, 4  ;;  %v1228_v36 = vshll.u32 %v4290_v12, 16  ;;  %v3465_v17 = vshrl.u32 %v4647_v16, 16  ;;  %v4667_v4 = vld [vmem:[%s4917_s17 + $0xe0] sm:$0xf] }
  0xfc   : > { %v3305_v33 = vsel %vm4942_vm2, %v3300_v23, %v5572_v0  ;;  %v1211_v39 = vor.u32 %v1210_v29, %v1207_v28  ;;  %1094 = vrot.lane.b32.xlu0 %v4274_v32, %s4876_s19  ;;  %3432 = vrot.lane.b32.xlu1 %v4847_v6, %s4879_s22  ;;  %v3314_v45 = vrot.slane %v3313_v34, 4  ;;  %v3468_v62 = vshll.u32 %v4647_v16, 16  ;;  %v4668_v13 = vld [vmem:[%s4917_s17 + $0xe4] sm:$0x1]  ;;  %v4669_v14 = vld [vmem:[%s4917_s17 + $0xe8] sm:$0xf] }
  0xfd   : > { %v2442_v22 = vpop.permute.xlu1 %2441  ;;  %v5601_v44 = vpop.permute.xlu0 %2287  ;;  %v3474_v61 = vshll.u32 %v4648_v20, 16  ;;  %v1224_v51 = vrot.slane %v1222_v41, 5  ;;  %v1230_v50 = vrot.slane %v1228_v36, 5  ;;  %v3479_v8 = vshrl.u32 %v4649_v49, 16  ;;  %v4852_v26 = vld [vmem:[%s4917_s17 + $0xc0] ss:$8 sps:$4 sm:$0xff]  }
  0xfe   : > { %2451 = vst.msk [vmem:[#allocation2 + $0x50] sm:$0xff] %vm657_vm8, %v2442_v22  ;;  %v1212_v43 = vrot.slane %v1211_v39, 4  ;;  %v3319_v53 = vsel %vm4942_vm2, %v3314_v45, %v3318_v27  ;;  %v3467_v11 = vrot.slane %v3465_v17, 4  ;;  %v3470_v54 = vrot.slane %v3468_v62, 5  ;;  %v4670_v41 = vld [vmem:[%s4917_s17 + $0xec] sm:$0x1] }
  0xff   : > { %v5612_v56 = vrot.slane %v3474_v61, 5  ;;  %v4632_v58 = vcombine.low %v3305_v33, %v3319_v53  ;;  %v1225_v60 = vor.u32 %v1224_v51, %v1221_v40  ;;  %v3481_v55 = vrot.slane %v3479_v8, 4  ;;  %v4849_v33 = vld [vmem:[%s4917_s17 + $0xf0] ss:$8 sps:$4 sm:$0xff]   ;;  %2008 = vst.msk [vmem:[#allocation2 + $0x58] sm:$0xff] %vm202_vm3, %v4852_v26 }
 0x100   : > { %v1217_v59 = vsel %vm4942_vm2, %v1212_v43, %v1216_v38  ;;  %1292 = vrot.lane.b32.xlu1 %v4848_v35, %s4875_s18  ;;  %v3471_v63 = vor.u32 %v3470_v54, %v3467_v11  ;;  %v3482_v0 = vshll.u32 %v4649_v49, 16  ;;  %v3488_v1 = vshll.u32 %v4650_v21, 16  ;;  %2052 = vst.msk [vmem:[#allocation2 + $0x58] sm:$0xff] %vm248_vm4, %v5500_v37  ;;  %v4651_v43 = vld [vmem:[%s4917_s17 + $0xa8] sm:$0xf] }
 0x101   : > { %v3763_v31 = vld [vmem:[#allocation2 + $0x18] sm:$0xff]  ;;  %v5607_v48 = vpop.permute.xlu1 %1244  ;;  %v1377_v3 = vshrl.u32 %v4315_v47, 16  ;;  %3390 = vrot.lane.b32.xlu0 %v4632_v58, %s4880_s23  ;;  %v1226_v6 = vrot.slane %v1225_v60, 4  ;;  %v1380_v7 = vshll.u32 %v4315_v47, 16  ;;  %v1386_v10 = vshll.u32 %v4316_v52, 16  ;;  %v5623_v15 = vpop.permute.xlu0 %1090  ;;  %2208 = vst.msk [vmem:[#allocation2 + $0x58] sm:$0xff] %vm408_vm5, %v5522_v18 }
 0x102   : > { %4739 = vmatmul.mubr.msk.bf16.gmra.mrb[4].mxu0 %vm3796_vm12, %v3763_v31  ;;  %v1391_v12 = vshrl.u32 %v4317_v57, 16  ;;  %v3472_v19 = vrot.slane %v3471_v63, 4  ;;  %v3484_v16 = vrot.slane %v3482_v0, 5  ;;  %v3490_v20 = vrot.slane %v3488_v1, 5  ;;  %v4652_v53 = vld [vmem:[%s4917_s17 + $0xac] sm:$0x1] }
 0x103   : > { %v1379_v22 = vrot.slane %v1377_v3, 4  ;;  %v1231_v23 = vsel %vm4942_vm2, %v1226_v6, %v1230_v50  ;;  %v1382_v5 = vrot.slane %v1380_v7, 5  ;;  %v5628_v24 = vrot.slane %v1386_v10, 5  ;;  %v4653_v11 = vld [vmem:[%s4917_s17 + $0xb0] sm:$0xf]  ;;  %2252 = vst.msk [vmem:[#allocation2 + $0x58] sm:$0xff] %vm454_vm6, %v5549_v9 }
 0x104   : > { %v1393_v25 = vrot.slane %v1391_v12, 4  ;;  %v4294_v27 = vcombine.low %v1217_v59, %v1231_v23  ;;  %v3477_v28 = vsel %vm4942_vm2, %v3472_v19, %v5612_v56  ;;  %v3485_v29 = vor.u32 %v3484_v16, %v3481_v55  ;;  %2296 = vst.msk [vmem:[#allocation2 + $0x58] sm:$0xff] %vm500_vm7, %v5601_v44  ;;  %v4654_v9 = vld [vmem:[%s4917_s17 + $0xb4] sm:$0x1]  ;;  %v4335_v44 = vld [vmem:[%s4917_s17 + $0xf8] sm:$0xf] }
 0x105   : > { %v2487_v42 = vpop.permute.xlu1 %2486  ;;  %v1394_v31 = vshll.u32 %v4317_v57, 16  ;;  %v1383_v34 = vor.u32 %v1382_v5, %v1379_v22  ;;  %v1400_v35 = vshll.u32 %v4318_v2, 16  ;;  %v3621_v38 = vshrl.u32 %v4667_v4, 16  ;;  %v4851_v57 = vld [vmem:[%s4917_s17 + $0x108] ss:$8 sps:$4 sm:$0xff]  }
 0x106   : > { %2496 = vst.msk [vmem:[#allocation2 + $0x50] sm:$0xff] %vm703_vm9, %v2487_v42  ;;  %v3624_v49 = vshll.u32 %v4667_v4, 16  ;;  %1250 = vrot.lane.b32.xlu0 %v4294_v27, %s4878_s21  ;;  %v3486_v39 = vrot.slane %v3485_v29, 4  ;;  %v3630_v36 = vshll.u32 %v4668_v13, 16  ;;  %v3635_v21 = vshrl.u32 %v4669_v14, 16 }
 0x107   : > { %v1396_v40 = vrot.slane %v1394_v31, 5  ;;  %v1384_v17 = vrot.slane %v1383_v34, 4  ;;  %v1402_v62 = vrot.slane %v1400_v35, 5  ;;  %v3623_v61 = vrot.slane %v3621_v38, 4  ;;  %v4336_v12 = vld [vmem:[%s4917_s17 + $0xfc] sm:$0x1] }
 0x108   : > { %v3626_v47 = vrot.slane %v3624_v49, 5  ;;  %v3491_v51 = vsel %vm4942_vm2, %v3486_v39, %v3490_v20  ;;  %v3632_v8 = vrot.slane %v3630_v36, 5  ;;  %v3637_v52 = vrot.slane %v3635_v21, 4  ;;  %v4337_v20 = vld [vmem:[%s4917_s17 + $0x100] sm:$0xf] }
 0x109   : > { %v5634_v32 = vpop.permute.xlu1 %1288  ;;  %v1397_v50 = vor.u32 %v1396_v40, %v1393_v25  ;;  %v4663_v54 = vcombine.low %v3477_v28, %v3491_v51  ;;  %v1389_v56 = vsel %vm4942_vm2, %v1384_v17, %v5628_v24  ;;  %v3638_v58 = vshll.u32 %v4669_v14, 16  ;;  %v4338_v25 = vld [vmem:[%s4917_s17 + $0x104] sm:$0x1]  ;;  %v4319_v31 = vld [vmem:[%s4917_s17 + $0xc0] sm:$0xf] }
 0x10a   : > { %v3627_v18 = vor.u32 %v3626_v47, %v3623_v61  ;;  %3434 = vrot.lane.b32.xlu0 %v4849_v33, %s4879_s22  ;;  %v3644_v60 = vshll.u32 %v4670_v41, 16  ;;  %v3493_v55 = vshrl.u32 %v4651_v43, 16  ;;  %v3496_v63 = vshll.u32 %v4651_v43, 16  ;;  %v4320_v39 = vld [vmem:[%s4917_s17 + $0xc4] sm:$0x1] }
 0x10b   : > { %v1398_v59 = vrot.slane %v1397_v50, 4  ;;  %3588 = vrot.lane.b32.xlu1 %v4663_v54, %s4881_s24  ;;  %v3640_v1 = vrot.slane %v3638_v58, 5  ;;  %v3502_v2 = vshll.u32 %v4652_v53, 16  ;;  %v3507_v3 = vshrl.u32 %v4653_v11, 16 }
 0x10c   : > { %v3628_v0 = vrot.slane %v3627_v18, 4  ;;  %v3646_v6 = vrot.slane %v3644_v60, 5  ;;  %v3495_v7 = vrot.slane %v3493_v55, 4  ;;  %v3498_v10 = vrot.slane %v3496_v63, 5  ;;  %v4672_v55 = vld [vmem:[%s4917_s17 + $0xf4] sm:$0x1] }
 0x10d   : > { %v2532_v37 = vpop.permute.xlu1 %2531  ;;  %v1403_v42 = vsel %vm4942_vm2, %v1398_v59, %v1402_v62  ;;  %v3641_v19 = vor.u32 %v3640_v1, %v3637_v52  ;;  %v3504_v16 = vrot.slane %v3502_v2, 5  ;;  %v3509_v23 = vrot.slane %v3507_v3, 4  ;;  %v4322_v52 = vld [vmem:[%s4917_s17 + $0xcc] sm:$0x1]  ;;  %v4673_v3 = vld [vmem:[%s4917_s17 + $0xf8] sm:$0xf] }
 0x10e   : > { %2541 = vst.msk [vmem:[#allocation2 + $0x50] sm:$0xff] %vm749_vm10, %v2532_v37  ;;  %v4325_v13 = vcombine.low %v1389_v56, %v1403_v42  ;;  %v3633_v14 = vsel %vm4942_vm2, %v3628_v0, %v3632_v8  ;;  %1294 = vrot.lane.b32.xlu0 %v4851_v57, %s4875_s18  ;;  %v3499_v22 = vor.u32 %v3498_v10, %v3495_v7  ;;  %v3510_v5 = vshll.u32 %v4653_v11, 16  ;;  %v4671_v11 = vld [vmem:[%s4917_s17 + $0xf0] sm:$0xf] }
 0x10f   : > { %v3516_v24 = vshll.u32 %v4654_v9, 16  ;;  %v3642_v26 = vrot.slane %v3641_v19, 4  ;;  %v1533_v27 = vshrl.u32 %v4335_v44, 16  ;;  %v1536_v28 = vshll.u32 %v4335_v44, 16 }
 0x110   : > { %1448 = vrot.lane.b32.xlu1 %v4325_v13, %s4877_s20  ;;  %v1542_v29 = vshll.u32 %v4336_v12, 16  ;;  %v3500_v34 = vrot.slane %v3499_v22, 4  ;;  %v3512_v35 = vrot.slane %v3510_v5, 5  ;;  %v1547_v49 = vshrl.u32 %v4337_v20, 16 }
 0x111   : > { %v2444_v45 = vpop.permute.xlu0 %2443  ;;  %v3518_v38 = vrot.slane %v3516_v24, 5  ;;  %v3647_v40 = vsel %vm4942_vm2, %v3642_v26, %v3646_v6  ;;  %v1535_v41 = vrot.slane %v1533_v27, 4  ;;  %v1538_v36 = vrot.slane %v1536_v28, 5 }
 0x112   : > { %2452 = vst.msk [vmem:[#allocation2 + $0x58] sm:$0xff] %vm657_vm8, %v2444_v45  ;;  %v1544_v21 = vrot.slane %v1542_v29, 5  ;;  %v4321_v45 = vld [vmem:[%s4917_s17 + $0xc8] sm:$0xf]  ;;  %v4683_v17 = vcombine.low %v3633_v14, %v3647_v40  ;;  %v3505_v62 = vsel %vm4942_vm2, %v3500_v34, %v3504_v16  ;;  %v3513_v61 = vor.u32 %v3512_v35, %v3509_v23  ;;  %v4674_v23 = vld [vmem:[%s4917_s17 + $0xfc] sm:$0x1] }
 0x113   : > { %v1549_v47 = vrot.slane %v1547_v49, 4  ;;  %v1539_v51 = vor.u32 %v1538_v36, %v1535_v41  ;;  %v1550_v50 = vshll.u32 %v4337_v20, 16  ;;  %v1556_v8 = vshll.u32 %v4338_v25, 16  ;;  %v4551_v29 = vld [vmem:[%s4917_s17 + $0xb0] sm:$0xf] }
 0x114   : > { %v5682_v43 = vpop.permute.xlu1 %1444  ;;  %v1405_v53 = vshrl.u32 %v4319_v31, 16  ;;  %3744 = vrot.lane.b32.xlu1 %v4683_v17, %s4882_s25  ;;  %v3514_v54 = vrot.slane %v3513_v61, 4  ;;  %v1408_v56 = vshll.u32 %v4319_v31, 16  ;;  %v1414_v57 = vshll.u32 %v4320_v39, 16  ;;  %v4553_v49 = vld [vmem:[%s4917_s17 + $0xb8] sm:$0xf] }
 0x115   : > { %v5663_v4 = vpop.permute.xlu0 %1246  ;;  %v1419_v18 = vshrl.u32 %v4321_v45, 16  ;;  %v1540_v58 = vrot.slane %v1539_v51, 4  ;;  %v1552_v59 = vrot.slane %v1550_v50, 5  ;;  %v1558_v60 = vrot.slane %v1556_v8, 5  ;;  %v4554_v17 = vld [vmem:[%s4917_s17 + $0xbc] sm:$0x1] }
 0x116   : > { %v1407_v9 = vrot.slane %v1405_v53, 4  ;;  %v3519_v63 = vsel %vm4942_vm2, %v3514_v54, %v3518_v38  ;;  %v1410_v0 = vrot.slane %v1408_v56, 5  ;;  %v1416_v1 = vrot.slane %v1414_v57, 5  ;;  %v4552_v38 = vld [vmem:[%s4917_s17 + $0xb4] sm:$0x1] }
 0x117   : > { %v1421_v2 = vrot.slane %v1419_v18, 4  ;;  %v4664_v42 = vcombine.low %v3505_v62, %v3519_v63  ;;  %v1545_v6 = vsel %vm4942_vm2, %v1540_v58, %v1544_v21  ;;  %v1553_v7 = vor.u32 %v1552_v59, %v1549_v47  ;;  %v4340_v57 = vld [vmem:[%s4917_s17 + $0x10c] sm:$0x1] }
 0x118   : > { %v1422_v10 = vshll.u32 %v4321_v45, 16  ;;  %v1411_v13 = vor.u32 %v1410_v0, %v1407_v9  ;;  %v1428_v14 = vshll.u32 %v4322_v52, 16  ;;  %v3649_v19 = vshrl.u32 %v4671_v11, 16  ;;  %v4339_v52 = vld [vmem:[%s4917_s17 + $0x108] sm:$0xf] }
 0x119   : > { %v2489_v33 = vpop.permute.xlu0 %2488  ;;  %v2688_v44 = vpop.permute.xlu1 %2687  ;;  %v3652_v16 = vshll.u32 %v4671_v11, 16  ;;  %3590 = vrot.lane.b32.xlu0 %v4664_v42, %s4881_s24  ;;  %v1554_v20 = vrot.slane %v1553_v7, 4  ;;  %v3658_v5 = vshll.u32 %v4672_v55, 16  ;;  %v3663_v24 = vshrl.u32 %v4673_v3, 16  ;;  %v4341_v55 = vld [vmem:[%s4917_s17 + $0x110] sm:$0xf] }
 0x11a   : > { %2497 = vst.msk [vmem:[#allocation2 + $0x58] sm:$0xff] %vm703_vm9, %v2489_v33  ;;  %v1424_v22 = vrot.slane %v1422_v10, 5  ;;  %v1412_v25 = vrot.slane %v1411_v13, 4  ;;  %v1430_v26 = vrot.slane %v1428_v14, 5  ;;  %v3651_v27 = vrot.slane %v3649_v19, 4 }
 0x11b   : > { %2697 = vst.msk [vmem:[#allocation2 + $0x50] sm:$0xff] %vm906_vm11, %v2688_v44  ;;  %v3654_v28 = vrot.slane %v3652_v16, 5  ;;  %v1559_v31 = vsel %vm4942_vm2, %v1554_v20, %v1558_v60  ;;  %v3660_v34 = vrot.slane %v3658_v5, 5  ;;  %v3665_v35 = vrot.slane %v3663_v24, 4  ;;  %v4342_v44 = vld [vmem:[%s4917_s17 + $0x114] sm:$0x1] }
 0x11c   : > { %v1425_v33 = vor.u32 %v1424_v22, %v1421_v2  ;;  %v4345_v39 = vcombine.low %v1545_v6, %v1559_v31  ;;  %v1417_v40 = vsel %vm4942_vm2, %v1412_v25, %v1416_v1  ;;  %v3666_v36 = vshll.u32 %v4673_v3, 16  ;;  %v4555_v42 = vld [vmem:[%s4917_s17 + $0xc0] sm:$0xf]  ;;  %v4556_v13 = vld [vmem:[%s4917_s17 + $0xc4] sm:$0x1] }
 0x11d   : > { %v5686_v37 = vpop.permute.xlu0 %1290  ;;  %v3655_v41 = vor.u32 %v3654_v28, %v3651_v27  ;;  %v3672_v45 = vshll.u32 %v4674_v23, 16  ;;  %v2809_v62 = vshrl.u32 %v4551_v29, 16  ;;  %v2812_v61 = vshll.u32 %v4551_v29, 16  ;;  %v4855_v22 = vld [vmem:[%s4917_s17 + $0x48] ss:$8 sps:$4 sm:$0xff]  }
 0x11e   : > { %v1426_v21 = vrot.slane %v1425_v33, 4  ;;  %1604 = vrot.lane.b32.xlu1 %v4345_v39, %s4880_s23  ;;  %v3668_v51 = vrot.slane %v3666_v36, 5  ;;  %v2818_v50 = vshll.u32 %v4552_v38, 16  ;;  %v2823_v8 = vshrl.u32 %v4553_v49, 16  ;;  %v4853_v33 = vld [vmem:[%s4917_s17 + $0x70] ss:$8 sps:$4 sm:$0xff]  }
 0x11f   : > { %v3656_v47 = vrot.slane %v3655_v41, 4  ;;  %v3674_v11 = vrot.slane %v3672_v45, 5  ;;  %v2811_v54 = vrot.slane %v2809_v62, 4  ;;  %v2814_v56 = vrot.slane %v2812_v61, 5  ;;  %944 = vst.msk [vmem:[#allocation2 + $0x20] sm:$0xff] %vm202_vm3, %v4855_v22 }
 0x120   : > { %v1431_v53 = vsel %vm4942_vm2, %v1426_v21, %v1430_v26  ;;  %v3669_v60 = vor.u32 %v3668_v51, %v3665_v35  ;;  %v2820_v9 = vrot.slane %v2818_v50, 5  ;;  %v1601_v63 = vpop.permute.xlu1 %1600  ;;  %v2825_v1 = vrot.slane %v2823_v8, 4  ;;  %v4557_v26 = vld [vmem:[%s4917_s17 + $0xc8] sm:$0xf]  ;;  %v4558_v39 = vld [vmem:[%s4917_s17 + $0xcc] sm:$0x1] }
 0x121   : > { %v2534_v12 = vpop.permute.xlu0 %2533  ;;  %v4326_v58 = vcombine.low %v1417_v40, %v1431_v53  ;;  %v3661_v59 = vsel %vm4942_vm2, %v3656_v47, %v3660_v34  ;;  %v2815_v0 = vor.u32 %v2814_v56, %v2811_v54  ;;  %v2826_v2 = vshll.u32 %v4553_v49, 16  ;;  %v4571_v41 = vld [vmem:[%s4917_s17 + $0xf8] sm:$0xf]  ;;  %1100 = vst.msk [vmem:[#allocation2 + $0x20] sm:$0xff] %vm248_vm4, %v5563_v46  ;;  %v4572_v61 = vld [vmem:[%s4917_s17 + $0xfc] sm:$0x1] }
 0x122   : > { %2542 = vst.msk [vmem:[#allocation2 + $0x58] sm:$0xff] %vm749_vm10, %v2534_v12  ;;  %v3770_v18 = vld [vmem:[#allocation2 + $0x50] sm:$0xff]  ;;  %v2832_v3 = vshll.u32 %v4554_v17, 16  ;;  %v3670_v6 = vrot.slane %v3669_v60, 4  ;;  %v1561_v7 = vshrl.u32 %v4339_v52, 16  ;;  %v1564_v10 = vshll.u32 %v4339_v52, 16 }
 0x123   : > { %4754 = vmatprep.mubr.msk.bf16.mxu1 %vm3796_vm12, %v3770_v18  ;;  %1450 = vrot.lane.b32.xlu0 %v4326_v58, %s4877_s20  ;;  %v1570_v12 = vshll.u32 %v4340_v57, 16  ;;  %v2816_v14 = vrot.slane %v2815_v0, 4  ;;  %v2828_v19 = vrot.slane %v2826_v2, 5  ;;  %v1575_v20 = vshrl.u32 %v4341_v55, 16  ;;  %1256 = vst.msk [vmem:[#allocation2 + $0x20] sm:$0xff] %vm408_vm5, %v5607_v48 }
 0x124   : > { %v2834_v16 = vrot.slane %v2832_v3, 5  ;;  %v3675_v23 = vsel %vm4942_vm2, %v3670_v6, %v3674_v11  ;;  %v1563_v5 = vrot.slane %v1561_v7, 4  ;;  %v1566_v24 = vrot.slane %v1564_v10, 5  ;;  %1300 = vst.msk [vmem:[#allocation2 + $0x20] sm:$0xff] %vm454_vm6, %v5634_v32  ;;  %v4573_v54 = vld [vmem:[%s4917_s17 + $0x100] sm:$0xf] }
 0x125   : > { %v5723_v25 = vrot.slane %v1570_v12, 5  ;;  %v4684_v27 = vcombine.low %v3661_v59, %v3675_v23  ;;  %v2821_v28 = vsel %vm4942_vm2, %v2816_v14, %v2820_v9  ;;  %v2829_v29 = vor.u32 %v2828_v19, %v2825_v1  ;;  %v5730_v34 = vpop.permute.xlu0 %1446  ;;  %1456 = vst.msk [vmem:[#allocation2 + $0x20] sm:$0xff] %vm500_vm7, %v5682_v43  ;;  %v4574_v1 = vld [vmem:[%s4917_s17 + $0x104] sm:$0x1]  ;;  %v4367_v7 = vld [vmem:[%s4917_s17 + $0x28] sm:$0xf] }
 0x126   : > { %v1577_v31 = vrot.slane %v1575_v20, 4  ;;  %v1567_v35 = vor.u32 %v1566_v24, %v1563_v5  ;;  %v1578_v38 = vshll.u32 %v4341_v55, 16  ;;  %v1584_v49 = vshll.u32 %v4342_v44, 16  ;;  %1612 = vst.msk [vmem:[#allocation2 + $0x20] sm:$0xff] %vm657_vm8, %v1601_v63  ;;  %v4368_v19 = vld [vmem:[%s4917_s17 + $0x2c] sm:$0x1] }
 0x127   : > { %v2837_v40 = vshrl.u32 %v4555_v42, 16  ;;  %3746 = vrot.lane.b32.xlu1 %v4684_v27, %s4882_s25  ;;  %v2830_v21 = vrot.slane %v2829_v29, 4  ;;  %v2840_v45 = vshll.u32 %v4555_v42, 16  ;;  %v2846_v17 = vshll.u32 %v4556_v13, 16  ;;  %v4370_v24 = vld [vmem:[%s4917_s17 + $0x34] sm:$0x1] }
 0x128   : > { %v2851_v62 = vshrl.u32 %v4557_v26, 16  ;;  %v1568_v47 = vrot.slane %v1567_v35, 4  ;;  %v1580_v51 = vrot.slane %v1578_v38, 5  ;;  %v1586_v50 = vrot.slane %v1584_v49, 5  ;;  %v4575_v29 = vld [vmem:[%s4917_s17 + $0x108] sm:$0xf] }
 0x129   : > { %v2839_v8 = vrot.slane %v2837_v40, 4  ;;  %v2835_v46 = vsel %vm4942_vm2, %v2830_v21, %v2834_v16  ;;  %v2842_v52 = vrot.slane %v2840_v45, 5  ;;  %v2848_v53 = vrot.slane %v2846_v17, 5  ;;  %v4369_v16 = vld [vmem:[%s4917_s17 + $0x30] sm:$0xf] }
 0x12a   : > { %v2853_v11 = vrot.slane %v2851_v62, 4  ;;  %v4561_v56 = vcombine.low %v2821_v28, %v2835_v46  ;;  %v1573_v48 = vsel %vm4942_vm2, %v1568_v47, %v5723_v25  ;;  %v1581_v57 = vor.u32 %v1580_v51, %v1577_v31  ;;  %v4576_v31 = vld [vmem:[%s4917_s17 + $0x10c] sm:$0x1]  ;;  %v4854_v47 = vld [vmem:[%s4917_s17 + $0x80] ss:$8 sps:$4 sm:$0xff]  }
 0x12b   : > { %v5736_v36 = vpop.permute.xlu1 %2876  ;;  %v2854_v18 = vshll.u32 %v4557_v26, 16  ;;  %1648 = vrot.lane.b32.xlu1 %v4853_v33, %s4879_s22  ;;  %v2843_v58 = vor.u32 %v2842_v52, %v2839_v8  ;;  %v2860_v59 = vshll.u32 %v4558_v39, 16  ;;  %v2965_v60 = vshrl.u32 %v4571_v41, 16  ;;  %v4857_v39 = vld [vmem:[%s4917_s17 + $0x58] ss:$8 sps:$4 sm:$0xff]  }
 0x12c   : > { %v2968_v9 = vshll.u32 %v4571_v41, 16  ;;  %v2690_v55 = vpop.permute.xlu0 %2689  ;;  %2880 = vrot.lane.b32.xlu0 %v4561_v56, %s4876_s19  ;;  %v1582_v43 = vrot.slane %v1581_v57, 4  ;;  %v2974_v2 = vshll.u32 %v4572_v61, 16  ;;  %v2979_v63 = vshrl.u32 %v4573_v54, 16  ;;  %945 = vst.msk [vmem:[#allocation2 + $0x28] sm:$0xff] %vm202_vm3, %v4857_v39 }
 0x12d   : > { %v2856_v0 = vrot.slane %v2854_v18, 5  ;;  %2698 = vst.msk [vmem:[#allocation2 + $0x58] sm:$0xff] %vm906_vm11, %v2690_v55  ;;  %v2844_v3 = vrot.slane %v2843_v58, 4  ;;  %v2862_v44 = vrot.slane %v2860_v59, 5  ;;  %v2967_v42 = vrot.slane %v2965_v60, 4 }
 0x12e   : > { %v2970_v6 = vrot.slane %v2968_v9, 5  ;;  %v1587_v10 = vsel %vm4942_vm2, %v1582_v43, %v1586_v50  ;;  %v2976_v13 = vrot.slane %v2974_v2, 5  ;;  %v2981_v14 = vrot.slane %v2979_v63, 4  ;;  %v4577_v50 = vld [vmem:[%s4917_s17 + $0x110] sm:$0xf]  ;;  %1101 = vst.msk [vmem:[#allocation2 + $0x28] sm:$0xff] %vm248_vm4, %v5623_v15 }
 0x12f   : > { %v1645_v32 = vpop.permute.xlu1 %1644  ;;  %v2857_v12 = vor.u32 %v2856_v0, %v2853_v11  ;;  %v4346_v20 = vcombine.low %v1573_v48, %v1587_v10  ;;  %v2849_v22 = vsel %vm4942_vm2, %v2844_v3, %v2848_v53  ;;  %v2982_v5 = vshll.u32 %v4573_v54, 16  ;;  %v4578_v54 = vld [vmem:[%s4917_s17 + $0x114] sm:$0x1]  ;;  %v4371_v58 = vld [vmem:[%s4917_s17 + $0x38] sm:$0xf]  ;;  %1257 = vst.msk [vmem:[#allocation2 + $0x28] sm:$0xff] %vm408_vm5, %v5663_v4 }
 0x130   : > { %1656 = vst.msk [vmem:[#allocation2 + $0x20] sm:$0xff] %vm703_vm9, %v1645_v32  ;;  %v2971_v23 = vor.u32 %v2970_v6, %v2967_v42  ;;  %v2988_v26 = vshll.u32 %v4574_v1, 16  ;;  %v1733_v27 = vshrl.u32 %v4367_v7, 16  ;;  %v1736_v28 = vshll.u32 %v4367_v7, 16  ;;  %v4372_v43 = vld [vmem:[%s4917_s17 + $0x3c] sm:$0x1] }
 0x131   : > { %v2858_v25 = vrot.slane %v2857_v12, 4  ;;  %1606 = vrot.lane.b32.xlu0 %v4346_v20, %s4880_s23  ;;  %v2984_v35 = vrot.slane %v2982_v5, 5  ;;  %v1742_v38 = vshll.u32 %v4368_v19, 16  ;;  %v1747_v49 = vshrl.u32 %v4369_v16, 16  ;;  %1301 = vst.msk [vmem:[#allocation2 + $0x28] sm:$0xff] %vm454_vm6, %v5686_v37 }
 0x132   : > { %v2972_v33 = vrot.slane %v2971_v23, 4  ;;  %v2990_v41 = vrot.slane %v2988_v26, 5  ;;  %v1735_v21 = vrot.slane %v1733_v27, 4  ;;  %v1738_v45 = vrot.slane %v1736_v28, 5  ;;  %v4373_v63 = vld [vmem:[%s4917_s17 + $0x40] sm:$0xf] }
 0x133   : > { %v2863_v40 = vsel %vm4942_vm2, %v2858_v25, %v2862_v44  ;;  %v2985_v61 = vor.u32 %v2984_v35, %v2981_v14  ;;  %v1744_v51 = vrot.slane %v1742_v38, 5  ;;  %v1749_v52 = vrot.slane %v1747_v49, 4  ;;  %1457 = vst.msk [vmem:[#allocation2 + $0x28] sm:$0xff] %vm500_vm7, %v5730_v34  ;;  %v4374_v10 = vld [vmem:[%s4917_s17 + $0x44] sm:$0x1] }
 0x134   : > { %v4562_v17 = vcombine.low %v2849_v22, %v2863_v40  ;;  %v2977_v62 = vsel %vm4942_vm2, %v2972_v33, %v2976_v13  ;;  %v3771_v8 = vld [vmem:[#allocation2 + $0x58] sm:$0xff]  ;;  %v1739_v46 = vor.u32 %v1738_v45, %v1735_v21  ;;  %v1750_v53 = vshll.u32 %v4369_v16, 16  ;;  %v4387_v20 = vld [vmem:[%s4917_s17 + $0x70] sm:$0xf]  ;;  %v4388_v26 = vld [vmem:[%s4917_s17 + $0x74] sm:$0x1] }
 0x135   : > { %v1756_v11 = vshll.u32 %v4370_v24, 16  ;;  %v1603_v56 = vpop.permute.xlu0 %1602  ;;  %4755 = vmatmul.mubr.msk.bf16.gmra.mrb[4].mxu1 %vm3796_vm12, %v3771_v8  ;;  %v2986_v48 = vrot.slane %v2985_v61, 4  ;;  %v2993_v57 = vshrl.u32 %v4575_v29, 16  ;;  %v2996_v18 = vshll.u32 %v4575_v29, 16  ;;  %v4389_v33 = vld [vmem:[%s4917_s17 + $0x78] sm:$0xf] }
 0x136   : > { %2882 = vrot.lane.b32.xlu0 %v4562_v17, %s4876_s19  ;;  %v3002_v32 = vshll.u32 %v4576_v31, 16  ;;  %v1740_v59 = vrot.slane %v1739_v46, 4  ;;  %v1752_v60 = vrot.slane %v1750_v53, 5  ;;  %v3007_v55 = vshrl.u32 %v4577_v50, 16  ;;  %1613 = vst.msk [vmem:[#allocation2 + $0x28] sm:$0xff] %vm657_vm8, %v1603_v56 }
 0x137   : > { %v1758_v9 = vrot.slane %v1756_v11, 5  ;;  %v2991_v15 = vsel %vm4942_vm2, %v2986_v48, %v2990_v41  ;;  %v2995_v0 = vrot.slane %v2993_v57, 4  ;;  %v2998_v1 = vrot.slane %v2996_v18, 5  ;;  %v4856_v40 = vld [vmem:[%s4917_s17 + $0x70] ss:$8 sps:$4 sm:$0xff]  }
 0x138   : > { %v5790_v2 = vrot.slane %v3002_v32, 5  ;;  %v4581_v4 = vcombine.low %v2977_v62, %v2991_v15  ;;  %v1745_v3 = vsel %vm4942_vm2, %v1740_v59, %v1744_v51  ;;  %v1753_v44 = vor.u32 %v1752_v60, %v1749_v52  ;;  %v4390_v51 = vld [vmem:[%s4917_s17 + $0x7c] sm:$0x1]  ;;  %v4603_v56 = vld [vmem:[%s4917_s17 + $0x28] sm:$0xf] }
 0x139   : > { %v3009_v42 = vrot.slane %v3007_v55, 4  ;;  %v2999_v37 = vor.u32 %v2998_v1, %v2995_v0  ;;  %v3010_v6 = vshll.u32 %v4577_v50, 16  ;;  %v3016_v7 = vshll.u32 %v4578_v54, 16  ;;  %v4605_v59 = vld [vmem:[%s4917_s17 + $0x30] sm:$0xf] }
 0x13a   : > { %1650 = vrot.lane.b32.xlu0 %v4854_v47, %s4879_s22  ;;  %v1761_v12 = vshrl.u32 %v4371_v58, 16  ;;  %v5800_v13 = vpop.permute.xlu1 %3032  ;;  %3036 = vrot.lane.b32.xlu1 %v4581_v4, %s4878_s21  ;;  %v1754_v34 = vrot.slane %v1753_v44, 4  ;;  %v1764_v14 = vshll.u32 %v4371_v58, 16  ;;  %v1770_v19 = vshll.u32 %v4372_v43, 16  ;;  %v4604_v58 = vld [vmem:[%s4917_s17 + $0x2c] sm:$0x1] }
 0x13b   : > { %v1775_v16 = vshrl.u32 %v4373_v63, 16  ;;  %v5804_v22 = vpop.permute.xlu0 %2878  ;;  %v3000_v23 = vrot.slane %v2999_v37, 4  ;;  %v3012_v5 = vrot.slane %v3010_v6, 5  ;;  %v3018_v24 = vrot.slane %v3016_v7, 5  ;;  %v4606_v15 = vld [vmem:[%s4917_s17 + $0x34] sm:$0x1] }
 0x13c   : > { %v1763_v25 = vrot.slane %v1761_v12, 4  ;;  %v1759_v27 = vsel %vm4942_vm2, %v1754_v34, %v1758_v9  ;;  %v1766_v28 = vrot.slane %v1764_v14, 5  ;;  %v1772_v29 = vrot.slane %v1770_v19, 5  ;;  %v4391_v4 = vld [vmem:[%s4917_s17 + $0x80] sm:$0xf] }
 0x13d   : > { %v1777_v31 = vrot.slane %v1775_v16, 4  ;;  %v4377_v35 = vcombine.low %v1745_v3, %v1759_v27  ;;  %v3005_v38 = vsel %vm4942_vm2, %v3000_v23, %v5790_v2  ;;  %v3013_v49 = vor.u32 %v3012_v5, %v3009_v42  ;;  %v4392_v3 = vld [vmem:[%s4917_s17 + $0x84] sm:$0x1]  ;;  %v4858_v23 = vld [vmem:[%s4917_s17 + $0x80] ss:$8 sps:$4 sm:$0xff]  }
 0x13e   : > { %v1778_v39 = vshll.u32 %v4373_v63, 16  ;;  %v1767_v41 = vor.u32 %v1766_v28, %v1763_v25  ;;  %v1784_v21 = vshll.u32 %v4374_v10, 16  ;;  %v1889_v45 = vshrl.u32 %v4387_v20, 16 }
 0x13f   : > { %v1892_v17 = vshll.u32 %v4387_v20, 16  ;;  %v1647_v62 = vpop.permute.xlu0 %1646  ;;  %1804 = vrot.lane.b32.xlu1 %v4377_v35, %s4881_s24  ;;  %v3014_v61 = vrot.slane %v3013_v49, 4  ;;  %v1898_v50 = vshll.u32 %v4388_v26, 16  ;;  %v1903_v8 = vshrl.u32 %v4389_v33, 16  ;;  %v1801_v46 = vpop.permute.xlu1 %1800 }
 0x140   : > { %v1780_v47 = vrot.slane %v1778_v39, 5  ;;  %1657 = vst.msk [vmem:[#allocation2 + $0x28] sm:$0xff] %vm703_vm9, %v1647_v62  ;;  %v1768_v52 = vrot.slane %v1767_v41, 4  ;;  %v1786_v53 = vrot.slane %v1784_v21, 5  ;;  %v1891_v11 = vrot.slane %v1889_v45, 4 }
 0x141   : > { %v1894_v54 = vrot.slane %v1892_v17, 5  ;;  %1812 = vst.msk [vmem:[#allocation2 + $0x20] sm:$0xff] %vm749_vm10, %v1801_v46  ;;  %v3019_v48 = vsel %vm4942_vm2, %v3014_v61, %v3018_v24  ;;  %v1900_v18 = vrot.slane %v1898_v50, 5  ;;  %v1905_v32 = vrot.slane %v1903_v8, 4  ;;  %v4393_v24 = vld [vmem:[%s4917_s17 + $0x88] sm:$0xf] }
 0x142   : > { %v1781_v57 = vor.u32 %v1780_v47, %v1777_v31  ;;  %v4582_v60 = vcombine.low %v3005_v38, %v3019_v48  ;;  %v1773_v9 = vsel %vm4942_vm2, %v1768_v52, %v1772_v29  ;;  %v1906_v43 = vshll.u32 %v4389_v33, 16  ;;  %v4394_v29 = vld [vmem:[%s4917_s17 + $0x8c] sm:$0x1]  ;;  %v4607_v39 = vld [vmem:[%s4917_s17 + $0x38] sm:$0xf] }
 0x143   : > { %v1895_v55 = vor.u32 %v1894_v54, %v1891_v11  ;;  %3080 = vrot.lane.b32.xlu1 %v4856_v40, %s4875_s18  ;;  %v1912_v1 = vshll.u32 %v4390_v51, 16  ;;  %v3165_v2 = vshrl.u32 %v4603_v56, 16  ;;  %v3168_v63 = vshll.u32 %v4603_v56, 16  ;;  %v5829_v44 = vpop.permute.xlu1 %3076  ;;  %v4608_v62 = vld [vmem:[%s4917_s17 + $0x3c] sm:$0x1] }
 0x144   : > { %v1782_v0 = vrot.slane %v1781_v57, 4  ;;  %3038 = vrot.lane.b32.xlu0 %v4582_v60, %s4878_s21  ;;  %v1908_v37 = vrot.slane %v1906_v43, 5  ;;  %v3174_v6 = vshll.u32 %v4604_v58, 16  ;;  %v3179_v7 = vshrl.u32 %v4605_v59, 16  ;;  %v5839_v31 = vpop.permute.xlu0 %3034  ;;  %v4609_v8 = vld [vmem:[%s4917_s17 + $0x40] sm:$0xf] }
 0x145   : > { %v1896_v42 = vrot.slane %v1895_v55, 4  ;;  %v1914_v12 = vrot.slane %v1912_v1, 5  ;;  %v3167_v34 = vrot.slane %v3165_v2, 4  ;;  %v3170_v14 = vrot.slane %v3168_v63, 5  ;;  %v4610_v57 = vld [vmem:[%s4917_s17 + $0x44] sm:$0x1] }
 0x146   : > { %v1787_v10 = vsel %vm4942_vm2, %v1782_v0, %v1786_v53  ;;  %v1909_v20 = vor.u32 %v1908_v37, %v1905_v32  ;;  %v3176_v5 = vrot.slane %v3174_v6, 5  ;;  %v3181_v26 = vrot.slane %v3179_v7, 4  ;;  %v4624_v2 = vld [vmem:[%s4917_s17 + $0x74] sm:$0x1]  ;;  %v4625_v37 = vld [vmem:[%s4917_s17 + $0x78] sm:$0xf] }
 0x147   : > { %v4378_v19 = vcombine.low %v1773_v9, %v1787_v10  ;;  %v1901_v16 = vsel %vm4942_vm2, %v1896_v42, %v1900_v18  ;;  %v3171_v25 = vor.u32 %v3170_v14, %v3167_v34  ;;  %v3182_v27 = vshll.u32 %v4605_v59, 16  ;;  %v4623_v9 = vld [vmem:[%s4917_s17 + $0x70] sm:$0xf] }
 0x148   : > { %v3188_v28 = vshll.u32 %v4606_v15, 16  ;;  %v1910_v33 = vrot.slane %v1909_v20, 4  ;;  %v1917_v35 = vshrl.u32 %v4391_v4, 16  ;;  %v1920_v38 = vshll.u32 %v4391_v4, 16 }
 0x149   : > { %1806 = vrot.lane.b32.xlu0 %v4378_v19, %s4881_s24  ;;  %v1926_v49 = vshll.u32 %v4392_v3, 16  ;;  %v3172_v41 = vrot.slane %v3171_v25, 4  ;;  %v3184_v21 = vrot.slane %v3182_v27, 5  ;;  %v1931_v17 = vshrl.u32 %v4393_v24, 16 }
 0x14a   : > { %v3190_v45 = vrot.slane %v3188_v28, 5  ;;  %v1915_v61 = vsel %vm4942_vm2, %v1910_v33, %v1914_v12  ;;  %v1919_v47 = vrot.slane %v1917_v35, 4  ;;  %v1922_v51 = vrot.slane %v1920_v38, 5  ;;  %v4627_v38 = vld [vmem:[%s4917_s17 + $0x80] sm:$0xf] }
 0x14b   : > { %v1957_v40 = vpop.permute.xlu1 %1956  ;;  %v1928_v50 = vrot.slane %v1926_v49, 5  ;;  %v4397_v46 = vcombine.low %v1901_v16, %v1915_v61  ;;  %v3177_v52 = vsel %vm4942_vm2, %v3172_v41, %v3176_v5  ;;  %v3185_v53 = vor.u32 %v3184_v21, %v3181_v26  ;;  %v4628_v21 = vld [vmem:[%s4917_s17 + $0x84] sm:$0x1] }
 0x14c   : > { %1968 = vst.msk [vmem:[#allocation2 + $0x20] sm:$0xff] %vm906_vm11, %v1957_v40  ;;  %v1933_v11 = vrot.slane %v1931_v17, 4  ;;  %v1923_v54 = vor.u32 %v1922_v51, %v1919_v47  ;;  %v1934_v56 = vshll.u32 %v4393_v24, 16  ;;  %v1940_v48 = vshll.u32 %v4394_v29, 16  ;;  %v4626_v24 = vld [vmem:[%s4917_s17 + $0x7c] sm:$0x1] }
 0x14d   : > { %3082 = vrot.lane.b32.xlu0 %v4858_v23, %s4875_s18  ;;  %v3193_v18 = vshrl.u32 %v4607_v39, 16  ;;  %1960 = vrot.lane.b32.xlu1 %v4397_v46, %s4882_s25  ;;  %v3186_v32 = vrot.slane %v3185_v53, 4  ;;  %v3196_v58 = vshll.u32 %v4607_v39, 16  ;;  %v3202_v59 = vshll.u32 %v4608_v62, 16  ;;  %v4630_v51 = vld [vmem:[%s4917_s17 + $0x8c] sm:$0x1] }
 0x14e   : > { %v3207_v60 = vshrl.u32 %v4609_v8, 16  ;;  %v1924_v43 = vrot.slane %v1923_v54, 4  ;;  %v1936_v15 = vrot.slane %v1934_v56, 5  ;;  %v1942_v0 = vrot.slane %v1940_v48, 5  ;;  %v4655_v53 = vld [vmem:[%s4917_s17 + $0xb8] sm:$0xf] }
 0x14f   : > { %v3195_v1 = vrot.slane %v3193_v18, 4  ;;  %v3191_v63 = vsel %vm4942_vm2, %v3186_v32, %v3190_v45  ;;  %v3198_v4 = vrot.slane %v3196_v58, 5  ;;  %v3204_v3 = vrot.slane %v3202_v59, 5  ;;  %v4629_v45 = vld [vmem:[%s4917_s17 + $0x88] sm:$0xf] }
 0x150   : > { %v3209_v42 = vrot.slane %v3207_v60, 4  ;;  %v4613_v6 = vcombine.low %v3177_v52, %v3191_v63  ;;  %v1929_v7 = vsel %vm4942_vm2, %v1924_v43, %v1928_v50  ;;  %v1937_v10 = vor.u32 %v1936_v15, %v1933_v11  ;;  %v5879_v18 = vld [vmem:[%s4917_s17 + $0xbc] sm:$0x1]  ;;  %v4861_v32 = vld [vmem:[%s4917_s17 + $0xd8] ss:$8 sps:$4 sm:$0xff]  }
 0x151   : > { %v1803_v55 = vpop.permute.xlu0 %1802  ;;  %v3210_v12 = vshll.u32 %v4609_v8, 16  ;;  %v3199_v14 = vor.u32 %v3198_v4, %v3195_v1  ;;  %v3216_v19 = vshll.u32 %v4610_v57, 16  ;;  %v3321_v16 = vshrl.u32 %v4623_v9, 16  ;;  %2732 = vst.msk [vmem:[#allocation2 + $0x60] sm:$0xff] %vm202_vm3, %v4861_v32 }
 0x152   : > { %1813 = vst.msk [vmem:[#allocation2 + $0x28] sm:$0xff] %vm749_vm10, %v1803_v55  ;;  %v3324_v20 = vshll.u32 %v4623_v9, 16  ;;  %3236 = vrot.lane.b32.xlu1 %v4613_v6, %s4877_s20  ;;  %v1938_v23 = vrot.slane %v1937_v10, 4  ;;  %v3330_v25 = vshll.u32 %v4624_v2, 16  ;;  %v3335_v26 = vshrl.u32 %v4625_v37, 16 }
 0x153   : > { %v3764_v34 = vld [vmem:[#allocation2 + $0x20] sm:$0xff]  ;;  %v3212_v5 = vrot.slane %v3210_v12, 5  ;;  %v3200_v28 = vrot.slane %v3199_v14, 4  ;;  %v3218_v29 = vrot.slane %v3216_v19, 5  ;;  %v3323_v33 = vrot.slane %v3321_v16, 4  ;;  %2888 = vst.msk [vmem:[#allocation2 + $0x60] sm:$0xff] %vm248_vm4, %v5736_v36 }
 0x154   : > { %4742 = vmatprep.mubr.msk.bf16.mxu0 %vm3796_vm12, %v3764_v34  ;;  %v3326_v35 = vrot.slane %v3324_v20, 5  ;;  %v1943_v49 = vsel %vm4942_vm2, %v1938_v23, %v1942_v0  ;;  %v5869_v40 = vrot.slane %v3330_v25, 5  ;;  %v3337_v41 = vrot.slane %v3335_v26, 4  ;;  %v5885_v55 = vld [vmem:[%s4917_s17 + $0xc0] sm:$0xf]  ;;  %3044 = vst.msk [vmem:[#allocation2 + $0x60] sm:$0xff] %vm408_vm5, %v5800_v13 }
 0x155   : > { %v3213_v39 = vor.u32 %v3212_v5, %v3209_v42  ;;  %v4398_v17 = vcombine.low %v1929_v7, %v1943_v49  ;;  %v3205_v62 = vsel %vm4942_vm2, %v3200_v28, %v3204_v3  ;;  %v3338_v47 = vshll.u32 %v4625_v37, 16  ;;  %v3079_v11 = vpop.permute.xlu0 %3078  ;;  %v4862_v2 = vld [vmem:[%s4917_s17 + $0xe8] ss:$8 sps:$4 sm:$0xff]   ;;  %v4658_v37 = vld [vmem:[%s4917_s17 + $0xc4] sm:$0x1]  ;;  %3088 = vst.msk [vmem:[#allocation2 + $0x60] sm:$0xff] %vm454_vm6, %v5829_v44 }
 0x156   : > { %v5864_v27 = vpop.permute.xlu1 %3232  ;;  %v3327_v61 = vor.u32 %v3326_v35, %v3323_v33  ;;  %v3344_v8 = vshll.u32 %v4626_v24, 16  ;;  %v3349_v46 = vshrl.u32 %v4627_v38, 16  ;;  %v3352_v52 = vshll.u32 %v4627_v38, 16  ;;  %v4659_v6 = vld [vmem:[%s4917_s17 + $0xc8] sm:$0xf]  ;;  %2733 = vst.msk [vmem:[#allocation2 + $0x68] sm:$0xff] %vm202_vm3, %v4862_v2 }
 0x157   : > { %v3214_v50 = vrot.slane %v3213_v39, 4  ;;  %1962 = vrot.lane.b32.xlu0 %v4398_v17, %s4882_s25  ;;  %v3340_v56 = vrot.slane %v3338_v47, 5  ;;  %v3358_v48 = vshll.u32 %v4628_v21, 16  ;;  %v3363_v57 = vshrl.u32 %v4629_v45, 16  ;;  %v4660_v14 = vld [vmem:[%s4917_s17 + $0xcc] sm:$0x1] }
 0x158   : > { %v3328_v54 = vrot.slane %v3327_v61, 4  ;;  %v3351_v60 = vrot.slane %v3349_v46, 4  ;;  %v3354_v9 = vrot.slane %v3352_v52, 5  ;;  %v3346_v0 = vrot.slane %v3344_v8, 5  ;;  %v5902_v19 = vld [vmem:[%s4917_s17 + $0xd0] sm:$0xf] }
 0x159   : > { %v3219_v59 = vsel %vm4942_vm2, %v3214_v50, %v3218_v29  ;;  %v3341_v15 = vor.u32 %v3340_v56, %v3337_v41  ;;  %v5888_v1 = vrot.slane %v3358_v48, 5  ;;  %v3365_v4 = vrot.slane %v3363_v57, 4  ;;  %2889 = vst.msk [vmem:[#allocation2 + $0x68] sm:$0xff] %vm248_vm4, %v5804_v22  ;;  %v4863_v5 = vld [vmem:[%s4917_s17 + $0x68] ss:$8 sps:$4 sm:$0xff]  }
 0x15a   : > { %v4614_v43 = vcombine.low %v3205_v62, %v3219_v59  ;;  %v3355_v63 = vor.u32 %v3354_v9, %v3351_v60  ;;  %v3366_v3 = vshll.u32 %v4629_v45, 16  ;;  %v3372_v42 = vshll.u32 %v4630_v51, 16  ;;  %v1093_v24 = vpop.permute.xlu0 %1092  ;;  %3045 = vst.msk [vmem:[#allocation2 + $0x68] sm:$0xff] %vm408_vm5, %v5839_v31  ;;  %v4859_v33 = vld [vmem:[%s4917_s17 + $0x100] ss:$8 sps:$4 sm:$0xff]  }
 0x15b   : > { %v1959_v58 = vpop.permute.xlu1 %1958  ;;  %v3333_v7 = vsel %vm4942_vm2, %v3328_v54, %v5869_v40  ;;  %v3342_v10 = vrot.slane %v3341_v15, 4  ;;  %v3521_v12 = vshrl.u32 %v4655_v53, 16  ;;  %v3524_v34 = vshll.u32 %v4655_v53, 16  ;;  %3244 = vst.msk [vmem:[#allocation2 + $0x60] sm:$0xff] %vm500_vm7, %v5864_v27  ;;  %v4864_v38 = vld [vmem:[%s4917_s17 + $0x78] ss:$8 sps:$4 sm:$0xff]  }
 0x15c   : > { %1969 = vst.msk [vmem:[#allocation2 + $0x28] sm:$0xff] %vm906_vm11, %v1959_v58  ;;  %3238 = vrot.lane.b32.xlu1 %v4614_v43, %s4877_s20  ;;  %v3356_v16 = vrot.slane %v3355_v63, 4  ;;  %v3368_v36 = vrot.slane %v3366_v3, 5  ;;  %v3530_v20 = vshll.u32 %v5879_v18, 16  ;;  %v3535_v23 = vshrl.u32 %v5885_v55, 16 }
 0x15d   : > { %v3347_v13 = vsel %vm4942_vm2, %v3342_v10, %v3346_v0  ;;  %v3374_v25 = vrot.slane %v3372_v42, 5  ;;  %v3523_v26 = vrot.slane %v3521_v12, 4  ;;  %v3526_v28 = vrot.slane %v3524_v34, 5  ;;  %3089 = vst.msk [vmem:[#allocation2 + $0x68] sm:$0xff] %vm454_vm6, %v3079_v11  ;;  %v4662_v40 = vld [vmem:[%s4917_s17 + $0xd4] sm:$0x1] }
 0x15e   : > { %v4633_v22 = vcombine.low %v3333_v7, %v3347_v13  ;;  %v3361_v44 = vsel %vm4942_vm2, %v3356_v16, %v5888_v1  ;;  %v3369_v29 = vor.u32 %v3368_v36, %v3365_v4  ;;  %v3537_v35 = vrot.slane %v3535_v23, 4  ;;  %946 = vst.msk [vmem:[#allocation2 + $0x30] sm:$0xff] %vm202_vm3, %v4863_v5  ;;  %v4675_v41 = vld [vmem:[%s4917_s17 + $0x100] sm:$0xf]  ;;  %v4677_v47 = vld [vmem:[%s4917_s17 + $0x108] sm:$0xf] }
 0x15f   : > { %v3527_v49 = vor.u32 %v3526_v28, %v3523_v26  ;;  %v3538_v31 = vshll.u32 %v5885_v55, 16  ;;  %v3544_v39 = vshll.u32 %v4658_v37, 16  ;;  %v3549_v27 = vshrl.u32 %v4659_v6, 16  ;;  %1102 = vst.msk [vmem:[#allocation2 + $0x30] sm:$0xff] %vm248_vm4, %v1093_v24  ;;  %v4676_v53 = vld [vmem:[%s4917_s17 + $0x104] sm:$0x1] }
 0x160   : > { %3392 = vrot.lane.b32.xlu0 %v4633_v22, %s4880_s23  ;;  %v3370_v45 = vrot.slane %v3369_v29, 4  ;;  %v3552_v17 = vshll.u32 %v4659_v6, 16  ;;  %v3558_v62 = vshll.u32 %v4660_v14, 16  ;;  %v3563_v61 = vshrl.u32 %v5902_v19, 16  ;;  %v3389_v51 = vpop.permute.xlu1 %3388  ;;  %947 = vst.msk [vmem:[#allocation2 + $0x38] sm:$0xff] %vm202_vm3, %v4864_v38 }
 0x161   : > { %v3528_v50 = vrot.slane %v3527_v49, 4  ;;  %v3532_v8 = vrot.slane %v3530_v20, 5  ;;  %v3540_v46 = vrot.slane %v3538_v31, 5  ;;  %v3551_v52 = vrot.slane %v3549_v27, 4  ;;  %3400 = vst.msk [vmem:[#allocation2 + $0x60] sm:$0xff] %vm657_vm8, %v3389_v51 }
 0x162   : > { %v4865_v11 = vld [vmem:[%s4917_s17 + $0xf8] ss:$8 sps:$4 sm:$0xff]   ;;  %v3375_v54 = vsel %vm4942_vm2, %v3370_v45, %v3374_v25  ;;  %v3546_v56 = vrot.slane %v3544_v39, 5  ;;  %v3554_v48 = vrot.slane %v3552_v17, 5  ;;  %v3560_v57 = vrot.slane %v3558_v62, 5 }
 0x163   : > { %v3765_v21 = vld [vmem:[#allocation2 + $0x28] sm:$0xff]  ;;  %v4634_v18 = vcombine.low %v3361_v44, %v3375_v54  ;;  %v3541_v32 = vor.u32 %v3540_v46, %v3537_v35  ;;  %v3565_v58 = vrot.slane %v3563_v61, 4  ;;  %v3566_v59 = vshll.u32 %v5902_v19, 16  ;;  %2734 = vst.msk [vmem:[#allocation2 + $0x70] sm:$0xff] %vm202_vm3, %v4865_v11  ;;  %v4860_v9 = vld [vmem:[%s4917_s17 + $0x110] ss:$8 sps:$4 sm:$0xff]  }
 0x164   : > { %4743 = vmatmul.mubr.msk.bf16.gmra.mrb[8].mxu0 %vm3796_vm12, %v3765_v21  ;;  %v4866_v60 = vld [vmem:[%s4917_s17 + $0x108] ss:$8 sps:$4 sm:$0xff]   ;;  %3436 = vrot.lane.b32.xlu0 %v4859_v33, %s4879_s22  ;;  %v3555_v55 = vor.u32 %v3554_v48, %v3551_v52  ;;  %v3572_v43 = vshll.u32 %v4662_v40, 16  ;;  %v3677_v15 = vshrl.u32 %v4675_v41, 16  ;;  %v3680_v0 = vshll.u32 %v4675_v41, 16 }
 0x165   : > { %3394 = vrot.lane.b32.xlu1 %v4634_v18, %s4880_s23  ;;  %v3533_v1 = vsel %vm4942_vm2, %v3528_v50, %v3532_v8  ;;  %v3542_v2 = vrot.slane %v3541_v32, 4  ;;  %v3568_v63 = vrot.slane %v3566_v59, 5  ;;  %v4678_v4 = vld [vmem:[%s4917_s17 + $0x10c] sm:$0x1]  ;;  %v3691_v3 = vshrl.u32 %v4677_v47, 16  ;;  %2735 = vst.msk [vmem:[#allocation2 + $0x78] sm:$0xff] %vm202_vm3, %v4866_v60 }
 0x166   : > { %v3556_v37 = vrot.slane %v3555_v55, 4  ;;  %v3679_v6 = vrot.slane %v3677_v15, 4  ;;  %v3682_v7 = vrot.slane %v3680_v0, 5  ;;  %v3686_v10 = vshll.u32 %v4676_v53, 16  ;;  %v4679_v12 = vld [vmem:[%s4917_s17 + $0x110] sm:$0xf] }
 0x167   : > { %v3235_v42 = vpop.permute.xlu0 %3234  ;;  %v3547_v34 = vsel %vm4942_vm2, %v3542_v2, %v3546_v56  ;;  %v3569_v14 = vor.u32 %v3568_v63, %v3565_v58  ;;  %v3574_v19 = vrot.slane %v3572_v43, 5  ;;  %v3693_v16 = vrot.slane %v3691_v3, 4  ;;  %v4681_v36 = vld [vmem:[%s4917_s17 + $0x118] sm:$0xf]  ;;  %v4680_v13 = vld [vmem:[%s4917_s17 + $0x114] sm:$0x1] }
 0x168   : > { %3245 = vst.msk [vmem:[#allocation2 + $0x68] sm:$0xff] %vm500_vm7, %v3235_v42  ;;  %v4665_v20 = vcombine.low %v3533_v1, %v3547_v34  ;;  %v3561_v23 = vsel %vm4942_vm2, %v3556_v37, %v3560_v57  ;;  %v3683_v5 = vor.u32 %v3682_v7, %v3679_v6  ;;  %v3694_v24 = vshll.u32 %v4677_v47, 16  ;;  %v4682_v35 = vld [vmem:[%s4917_s17 + $0x11c] sm:$0x1] }
 0x169   : > { %3438 = vrot.lane.b32.xlu1 %v4860_v9, %s4879_s22  ;;  %v3570_v25 = vrot.slane %v3569_v14, 4  ;;  %v3700_v26 = vshll.u32 %v4678_v4, 16  ;;  %v3705_v28 = vshrl.u32 %v4679_v12, 16  ;;  %v3708_v22 = vshll.u32 %v4679_v12, 16 }
 0x16a   : > { %3592 = vrot.lane.b32.xlu0 %v4665_v20, %s4881_s24  ;;  %v3684_v44 = vrot.slane %v3683_v5, 4  ;;  %v3688_v29 = vrot.slane %v3686_v10, 5  ;;  %v3696_v33 = vrot.slane %v3694_v24, 5  ;;  %v3719_v38 = vshrl.u32 %v4681_v36, 16  ;;  %v1249_v49 = vpop.permute.xlu1 %1248 }
 0x16b   : > { %v3575_v31 = vsel %vm4942_vm2, %v3570_v25, %v3574_v19  ;;  %v3707_v39 = vrot.slane %v3705_v28, 4  ;;  %v3710_v40 = vrot.slane %v3708_v22, 5  ;;  %v3714_v27 = vshll.u32 %v4680_v13, 16  ;;  %1258 = vst.msk [vmem:[#allocation2 + $0x30] sm:$0xff] %vm408_vm5, %v1249_v49 }
 0x16c   : > { %v4666_v41 = vcombine.low %v3561_v23, %v3575_v31  ;;  %v3697_v21 = vor.u32 %v3696_v33, %v3693_v16  ;;  %v3702_v45 = vrot.slane %v3700_v26, 5  ;;  %v3721_v62 = vrot.slane %v3719_v38, 4 }
 0x16d   : > { %v3711_v17 = vor.u32 %v3710_v40, %v3707_v39  ;;  %v3722_v61 = vshll.u32 %v4681_v36, 16  ;;  %v3728_v47 = vshll.u32 %v4682_v35, 16  ;;  %v3689_v51 = vsel %vm4942_vm2, %v3684_v44, %v3688_v29 }
 0x16e   : > { %3594 = vrot.lane.b32.xlu1 %v4666_v41, %s4881_s24  ;;  %v3698_v50 = vrot.slane %v3697_v21, 4  ;;  %v1095_v8 = vpop.permute.xlu0 %1094  ;;  %v3433_v46 = vpop.permute.xlu1 %3432  ;;  %v3716_v53 = vrot.slane %v3714_v27, 5 }
 0x16f   : > { %v3712_v52 = vrot.slane %v3711_v17, 4  ;;  %v3724_v11 = vrot.slane %v3722_v61, 5  ;;  %1103 = vst.msk [vmem:[#allocation2 + $0x38] sm:$0xff] %vm248_vm4, %v1095_v8  ;;  %v3730_v57 = vrot.slane %v3728_v47, 5 }
 0x170   : > { %3444 = vst.msk [vmem:[#allocation2 + $0x60] sm:$0xff] %vm703_vm9, %v3433_v46  ;;  %v3703_v54 = vsel %vm4942_vm2, %v3698_v50, %v3702_v45 }
 0x171   : > { %v4685_v56 = vcombine.low %v3689_v51, %v3703_v54  ;;  %v3725_v48 = vor.u32 %v3724_v11, %v3721_v62  ;;  %v3717_v32 = vsel %vm4942_vm2, %v3712_v52, %v3716_v53 }
 0x172   : > { %v1293_v18 = vpop.permute.xlu1 %1292 }
 0x173   : > { %3748 = vrot.lane.b32.xlu0 %v4685_v56, %s4882_s25  ;;  %v3726_v58 = vrot.slane %v3725_v48, 4  ;;  %v3391_v59 = vpop.permute.xlu0 %3390  ;;  %1302 = vst.msk [vmem:[#allocation2 + $0x30] sm:$0xff] %vm454_vm6, %v1293_v18 }
 0x174   : > { %3401 = vst.msk [vmem:[#allocation2 + $0x68] sm:$0xff] %vm657_vm8, %v3391_v59 }
 0x175   : > { %v3731_v60 = vsel %vm4942_vm2, %v3726_v58, %v3730_v57 }
 0x176   : > { %v4686_v9 = vcombine.low %v3717_v32, %v3731_v60 }
 0x178   : > { %3750 = vrot.lane.b32.xlu1 %v4686_v9, %s4882_s25  ;;  %v1251_v55 = vpop.permute.xlu0 %1250 }
 0x179   : > { %1259 = vst.msk [vmem:[#allocation2 + $0x38] sm:$0xff] %vm408_vm5, %v1251_v55 }
 0x17c   : > { %v3435_v43 = vpop.permute.xlu0 %3434 }
 0x17d   : > { %v3589_v15 = vpop.permute.xlu1 %3588  ;;  %3445 = vst.msk [vmem:[#allocation2 + $0x68] sm:$0xff] %vm703_vm9, %v3435_v43 }
 0x17e   : > { %3600 = vst.msk [vmem:[#allocation2 + $0x60] sm:$0xff] %vm749_vm10, %v3589_v15 }
 0x180   : > { %v1295_v0 = vpop.permute.xlu0 %1294 }
 0x181   : > { %1303 = vst.msk [vmem:[#allocation2 + $0x38] sm:$0xff] %vm454_vm6, %v1295_v0 }
 0x182   : > { %v1449_v1 = vpop.permute.xlu1 %1448 }
 0x183   : > { %1458 = vst.msk [vmem:[#allocation2 + $0x30] sm:$0xff] %vm500_vm7, %v1449_v1 }
 0x186   : > { %v3745_v30 = vpop.permute.xlu1 %3744 }
 0x187   : > { %3756 = vst.msk [vmem:[#allocation2 + $0x60] sm:$0xff] %vm906_vm11, %v3745_v30  ;;  %v4706_v30 = vld [vmem:[%s6055_s2] ss:$0 sm:$0xff] }
 0x18b   : > { %v3591_v2 = vpop.permute.xlu0 %3590 }
 0x18c   : > { %3601 = vst.msk [vmem:[#allocation2 + $0x68] sm:$0xff] %vm749_vm10, %v3591_v2 }
 0x18e   : > { %v3772_v63 = vld [vmem:[#allocation2 + $0x60] sm:$0xff] }
 0x18f   : > { %4758 = vmatprep.mubr.msk.bf16.mxu1 %vm3796_vm12, %v3772_v63 }
 0x190   : > { %v1605_v4 = vpop.permute.xlu1 %1604 }
 0x191   : > { %1614 = vst.msk [vmem:[#allocation2 + $0x30] sm:$0xff] %vm657_vm8, %v1605_v4 }
 0x195   : > { %v1451_v3 = vpop.permute.xlu0 %1450 }
 0x196   : > { %1459 = vst.msk [vmem:[#allocation2 + $0x38] sm:$0xff] %vm500_vm7, %v1451_v3 }
 0x199   : > { %v3747_v42 = vpop.permute.xlu1 %3746 }
 0x19a   : > { %3757 = vst.msk [vmem:[#allocation2 + $0x68] sm:$0xff] %vm906_vm11, %v3747_v42 }
 0x19b   : > { %v5992_v7 = vpop.f32.mrb[0].mxu0 }
 0x19c   : > { %v5995_v10 = vpop.f32.mrb[1].mxu0 }
 0x19d   : > { %v1649_v37 = vpop.permute.xlu1 %1648  ;;  %v5997_v12 = vpop.f32.mrb[2].mxu0 }
 0x19e   : > { %v2881_v6 = vpop.permute.xlu0 %2880  ;;  %1658 = vst.msk [vmem:[#allocation2 + $0x30] sm:$0xff] %vm703_vm9, %v1649_v37  ;;  %v5999_v14 = vpop.f32.mrb[3].mxu0 }
 0x19f   : > { %2890 = vst.msk [vmem:[#allocation2 + $0x70] sm:$0xff] %vm248_vm4, %v2881_v6 }
 0x1a1   : > { %v3773_v34 = vld [vmem:[#allocation2 + $0x68] sm:$0xff] }
 0x1a2   : > { %4759 = vmatmul.mubr.msk.bf16.gmra.mrb[8].mxu1 %vm3796_vm12, %v3773_v34 }
 0x1a3   : > { %v1607_v19 = vpop.permute.xlu0 %1606 }
 0x1a4   : > { %1615 = vst.msk [vmem:[#allocation2 + $0x38] sm:$0xff] %vm657_vm8, %v1607_v19 }
 0x1a8   : > { %v2883_v16 = vpop.permute.xlu0 %2882 }
 0x1a9   : > { %2891 = vst.msk [vmem:[#allocation2 + $0x78] sm:$0xff] %vm248_vm4, %v2883_v16 }
 0x1ac   : > { %v1651_v36 = vpop.permute.xlu0 %1650  ;;  %v3037_v20 = vpop.permute.xlu1 %3036 }
 0x1ad   : > { %1659 = vst.msk [vmem:[#allocation2 + $0x38] sm:$0xff] %vm703_vm9, %v1651_v36 }
 0x1ae   : > { %3046 = vst.msk [vmem:[#allocation2 + $0x70] sm:$0xff] %vm408_vm5, %v3037_v20 }
 0x1b1   : > { %v1805_v25 = vpop.permute.xlu1 %1804 }
 0x1b2   : > { %1814 = vst.msk [vmem:[#allocation2 + $0x30] sm:$0xff] %vm749_vm10, %v1805_v25 }
 0x1b5   : > { %v3081_v26 = vpop.permute.xlu1 %3080 }
 0x1b6   : > { %v3039_v28 = vpop.permute.xlu0 %3038  ;;  %3090 = vst.msk [vmem:[#allocation2 + $0x70] sm:$0xff] %vm454_vm6, %v3081_v26 }
 0x1b7   : > { %3047 = vst.msk [vmem:[#allocation2 + $0x78] sm:$0xff] %vm408_vm5, %v3039_v28 }
 0x1b9   : > { %v4752_v23 = vpop.f32.mrb[0].mxu1 }
 0x1ba   : > { %v3947_v5 = vpop.f32.mrb[1].mxu1 }
 0x1bb   : > { %v4753_v24 = vpop.f32.mrb[2].mxu1  ;;  %v1807_v22 = vpop.permute.xlu0 %1806 }
 0x1bc   : > { %v3950_v13 = vpop.f32.mrb[3].mxu1  ;;  %1815 = vst.msk [vmem:[#allocation2 + $0x38] sm:$0xff] %vm749_vm10, %v1807_v22 }
 0x1bf   : > { %v3083_v44 = vpop.permute.xlu0 %3082  ;;  %v1961_v29 = vpop.permute.xlu1 %1960 }
 0x1c0   : > { %3091 = vst.msk [vmem:[#allocation2 + $0x78] sm:$0xff] %vm454_vm6, %v3083_v44 }
 0x1c1   : > { %1970 = vst.msk [vmem:[#allocation2 + $0x30] sm:$0xff] %vm906_vm11, %v1961_v29 }
 0x1c4   : > { %v3237_v33 = vpop.permute.xlu1 %3236 }
 0x1c5   : > { %3246 = vst.msk [vmem:[#allocation2 + $0x70] sm:$0xff] %vm500_vm7, %v3237_v33 }
 0x1c8   : > { %v3766_v35 = vld [vmem:[#allocation2 + $0x30] sm:$0xff] }
 0x1c9   : > { %4746 = vmatprep.mubr.msk.bf16.mxu0 %vm3796_vm12, %v3766_v35  ;;  %v1963_v38 = vpop.permute.xlu0 %1962 }
 0x1ca   : > { %1971 = vst.msk [vmem:[#allocation2 + $0x38] sm:$0xff] %vm906_vm11, %v1963_v38 }
 0x1ce   : > { %v3239_v49 = vpop.permute.xlu1 %3238 }
 0x1cf   : > { %3247 = vst.msk [vmem:[#allocation2 + $0x78] sm:$0xff] %vm500_vm7, %v3239_v49 }
 0x1d1   : > { %v3767_v41 = vld [vmem:[#allocation2 + $0x38] sm:$0xff] }
 0x1d2   : > { %v3393_v21 = vpop.permute.xlu0 %3392  ;;  %4747 = vmatmul.mubr.msk.bf16.gmra.mrb[12].mxu0 %vm3796_vm12, %v3767_v41 }
 0x1d3   : > { %3402 = vst.msk [vmem:[#allocation2 + $0x70] sm:$0xff] %vm657_vm8, %v3393_v21 }
 0x1d5   : > { %v6015_v31 = vpop.f32.mrb[4].mxu0 }
 0x1d6   : > { %v6018_v39 = vpop.f32.mrb[5].mxu0  ;;  %v3437_v45 = vpop.permute.xlu0 %3436 }
 0x1d7   : > { %v6020_v40 = vpop.f32.mrb[6].mxu0  ;;  %v3395_v17 = vpop.permute.xlu1 %3394  ;;  %3446 = vst.msk [vmem:[#allocation2 + $0x70] sm:$0xff] %vm703_vm9, %v3437_v45 }
 0x1d8   : > { %v6022_v27 = vpop.f32.mrb[7].mxu0  ;;  %3403 = vst.msk [vmem:[#allocation2 + $0x78] sm:$0xff] %vm657_vm8, %v3395_v17 }
 0x1db   : > { %v3439_v62 = vpop.permute.xlu1 %3438 }
 0x1dc   : > { %3447 = vst.msk [vmem:[#allocation2 + $0x78] sm:$0xff] %vm703_vm9, %v3439_v62  ;;  %v3593_v61 = vpop.permute.xlu0 %3592 }
 0x1dd   : > { %3602 = vst.msk [vmem:[#allocation2 + $0x70] sm:$0xff] %vm749_vm10, %v3593_v61 }
 0x1e0   : > { %v3595_v47 = vpop.permute.xlu1 %3594 }
 0x1e1   : > { %3603 = vst.msk [vmem:[#allocation2 + $0x78] sm:$0xff] %vm749_vm10, %v3595_v47 }
 0x1e5   : > { %v3749_v51 = vpop.permute.xlu0 %3748 }
 0x1e6   : > { %3758 = vst.msk [vmem:[#allocation2 + $0x70] sm:$0xff] %vm906_vm11, %v3749_v51 }
 0x1ea   : > { %v3751_v50 = vpop.permute.xlu1 %3750 }
 0x1eb   : > { %3759 = vst.msk [vmem:[#allocation2 + $0x78] sm:$0xff] %vm906_vm11, %v3751_v50 }
 0x1ed   : > { %v3774_v8 = vld [vmem:[#allocation2 + $0x70] sm:$0xff] }
 0x1ee   : > { %4762 = vmatprep.mubr.msk.bf16.mxu1 %vm3796_vm12, %v3774_v8 }
 0x1f2   : > { %v3775_v46 = vld [vmem:[#allocation2 + $0x78] sm:$0xff] }
 0x1f3   : > { %4763 = vmatmul.mubr.msk.bf16.gmra.mrb[12].mxu1 %vm3796_vm12, %v3775_v46 }
 0x208   : > { %v4756_v52 = vpop.f32.mrb[4].mxu1 }
 0x209   : > { %v3963_v53 = vpop.f32.mrb[5].mxu1 }
 0x20a   : > { %v4757_v11 = vpop.f32.mrb[6].mxu1 }
 0x20b   : > { %v3966_v54 = vpop.f32.mrb[7].mxu1 }
 0x237   : > { %v4744_v56 = vpop.f32.mrb[8].mxu0 }
 0x238   : > { %v4016_v48 = vmax.f32 %v5992_v7, %v4744_v56  ;;  %v3915_v57 = vpop.f32.mrb[9].mxu0 }
 0x239   : > { %v4010_v18 = vmax.f32 %v5995_v10, %v3915_v57  ;;  %v4745_v32 = vpop.f32.mrb[10].mxu0 }
 0x23a   : > { %v4019_v58 = vmax.f32 %v5997_v12, %v4745_v32  ;;  %v3918_v59 = vpop.f32.mrb[11].mxu0  ;;  %v4017_v60 = vmax.f32 %v4016_v48, %v4752_v23 }
 0x23b   : > { %v4013_v9 = vmax.f32 %v5999_v14, %v3918_v59  ;;  %v4011_v55 = vmax.f32 %v4010_v18, %v3947_v5 }
 0x23c   : > { %v4020_v43 = vmax.f32 %v4019_v58, %v4753_v24 }
 0x23d   : > { %v4014_v15 = vmax.f32 %v4013_v9, %v3950_v13 }
 0x275   : > { %v4760_v0 = vpop.f32.mrb[8].mxu1 }
 0x276   : > { %v4018_v1 = vmax.f32 %v4017_v60, %v4760_v0  ;;  %v3979_v2 = vpop.f32.mrb[9].mxu1 }
 0x277   : > { %v4012_v63 = vmax.f32 %v4011_v55, %v3979_v2  ;;  %v4761_v4 = vpop.f32.mrb[10].mxu1 }
 0x278   : > { %v4021_v3 = vmax.f32 %v4020_v43, %v4761_v4  ;;  %v3982_v42 = vpop.f32.mrb[11].mxu1  ;;  %v4043_v12 = vadd.f32 %v4706_v30, %v4018_v1 }
 0x279   : > { %v4041_v37 = vadd.f32 %v4706_v30, %v4012_v63  ;;  %v4015_v6 = vmax.f32 %v4014_v15, %v3982_v42 }
 0x27a   : > { %v4051_v14 = vmax.f32 %v4043_v12, 0.0  ;;  %v4044_v19 = vadd.f32 %v4706_v30, %v4021_v3 }
 0x27b   : > { %v4049_v7 = vmax.f32 %v4041_v37, 0.0  ;;  %v4042_v10 = vadd.f32 %v4706_v30, %v4015_v6 }
 0x27c   : > { %v4052_v16 = vmax.f32 %v4044_v19, 0.0 }
 0x27d   : > { %4057 = vxpose.xlu0.b32.start [1/8] (short) (narrow) %v4049_v7, 8  ;;  %v4050_v34 = vmax.f32 %v4042_v10, 0.0 }
 0x281   : > { %4058 = vxpose.xlu0.b32.cont [2/8] (short) (narrow) %v4050_v34, 8 }
 0x285   : > { %4059 = vxpose.xlu0.b32.cont [3/8] (short) (narrow) %v4051_v14, 8 }
 0x289   : > { %4060 = vxpose.xlu0.b32.cont [4/8] (short) (narrow) %v4052_v16, 8 }
 0x2a5   : > { %v4748_v36 = vpop.f32.mrb[12].mxu0 }
 0x2a6   : > { %v4028_v20 = vmax.f32 %v6015_v31, %v4748_v36  ;;  %v3931_v23 = vpop.f32.mrb[13].mxu0 }
 0x2a7   : > { %v4022_v5 = vmax.f32 %v6018_v39, %v3931_v23  ;;  %v4749_v24 = vpop.f32.mrb[14].mxu0 }
 0x2a8   : > { %v4031_v13 = vmax.f32 %v6020_v40, %v4749_v24  ;;  %v3934_v25 = vpop.f32.mrb[15].mxu0  ;;  %v4029_v26 = vmax.f32 %v4028_v20, %v4756_v52 }
 0x2a9   : > { %v4025_v28 = vmax.f32 %v6022_v27, %v3934_v25  ;;  %v4023_v22 = vmax.f32 %v4022_v5, %v3963_v53 }
 0x2aa   : > { %v4032_v44 = vmax.f32 %v4031_v13, %v4757_v11 }
 0x2ab   : > { %v4026_v29 = vmax.f32 %v4025_v28, %v3966_v54 }
 0x2c6   : > { %v4764_v33 = vpop.f32.mrb[12].mxu1 }
 0x2c7   : > { %v4030_v35 = vmax.f32 %v4029_v26, %v4764_v33  ;;  %v3995_v38 = vpop.f32.mrb[13].mxu1 }
 0x2c8   : > { %v4024_v49 = vmax.f32 %v4023_v22, %v3995_v38  ;;  %v4765_v41 = vpop.f32.mrb[14].mxu1 }
 0x2c9   : > { %v4033_v31 = vmax.f32 %v4032_v44, %v4765_v41  ;;  %v3998_v21 = vpop.f32.mrb[15].mxu1  ;;  %v4047_v40 = vadd.f32 %v4706_v30, %v4030_v35 }
 0x2ca   : > { %v4045_v45 = vadd.f32 %v4706_v30, %v4024_v49  ;;  %v4027_v39 = vmax.f32 %v4026_v29, %v3998_v21 }
 0x2cb   : > { %v4055_v27 = vmax.f32 %v4047_v40, 0.0  ;;  %v4048_v47 = vadd.f32 %v4706_v30, %v4033_v31 }
 0x2cc   : > { %v4053_v17 = vmax.f32 %v4045_v45, 0.0  ;;  %v4046_v62 = vadd.f32 %v4706_v30, %v4027_v39 }
 0x2cd   : > { %v4056_v51 = vmax.f32 %v4048_v47, 0.0 }
 0x2ce   : > { %4061 = vxpose.xlu0.b32.cont [5/8] (short) (narrow) %v4053_v17, 8  ;;  %v4054_v61 = vmax.f32 %v4046_v62, 0.0 }
 0x2d2   : > { %4062 = vxpose.xlu0.b32.cont [6/8] (short) (narrow) %v4054_v61, 8 }
 0x2d6   : > { %4063 = vxpose.xlu0.b32.cont [7/8] (short) (narrow) %v4055_v27, 8 }
 0x2da   : > { %4064 = vxpose.xlu0.b32.end [8/8] (short) (narrow) %v4056_v51, 8 }
 0x33e   : > { %v4073_v50 = vpop.trf.xlu0 }
 0x33f   : > { %4090 = vst.msk [vmem:[%s168_s10] sm:$0xff] %vm4089_vm14, %v4073_v50 }
 0x340 PF: > { %s13_s12 = sadd.s32 1, %s4873_s12  }
 0x341   : > { %p10_p4 = scmp.ge.s32.totalorder %s13_s12, 4  }
 0x343   :  { %12 = sbr.rel (!%p10_p4) target bundleno = 1 (0x1), region = 72 }

</bundles_post_ra>
